<compile_context>
chip_gen: v5e
topology: v5e:2x2
jax: 0.10.0
libtpu: 0.0.40
codegen_flags: <defaults>
</compile_context>

<pallas_src>
import jax
import jax.numpy as jnp
from jax.experimental import pallas as pl
from jax.experimental.pallas import tpu as pltpu

EMB = 32            # embsize of the reference module (must be <= 64 here)
IN_DIM = 784        # 28*28, kept UNPADDED on the streamed x / recon path
HID_DIM = 400
HID_P = 512         # 400 padded to a multiple of 128 (internal only)
LAT_P = 128         # fused [mu | logvar | 0...] latent width

MAX_TB = 512        # batch tile (sweepable 256/512/1024)
ROW_ALIGN = 16      # bf16 sublane packing: keep batch tiles multiples of 16


def _round_up(n, m):
    return (n + m - 1) // m * m


# ---------------------------------------------------------------------------
# Kernel: the whole forward (fc1+relu, fused fc21|fc22, reparameterize,
# fc3+relu, fc4+sigmoid) for one batch tile.
# ---------------------------------------------------------------------------
def vae1c_kernel(x_ref, eps_ref,
                 w1_ref, b1_ref, w2_ref, b2_ref,
                 w3_ref, b3_ref, w4_ref, b4_ref,
                 recon_ref, lat_ref):
    bf16 = jnp.bfloat16

    x = x_ref[...]                                              # (TB, 784) bf16

    # fc1 + relu  (bf16 MXU operands, f32 accumulate, f32 elementwise)
    h1 = jnp.dot(x, w1_ref[...],
                 preferred_element_type=jnp.float32) + b1_ref[...]
    h1 = jnp.maximum(h1, 0.0)                                   # (TB, 512) f32

    # fused fc21|fc22: lanes [0:EMB)=mu, [EMB:2EMB)=logvar, rest exactly 0
    lat = jnp.dot(h1.astype(bf16), w2_ref[...],
                  preferred_element_type=jnp.float32) + b2_ref[...]   # (TB, 128)

    # Reparameterize inside the lane-dense 128-wide layout:
    #   rotate logvar down into lanes [0:EMB) (XLU op, off the VPU path),
    #   mask the rotated junk lanes before exp (overflow safety),
    #   z = lat + eps * std  (eps zero-padded outside [0:EMB)).
    # Lanes >= EMB of z are don't-care: the matching rows of w3 are zero.
    logvar_aligned = pltpu.roll(lat, shift=LAT_P - EMB, axis=1)
    lane = jax.lax.broadcasted_iota(jnp.int32, lat.shape, 1)
    std = jnp.exp(0.5 * jnp.where(lane < EMB, logvar_aligned, 0.0))
    z = lat + eps_ref[...] * std                                # (TB, 128)

    # fc3 + relu
    h3 = jnp.dot(z.astype(bf16), w3_ref[...],
                 preferred_element_type=jnp.float32) + b3_ref[...]
    h3 = jnp.maximum(h3, 0.0)                                   # (TB, 512)

    # fc4 + sigmoid  (sigmoid(x) == 0.5*tanh(0.5*x)+0.5 : one EUP push)
    logits = jnp.dot(h3.astype(bf16), w4_ref[...],
                     preferred_element_type=jnp.float32) + b4_ref[...]  # (TB, 784)
    recon_ref[...] = 0.5 * jnp.tanh(0.5 * logits) + 0.5
    lat_ref[...] = lat                                          # (TB, 128) = [mu|logvar|0]


# ---------------------------------------------------------------------------
# Parameter handling
# ---------------------------------------------------------------------------
def init_params(key, embsize=EMB):
    """PyTorch-Linear-style init (uniform +/- 1/sqrt(fan_in)).
    Weights stored as (in_features, out_features); biases as (1, out)."""
    def linear(k, fan_in, fan_out):
        kw, kb = jax.random.split(k)
        bound = 1.0 / jnp.sqrt(fan_in)
        w = jax.random.uniform(kw, (fan_in, fan_out), jnp.float32, -bound, bound)
        b = jax.random.uniform(kb, (1, fan_out), jnp.float32, -bound, bound)
        return w, b

    k1, k21, k22, k3, k4 = jax.random.split(key, 5)
    w1, b1 = linear(k1, IN_DIM, HID_DIM)
    w21, b21 = linear(k21, HID_DIM, embsize)
    w22, b22 = linear(k22, HID_DIM, embsize)
    w3, b3 = linear(k3, embsize, HID_DIM)
    w4, b4 = linear(k4, HID_DIM, IN_DIM)
    return (w1, b1, w21, b21, w22, b22, w3, b3, w4, b4)


def pack_params(params):
    """Zero-pad internal dims to 128-multiples, fuse fc21/fc22, cast weights
    to bf16 (biases stay f32).  The x-facing dims (w1's K and w4's N) stay at
    784 so the streamed x / recon path is unpadded.  Do this ONCE per model.

    NOTE: the kernel's roll-based reparameterization relies on
      * w2_p / b2_p lanes >= 2*EMB being exactly zero,
      * w3_p rows >= EMB being exactly zero,
    so keep those zero regions if this packing is ever refactored."""
    w1, b1, w21, b21, w22, b22, w3, b3, w4, b4 = params
    bf16 = jnp.bfloat16
    w1_p = jnp.zeros((IN_DIM, HID_P), jnp.float32).at[:, :HID_DIM].set(w1).astype(bf16)
    b1_p = jnp.zeros((1, HID_P), jnp.float32).at[:, :HID_DIM].set(b1)
    w2_p = (jnp.zeros((HID_P, LAT_P), jnp.float32)
            .at[:HID_DIM, :EMB].set(w21)
            .at[:HID_DIM, EMB:2 * EMB].set(w22)).astype(bf16)
    b2_p = (jnp.zeros((1, LAT_P), jnp.float32)
            .at[:, :EMB].set(b21)
            .at[:, EMB:2 * EMB].set(b22))
    w3_p = jnp.zeros((LAT_P, HID_P), jnp.float32).at[:EMB, :HID_DIM].set(w3).astype(bf16)
    b3_p = jnp.zeros((1, HID_P), jnp.float32).at[:, :HID_DIM].set(b3)
    w4_p = jnp.zeros((HID_P, IN_DIM), jnp.float32).at[:HID_DIM, :].set(w4).astype(bf16)
    b4_p = b4.astype(jnp.float32)                               # (1, 784), unpadded
    return (w1_p, b1_p, w2_p, b2_p, w3_p, b3_p, w4_p, b4_p)


# ---------------------------------------------------------------------------
# Wrapper
# ---------------------------------------------------------------------------
@jax.jit
def vae1c_forward(x_nchw, eps, packed_params):
    """x_nchw: (B, 1, 28, 28) f32; eps: (B, EMB) standard-normal noise.
    Returns (recon (B,784), mu (B,EMB), logvar (B,EMB))."""
    B = x_nchw.shape[0]
    # == x.view(-1, 784); cast fused here so the kernel streams bf16 x.
    x = x_nchw.reshape(-1, IN_DIM).astype(jnp.bfloat16)

    # Batch tile: big enough to amortize per-step overhead, but ~B/2 so the
    # grid has >= 2 "parallel" steps for v7x's two TensorCores when B >= 32.
    tb = min(MAX_TB, max(ROW_ALIGN, _round_up(pl.cdiv(B, 2), ROW_ALIGN)))
    grid_b = pl.cdiv(B, tb)
    Bp = grid_b * tb

    if Bp != B:                                   # rare ragged-batch path only
        x = jnp.pad(x, ((0, Bp - B), (0, 0)))
    # eps is tiny (B x 128 f32): zero-pad its lanes so junk latent lanes get 0.
    eps_p = jnp.zeros((Bp, LAT_P), jnp.float32).at[:B, :EMB].set(eps)

    row = lambda w: pl.BlockSpec((tb, w), lambda i: (i, 0))      # blocked over batch
    resident = lambda shp: pl.BlockSpec(shp, lambda i: (0, 0))   # VMEM-resident weights

    in_specs = [row(IN_DIM), row(LAT_P)]
    in_specs += [resident(p.shape) for p in packed_params]

    w_bytes = sum(int(p.size) * p.dtype.itemsize for p in packed_params)
    cost = pl.CostEstimate(
        flops=2 * Bp * (IN_DIM * HID_P + HID_P * LAT_P + LAT_P * HID_P + HID_P * IN_DIM),
        transcendentals=Bp * (LAT_P + IN_DIM),
        bytes_accessed=(Bp * IN_DIM * 2          # x  (bf16 in)
                        + Bp * LAT_P * 4         # eps (f32 in)
                        + Bp * IN_DIM * 4        # recon (f32 out)
                        + Bp * LAT_P * 4         # lat (f32 out)
                        + w_bytes))

    recon, lat = pl.pallas_call(
        vae1c_kernel,
        grid=(grid_b,),
        in_specs=in_specs,
        out_specs=(row(IN_DIM), row(LAT_P)),
        out_shape=(
            jax.ShapeDtypeStruct((Bp, IN_DIM), jnp.float32),
            jax.ShapeDtypeStruct((Bp, LAT_P), jnp.float32),
        ),
        compiler_params=pltpu.CompilerParams(
            dimension_semantics=("parallel",),
            vmem_limit_bytes=32 * 1024 * 1024),   # tb=512 tiles fit on v5e too
        cost_estimate=cost,
    )(x, eps_p, *packed_params)

    if Bp != B:
        recon = recon[:B]
        lat = lat[:B]
    mu = lat[:, :EMB]
    logvar = lat[:, EMB:2 * EMB]
    return recon, mu, logvar


# ---------------------------------------------------------------------------
# References
# ---------------------------------------------------------------------------
def vae1c_reference_f32(x_nchw, eps, params):
    """Pure-f32 JAX equivalent of the PyTorch module forward."""
    w1, b1, w21, b21, w22, b22, w3, b3, w4, b4 = params
    x = x_nchw.reshape(-1, IN_DIM)
    h1 = jnp.maximum(x @ w1 + b1, 0.0)
    mu = h1 @ w21 + b21
    logvar = h1 @ w22 + b22
    z = mu + eps * jnp.exp(0.5 * logvar)
    h3 = jnp.maximum(z @ w3 + b3, 0.0)
    recon = jax.nn.sigmoid(h3 @ w4 + b4)
    return recon, mu, logvar


def vae1c_reference_bf16(x_nchw, eps, params):
    """Mirrors the kernel numerics: bf16 matmul operands, f32 accum/elementwise."""
    w1, b1, w21, b21, w22, b22, w3, b3, w4, b4 = params
    bf = lambda a: a.astype(jnp.bfloat16)
    dot = lambda a, b: jnp.dot(bf(a), bf(b), preferred_element_type=jnp.float32)
    x = x_nchw.reshape(-1, IN_DIM)
    h1 = jnp.maximum(dot(x, w1) + b1, 0.0)
    mu = dot(h1, w21) + b21
    logvar = dot(h1, w22) + b22
    z = mu + eps * jnp.exp(0.5 * logvar)
    h3 = jnp.maximum(dot(z, w3) + b3, 0.0)
    recon = jax.nn.sigmoid(dot(h3, w4) + b4)
    return recon, mu, logvar


if __name__ == "__main__":
    key = jax.random.PRNGKey(0)
    k_params, k_x, k_eps = jax.random.split(key, 3)

    B = 32                                          # small; gives a 2-step grid
    params = init_params(k_params, EMB)
    packed = pack_params(params)                    # one-time bf16 pack/pad
    x = jax.random.normal(k_x, (B, 1, 28, 28), jnp.float32)     # NCHW, like MNIST
    # eps corresponds to torch.randn_like(std); made an explicit input so the
    # kernel is deterministic.
    eps = jax.random.normal(k_eps, (B, EMB), jnp.float32)

    recon, mu, logvar = jax.block_until_ready(vae1c_forward(x, eps, packed))

    assert recon.shape == (B, IN_DIM)
    assert mu.shape == (B, EMB) and logvar.shape == (B, EMB)

    # Tight check against a reference that mirrors the kernel's bf16/f32 numerics.
    r_recon, r_mu, r_logvar = vae1c_reference_bf16(x, eps, params)
    assert jnp.allclose(recon, r_recon, atol=2e-3, rtol=2e-3)
    assert jnp.allclose(mu, r_mu, atol=2e-3, rtol=2e-3)
    assert jnp.allclose(logvar, r_logvar, atol=2e-3, rtol=2e-3)

    # Loose sanity check against the full-f32 module semantics (bf16 weights
    # introduce ~0.2% relative error).
    f_recon, f_mu, f_logvar = vae1c_reference_f32(x, eps, params)
    assert jnp.allclose(recon, f_recon, atol=5e-2, rtol=5e-2)
    assert jnp.allclose(mu, f_mu, atol=5e-2, rtol=5e-2)
    assert jnp.allclose(logvar, f_logvar, atol=5e-2, rtol=5e-2)

    print("KERNEL_OK")
</pallas_src>

<mosaic_0001>
module attributes {stable_mosaic.version = 11 : i64} {
  func.func @vae1c_kernel(%arg0: i32, %arg1: memref<16x784xbf16, #tpu.memory_space<vmem>>, %arg2: memref<16x128xf32, #tpu.memory_space<vmem>>, %arg3: memref<784x512xbf16, #tpu.memory_space<vmem>>, %arg4: memref<1x512xf32, #tpu.memory_space<vmem>>, %arg5: memref<512x128xbf16, #tpu.memory_space<vmem>>, %arg6: memref<1x128xf32, #tpu.memory_space<vmem>>, %arg7: memref<128x512xbf16, #tpu.memory_space<vmem>>, %arg8: memref<1x512xf32, #tpu.memory_space<vmem>>, %arg9: memref<512x784xbf16, #tpu.memory_space<vmem>>, %arg10: memref<1x784xf32, #tpu.memory_space<vmem>>, %arg11: memref<16x784xf32, #tpu.memory_space<vmem>>, %arg12: memref<16x128xf32, #tpu.memory_space<vmem>>) attributes {dimension_semantics = [#tpu.dimension_semantics<parallel>], iteration_bounds = array<i64: 2>, scalar_prefetch = 0 : i64, scratch_operands = 0 : i64, tpu.core_type = #tpu.core_type<tc>, window_params = [{transform_indices = @transform_0, window_bounds = array<i64: 16, 784>}, {transform_indices = @transform_1, window_bounds = array<i64: 16, 128>}, {pipeline_mode = #tpu.pipeline_mode<synchronous>, transform_indices = @transform_2, window_bounds = array<i64: 784, 512>}, {pipeline_mode = #tpu.pipeline_mode<synchronous>, transform_indices = @transform_3, window_bounds = array<i64: 1, 512>}, {pipeline_mode = #tpu.pipeline_mode<synchronous>, transform_indices = @transform_4, window_bounds = array<i64: 512, 128>}, {pipeline_mode = #tpu.pipeline_mode<synchronous>, transform_indices = @transform_5, window_bounds = array<i64: 1, 128>}, {pipeline_mode = #tpu.pipeline_mode<synchronous>, transform_indices = @transform_6, window_bounds = array<i64: 128, 512>}, {pipeline_mode = #tpu.pipeline_mode<synchronous>, transform_indices = @transform_7, window_bounds = array<i64: 1, 512>}, {pipeline_mode = #tpu.pipeline_mode<synchronous>, transform_indices = @transform_8, window_bounds = array<i64: 512, 784>}, {pipeline_mode = #tpu.pipeline_mode<synchronous>, transform_indices = @transform_9, window_bounds = array<i64: 1, 784>}, {transform_indices = @transform_10, window_bounds = array<i64: 16, 784>}, {transform_indices = @transform_11, window_bounds = array<i64: 16, 128>}]} {
    %c0 = arith.constant 0 : index
    %c0_0 = arith.constant 0 : index
    %0 = vector.load %arg1[%c0, %c0_0] : memref<16x784xbf16, #tpu.memory_space<vmem>>, vector<16x784xbf16>
    %c0_1 = arith.constant 0 : index
    %c0_2 = arith.constant 0 : index
    %1 = vector.load %arg3[%c0_1, %c0_2] : memref<784x512xbf16, #tpu.memory_space<vmem>>, vector<784x512xbf16>
    %cst = arith.constant dense<0.000000e+00> : vector<16x512xf32>
    %2 = tpu.matmul %0, %1, %cst {dimension_numbers = #tpu.dot_dimension_numbers<[1], [0], [0], [1], [0, 0, 1, 1], [], []>} : vector<16x784xbf16>, vector<784x512xbf16>, vector<16x512xf32> -> vector<16x512xf32>
    %c0_3 = arith.constant 0 : index
    %c0_4 = arith.constant 0 : index
    %3 = vector.load %arg4[%c0_3, %c0_4] : memref<1x512xf32, #tpu.memory_space<vmem>>, vector<1x512xf32>
    %4 = vector.broadcast %3 : vector<1x512xf32> to vector<16x512xf32>
    %5 = arith.addf %2, %4 : vector<16x512xf32>
    %cst_5 = arith.constant 0.000000e+00 : f32
    %6 = vector.broadcast %cst_5 : f32 to vector<16x512xf32>
    %7 = arith.maximumf %5, %6 : vector<16x512xf32>
    %8 = arith.truncf %7 : vector<16x512xf32> to vector<16x512xbf16>
    %c0_6 = arith.constant 0 : index
    %c0_7 = arith.constant 0 : index
    %9 = vector.load %arg5[%c0_6, %c0_7] : memref<512x128xbf16, #tpu.memory_space<vmem>>, vector<512x128xbf16>
    %cst_8 = arith.constant dense<0.000000e+00> : vector<16x128xf32>
    %10 = tpu.matmul %8, %9, %cst_8 {dimension_numbers = #tpu.dot_dimension_numbers<[1], [0], [0], [1], [0, 0, 1, 1], [], []>} : vector<16x512xbf16>, vector<512x128xbf16>, vector<16x128xf32> -> vector<16x128xf32>
    %c0_9 = arith.constant 0 : index
    %c0_10 = arith.constant 0 : index
    %11 = vector.load %arg6[%c0_9, %c0_10] : memref<1x128xf32, #tpu.memory_space<vmem>>, vector<1x128xf32>
    %12 = vector.broadcast %11 : vector<1x128xf32> to vector<16x128xf32>
    %13 = arith.addf %10, %12 : vector<16x128xf32>
    %c96_i32 = arith.constant 96 : i32
    %14 = tpu.dynamic_rotate %13 by %c96_i32 dim 1 : vector<16x128xf32>, i32 -> vector<16x128xf32>
    %15 = tpu.iota {dimensions = array<i32: 1>} : vector<16x128xi32>
    %c32_i32 = arith.constant 32 : i32
    %16 = vector.broadcast %c32_i32 : i32 to vector<16x128xi32>
    %17 = arith.cmpi slt, %15, %16 : vector<16x128xi32>
    %cst_11 = arith.constant 0.000000e+00 : f32
    %18 = vector.broadcast %cst_11 : f32 to vector<16x128xf32>
    %19 = arith.select %17, %14, %18 : vector<16x128xi1>, vector<16x128xf32>
    %cst_12 = arith.constant 5.000000e-01 : f32
    %20 = vector.broadcast %cst_12 : f32 to vector<16x128xf32>
    %21 = arith.mulf %20, %19 : vector<16x128xf32>
    %22 = math.exp %21 : vector<16x128xf32>
    %c0_13 = arith.constant 0 : index
    %c0_14 = arith.constant 0 : index
    %23 = vector.load %arg2[%c0_13, %c0_14] : memref<16x128xf32, #tpu.memory_space<vmem>>, vector<16x128xf32>
    %24 = arith.mulf %23, %22 : vector<16x128xf32>
    %25 = arith.addf %13, %24 : vector<16x128xf32>
    %26 = arith.truncf %25 : vector<16x128xf32> to vector<16x128xbf16>
    %c0_15 = arith.constant 0 : index
    %c0_16 = arith.constant 0 : index
    %27 = vector.load %arg7[%c0_15, %c0_16] : memref<128x512xbf16, #tpu.memory_space<vmem>>, vector<128x512xbf16>
    %cst_17 = arith.constant dense<0.000000e+00> : vector<16x512xf32>
    %28 = tpu.matmul %26, %27, %cst_17 {dimension_numbers = #tpu.dot_dimension_numbers<[1], [0], [0], [1], [0, 0, 1, 1], [], []>} : vector<16x128xbf16>, vector<128x512xbf16>, vector<16x512xf32> -> vector<16x512xf32>
    %c0_18 = arith.constant 0 : index
    %c0_19 = arith.constant 0 : index
    %29 = vector.load %arg8[%c0_18, %c0_19] : memref<1x512xf32, #tpu.memory_space<vmem>>, vector<1x512xf32>
    %30 = vector.broadcast %29 : vector<1x512xf32> to vector<16x512xf32>
    %31 = arith.addf %28, %30 : vector<16x512xf32>
    %cst_20 = arith.constant 0.000000e+00 : f32
    %32 = vector.broadcast %cst_20 : f32 to vector<16x512xf32>
    %33 = arith.maximumf %31, %32 : vector<16x512xf32>
    %34 = arith.truncf %33 : vector<16x512xf32> to vector<16x512xbf16>
    %c0_21 = arith.constant 0 : index
    %c0_22 = arith.constant 0 : index
    %35 = vector.load %arg9[%c0_21, %c0_22] : memref<512x784xbf16, #tpu.memory_space<vmem>>, vector<512x784xbf16>
    %cst_23 = arith.constant dense<0.000000e+00> : vector<16x784xf32>
    %36 = tpu.matmul %34, %35, %cst_23 {dimension_numbers = #tpu.dot_dimension_numbers<[1], [0], [0], [1], [0, 0, 1, 1], [], []>} : vector<16x512xbf16>, vector<512x784xbf16>, vector<16x784xf32> -> vector<16x784xf32>
    %c0_24 = arith.constant 0 : index
    %c0_25 = arith.constant 0 : index
    %37 = vector.load %arg10[%c0_24, %c0_25] : memref<1x784xf32, #tpu.memory_space<vmem>>, vector<1x784xf32>
    %38 = vector.broadcast %37 : vector<1x784xf32> to vector<16x784xf32>
    %39 = arith.addf %36, %38 : vector<16x784xf32>
    %cst_26 = arith.constant 5.000000e-01 : f32
    %40 = vector.broadcast %cst_26 : f32 to vector<16x784xf32>
    %41 = arith.mulf %40, %39 : vector<16x784xf32>
    %42 = math.tanh %41 : vector<16x784xf32>
    %cst_27 = arith.constant 5.000000e-01 : f32
    %43 = vector.broadcast %cst_27 : f32 to vector<16x784xf32>
    %44 = arith.mulf %43, %42 : vector<16x784xf32>
    %cst_28 = arith.constant 5.000000e-01 : f32
    %45 = vector.broadcast %cst_28 : f32 to vector<16x784xf32>
    %46 = arith.addf %44, %45 : vector<16x784xf32>
    %c0_29 = arith.constant 0 : index
    %c0_30 = arith.constant 0 : index
    %47 = vector.load %arg11[%c0_29, %c0_30] : memref<16x784xf32, #tpu.memory_space<vmem>>, vector<16x784xf32>
    tpu.vector_store %arg11[%c0_29, %c0_30], %46 {strides = array<i32>} : memref<16x784xf32, #tpu.memory_space<vmem>>, vector<16x784xf32>,
    %c0_31 = arith.constant 0 : index
    %c0_32 = arith.constant 0 : index
    %48 = vector.load %arg12[%c0_31, %c0_32] : memref<16x128xf32, #tpu.memory_space<vmem>>, vector<16x128xf32>
    tpu.vector_store %arg12[%c0_31, %c0_32], %13 {strides = array<i32>} : memref<16x128xf32, #tpu.memory_space<vmem>>, vector<16x128xf32>,
    return
  }
  func.func @transform_0(%arg0: i32) -> (i32, i32) {
    %c0_i32 = arith.constant 0 : i32
    %c0_i32_0 = arith.constant 0 : i32
    return %arg0, %c0_i32 : i32, i32
  }
  func.func @transform_1(%arg0: i32) -> (i32, i32) {
    %c0_i32 = arith.constant 0 : i32
    %c0_i32_0 = arith.constant 0 : i32
    return %arg0, %c0_i32 : i32, i32
  }
  func.func @transform_2(%arg0: i32) -> (i32, i32) {
    %c0_i32 = arith.constant 0 : i32
    %c0_i32_0 = arith.constant 0 : i32
    %c0_i32_1 = arith.constant 0 : i32
    return %c0_i32, %c0_i32_0 : i32, i32
  }
  func.func @transform_3(%arg0: i32) -> (i32, i32) {
    %c0_i32 = arith.constant 0 : i32
    %c0_i32_0 = arith.constant 0 : i32
    %c0_i32_1 = arith.constant 0 : i32
    return %c0_i32, %c0_i32_0 : i32, i32
  }
  func.func @transform_4(%arg0: i32) -> (i32, i32) {
    %c0_i32 = arith.constant 0 : i32
    %c0_i32_0 = arith.constant 0 : i32
    %c0_i32_1 = arith.constant 0 : i32
    return %c0_i32, %c0_i32_0 : i32, i32
  }
  func.func @transform_5(%arg0: i32) -> (i32, i32) {
    %c0_i32 = arith.constant 0 : i32
    %c0_i32_0 = arith.constant 0 : i32
    %c0_i32_1 = arith.constant 0 : i32
    return %c0_i32, %c0_i32_0 : i32, i32
  }
  func.func @transform_6(%arg0: i32) -> (i32, i32) {
    %c0_i32 = arith.constant 0 : i32
    %c0_i32_0 = arith.constant 0 : i32
    %c0_i32_1 = arith.constant 0 : i32
    return %c0_i32, %c0_i32_0 : i32, i32
  }
  func.func @transform_7(%arg0: i32) -> (i32, i32) {
    %c0_i32 = arith.constant 0 : i32
    %c0_i32_0 = arith.constant 0 : i32
    %c0_i32_1 = arith.constant 0 : i32
    return %c0_i32, %c0_i32_0 : i32, i32
  }
  func.func @transform_8(%arg0: i32) -> (i32, i32) {
    %c0_i32 = arith.constant 0 : i32
    %c0_i32_0 = arith.constant 0 : i32
    %c0_i32_1 = arith.constant 0 : i32
    return %c0_i32, %c0_i32_0 : i32, i32
  }
  func.func @transform_9(%arg0: i32) -> (i32, i32) {
    %c0_i32 = arith.constant 0 : i32
    %c0_i32_0 = arith.constant 0 : i32
    %c0_i32_1 = arith.constant 0 : i32
    return %c0_i32, %c0_i32_0 : i32, i32
  }
  func.func @transform_10(%arg0: i32) -> (i32, i32) {
    %c0_i32 = arith.constant 0 : i32
    %c0_i32_0 = arith.constant 0 : i32
    return %arg0, %c0_i32 : i32, i32
  }
  func.func @transform_11(%arg0: i32) -> (i32, i32) {
    %c0_i32 = arith.constant 0 : i32
    %c0_i32_0 = arith.constant 0 : i32
    return %arg0, %c0_i32 : i32, i32
  }
}

</mosaic_0001>

<bundles_post_ra>
// kernel: vae1c_forward.1
= control target key start
LH: loop header
LB: loop body
LE: loop exit
PB: predicated region body
PF: predicated region fallthrough
CT: control target
= control target key end

     0   :  { %s10436_s0 = inlined_call_operand.vmem [shape: bf16[32,784], index: 0, kind: input, shape index: {}]   ;;  %s10437_s1 = inlined_call_operand.vmem [shape: f32[32,128], index: 1, kind: input, shape index: {}]   ;;  %s10438_s2 = inlined_call_operand.vmem [shape: bf16[784,512], index: 2, kind: input, shape index: {}]   ;;  %s10439_s3 = inlined_call_operand.vmem [shape: f32[1,512], index: 3, kind: input, shape index: {}]   ;;  %s10440_s4 = inlined_call_operand.vmem [shape: bf16[512,128], index: 4, kind: input, shape index: {}]   ;;  %s10441_s5 = inlined_call_operand.vmem [shape: f32[1,128], index: 5, kind: input, shape index: {}]   ;;  %s10442_s6 = inlined_call_operand.vmem [shape: bf16[128,512], index: 6, kind: input, shape index: {}]   ;;  %s10443_s7 = inlined_call_operand.vmem [shape: f32[1,512], index: 7, kind: input, shape index: {}]   ;;  %s10444_s8 = inlined_call_operand.vmem [shape: bf16[512,784], index: 8, kind: input, shape index: {}]   ;;  %s10445_s9 = inlined_call_operand.vmem [shape: f32[1,784], index: 9, kind: input, shape index: {}]   ;;  %s10446_s10 = inlined_call_operand.hbm [shape: f32[32,784], index: 10, kind: output, shape index: {0}]   ;;  %s10447_s11 = inlined_call_operand.vmem [shape: f32[32,128], index: 11, kind: output, shape index: {1}]  }
   0x1   :  { %10451 = sst [smem:[#allocation8_spill]] %s10436_s0 }
   0x2   :  { %17 = vsyncpa [#allocation3], 0 }
   0x3   :  { %19 = vsyncpa [#allocation3 + $0x1], 0  ;;  %s7365_s17 = smov 0   ;;  %s7367_s18 = smov 0  }
   0x4   :  { %s7369_s19 = smov 0   ;;  %s7371_s20 = smov 0  }
   0x5 LB: > { %10452 = sst [smem:[#allocation5_spill]] %s7296_s19  ;;  %s7386_s21 = sadd.s32 4294967295, %s7300_s20   ;;  %s7300_s20 = sphi %s7371_s20, %s10458_s20   ;;  %s7296_s19 = sphi %s7369_s19, %s10460_s19   ;;  %s7292_s18 = sphi %s7367_s18, %s10462_s18   ;;  %s7288_s17 = sphi %s7365_s17, %s10461_s17  }
   0x6   : > { %s4686_s22 = sadd.s32 4294967294, %s7300_s20   ;;  %s7390_s23 = sadd.s32 1, %s7300_s20  }
   0x7   : > { %10453 = sst [smem:[#allocation6_spill]] %s7390_s23  ;;  %s252_s24 = sadd.s32 1, %s7296_s19 }
   0x8   : > { %s249_s25 = ssub.s32 %s7300_s20, %s7390_s23  ;;  %p262_p0 = scmp.ne.s32.totalorder %s7296_s19, %s7292_s18 }
   0x9   : > { %p250_p1 = scmp.eq.s32.totalorder %s249_s25, 0  ;;  %p263_p2 = scmp.eq.s32.totalorder %s7386_s21, 1 }
   0xa   : > { %p268_p3 = scmp.ne.s32.totalorder %s7292_s18, %s7288_s17  ;;  %p269_p4 = scmp.eq.s32.totalorder %s4686_s22, 1 }
   0xb   : > { %s7401_s26 = scalar_select %p250_p1, %s7296_s19, %s252_s24  }
   0xc   : > { %p7403_p5 = por %p263_p2, %p262_p0  ;;  %p7407_p6 = por %p269_p4, %p268_p3 }
   0xd   : > { %10454 = sst [smem:[#allocation7_spill]] %s7401_s26  ;;  %p4689_p7 = scmp.ge.s32.totalorder %s7300_s20, 1 }
   0xe   : > { %p356_p8 = scmp.lt.s32.totalorder %s7300_s20, 3 }
  0x10   : > { %p357_p9 = pnand %p4689_p7, %p356_p8 }
  0x11   : > { %s4690_s19 = sshll.u32 (!%p357_p9), %s7386_s21, 1  ;;  %s10457_s0 = sld [smem:[#allocation8_spill]] (!%p357_p9) }
  0x12   : > { %360 = sbr.rel (%p357_p9) target bundleno = 1116 (0x45c), region = 60  ;;  %p408_p10 = scmp.lt.s32.totalorder (!%p357_p9), %s4690_s19, 3 }
  0x13   : > { %s7302_s23 = smov (!%p357_p9), 96   ;;  %s397_s16 = sand.u32 (!%p357_p9), 1, %s7292_s18  }
  0x14   : > { %s7162_s22 = smul.u32 (!%p357_p9), 112, %s7386_s21  ;;  %s4562_s21 = scalar_lea.sflag (!%p357_p9), [#allocation3], %s397_s16 }
  0x17   : > { %v4838_v0 = vld [vmem:[%s10438_s2 + $0xe0] sm:$0xf]  ;;  %v6706_v1 = vld [vmem:[%s10438_s2 + $0xec] sm:$0xf0]  ;;  %s10464_s19 = smov (!%p408_p10, %s4690_s19), 3  ;;  %vm1657_vm0 = vcmask 130048  }
  0x18   : > { %v4966_v2 = vld [vmem:[%s10438_s2 + $0x1e0] sm:$0xf]  ;;  %v4839_v3 = vor.u32 %v6706_v1, %v4838_v0  ;;  %v6738_v4 = vld [vmem:[%s10438_s2 + $0x1ec] sm:$0xf0]  ;;  %s7161_s29 = smul.u32 28, %s10464_s19  ;;  %s4693_s15 = sshll.u32 %s10464_s19, 3 }
  0x19   : > { %v5094_v5 = vld [vmem:[%s10438_s2 + $0x2e0] sm:$0xf]  ;;  %v6770_v6 = vld [vmem:[%s10438_s2 + $0x2ec] sm:$0xf0]  ;;  %v4967_v7 = vor.u32 %v6738_v4, %v4966_v2  ;;  %s425_s24 = scalar_lea.vmem %s10447_s11, %s4693_s15  ;;  %s7160_s19 = smul.u32 112, %s397_s16 }
  0x1a   : > { %v5095_v8 = vor.u32 %v6770_v6, %v5094_v5  ;;  %v5222_v9 = vld [vmem:[%s10438_s2 + $0x3e0] sm:$0xf]  ;;  %v6802_v10 = vld [vmem:[%s10438_s2 + $0x3ec] sm:$0xf0]  ;;  %1661 = vmatpush.bf16.msra.mxu0 %v4839_v3  ;;  %s7651_s13 = scalar_lea.vmem %s10457_s0, %s7161_s29  ;;  %s4579_s29 = scalar_lea.hbm %s10446_s10, %s7162_s22 }
  0x1b   : > { %v4822_v11 = vld [vmem:[%s10438_s2 + $0xc0] sm:$0xf]  ;;  %v5223_v12 = vor.u32 %v6802_v10, %v5222_v9  ;;  %v6702_v13 = vld [vmem:[%s10438_s2 + $0xcc] sm:$0xf0]  ;;  %1675 = vmatpush.bf16.msra.mxu1 %v4967_v7  ;;  %s7258_s0 = scalar_lea.hbm %s10446_s10, 224 }
  0x1c   : > { %v4950_v14 = vld [vmem:[%s10438_s2 + $0x1c0] sm:$0xf]  ;;  %v6734_v15 = vld [vmem:[%s10438_s2 + $0x1cc] sm:$0xf0]  ;;  %1689 = vmatpush.bf16.msra.mxu2 %v5095_v8  ;;  %v4823_v16 = vor.u32 %v6702_v13, %v4822_v11 }
  0x1d   : > { %v4951_v17 = vor.u32 %v6734_v15, %v4950_v14  ;;  %v5078_v18 = vld [vmem:[%s10438_s2 + $0x2c0] sm:$0xf]  ;;  %v6766_v19 = vld [vmem:[%s10438_s2 + $0x2cc] sm:$0xf0]  ;;  %1703 = vmatpush.bf16.msra.mxu3 %v5223_v12 }
  0x1e   : > { %v5206_v20 = vld [vmem:[%s10438_s2 + $0x3c0] sm:$0xf]  ;;  %v5079_v21 = vor.u32 %v6766_v19, %v5078_v18  ;;  %v6798_v22 = vld [vmem:[%s10438_s2 + $0x3cc] sm:$0xf0]  ;;  %1662 = vmatpush.bf16.msra.mxu0 %v4823_v16 }
  0x1f   : > { %v4806_v23 = vld [vmem:[%s10438_s2 + $0xa0] sm:$0xf]  ;;  %v6698_v24 = vld [vmem:[%s10438_s2 + $0xac] sm:$0xf0]  ;;  %v5207_v25 = vor.u32 %v6798_v22, %v5206_v20  ;;  %1676 = vmatpush.bf16.msra.mxu1 %v4951_v17 }
  0x20   : > { %v4934_v26 = vld [vmem:[%s10438_s2 + $0x1a0] sm:$0xf]  ;;  %v6730_v27 = vld [vmem:[%s10438_s2 + $0x1ac] sm:$0xf0]  ;;  %v4807_v29 = vor.u32 %v6698_v24, %v4806_v23  ;;  %1690 = vmatpush.bf16.msra.mxu2 %v5079_v21 }
  0x21   : > { %v5062_v28 = vld [vmem:[%s10438_s2 + $0x2a0] sm:$0xf]  ;;  %v6762_v30 = vld [vmem:[%s10438_s2 + $0x2ac] sm:$0xf0]  ;;  %v4935_v33 = vor.u32 %v6730_v27, %v4934_v26  ;;  %1704 = vmatpush.bf16.msra.mxu3 %v5207_v25 }
  0x22   : > { %v5190_v31 = vld [vmem:[%s10438_s2 + $0x3a0] sm:$0xf]  ;;  %v6794_v32 = vld [vmem:[%s10438_s2 + $0x3ac] sm:$0xf0]  ;;  %v5063_v34 = vor.u32 %v6762_v30, %v5062_v28  ;;  %1663 = vmatpush.bf16.msra.mxu0 %v4807_v29 }
  0x23   : > { %v4790_v35 = vld [vmem:[%s10438_s2 + $0x80] sm:$0xf]  ;;  %v6694_v36 = vld [vmem:[%s10438_s2 + $0x8c] sm:$0xf0]  ;;  %v5191_v38 = vor.u32 %v6794_v32, %v5190_v31  ;;  %1677 = vmatpush.bf16.msra.mxu1 %v4935_v33  ;;  %v6704_v32 = vld [vmem:[%s10438_s2 + $0xe4] sm:$0xf] }
  0x24   : > { %v4918_v37 = vld [vmem:[%s10438_s2 + $0x180] sm:$0xf]  ;;  %v6726_v39 = vld [vmem:[%s10438_s2 + $0x18c] sm:$0xf0]  ;;  %v4791_v44 = vor.u32 %v6694_v36, %v4790_v35  ;;  %1691 = vmatpush.bf16.msra.mxu2 %v5063_v34  ;;  %v4840_v34 = vld [vmem:[%s10438_s2 + $0xf0] sm:$0xf0] }
  0x25   : > { %v5046_v40 = vld [vmem:[%s10438_s2 + $0x280] sm:$0xf]  ;;  %v6758_v41 = vld [vmem:[%s10438_s2 + $0x28c] sm:$0xf0]  ;;  %v4919_v45 = vor.u32 %v6726_v39, %v4918_v37  ;;  %1705 = vmatpush.bf16.msra.mxu3 %v5191_v38  ;;  %v6736_v39 = vld [vmem:[%s10438_s2 + $0x1e4] sm:$0xf] }
  0x26   : > { %v5174_v42 = vld [vmem:[%s10438_s2 + $0x380] sm:$0xf]  ;;  %v6790_v43 = vld [vmem:[%s10438_s2 + $0x38c] sm:$0xf0]  ;;  %v5047_v46 = vor.u32 %v6758_v41, %v5046_v40  ;;  %1664 = vmatpush.bf16.msra.mxu0 %v4791_v44  ;;  %v4968_v40 = vld [vmem:[%s10438_s2 + $0x1f0] sm:$0xf0] }
  0x27   : > { %v4774_v47 = vld [vmem:[%s10438_s2 + $0x60] sm:$0xf]  ;;  %v6690_v48 = vld [vmem:[%s10438_s2 + $0x6c] sm:$0xf0]  ;;  %v5175_v50 = vor.u32 %v6790_v43, %v5174_v42  ;;  %1678 = vmatpush.bf16.msra.mxu1 %v4919_v45 }
  0x28   : > { %v4902_v49 = vld [vmem:[%s10438_s2 + $0x160] sm:$0xf]  ;;  %v6722_v51 = vld [vmem:[%s10438_s2 + $0x16c] sm:$0xf0]  ;;  %v4775_v56 = vor.u32 %v6690_v48, %v4774_v47  ;;  %1692 = vmatpush.bf16.msra.mxu2 %v5047_v46  ;;  %v4843_v47 = vor.u32 %v6704_v32, %v4840_v34  ;;  %v6688_v34 = vld [vmem:[%s10438_s2 + $0x64] sm:$0xf] }
  0x29   : > { %v5030_v52 = vld [vmem:[%s10438_s2 + $0x260] sm:$0xf]  ;;  %v6754_v53 = vld [vmem:[%s10438_s2 + $0x26c] sm:$0xf0]  ;;  %v4903_v57 = vor.u32 %v6722_v51, %v4902_v49  ;;  %1706 = vmatpush.bf16.msra.mxu3 %v5175_v50  ;;  %v6700_v49 = vld [vmem:[%s10438_s2 + $0xc4] sm:$0xf] }
  0x2a   : > { %v5158_v54 = vld [vmem:[%s10438_s2 + $0x360] sm:$0xf]  ;;  %v6786_v55 = vld [vmem:[%s10438_s2 + $0x36c] sm:$0xf0]  ;;  %v5031_v58 = vor.u32 %v6754_v53, %v5030_v52  ;;  %1665 = vmatpush.bf16.msra.mxu0 %v4775_v56  ;;  %v4824_v50 = vld [vmem:[%s10438_s2 + $0xd0] sm:$0xf0]  ;;  %v4971_v56 = vor.u32 %v6736_v39, %v4968_v40 }
  0x2b   : > { %v4758_v59 = vld [vmem:[%s10438_s2 + $0x40] sm:$0xf]  ;;  %v6686_v60 = vld [vmem:[%s10438_s2 + $0x4c] sm:$0xf0]  ;;  %v5159_v62 = vor.u32 %v6786_v55, %v5158_v54  ;;  %1679 = vmatpush.bf16.msra.mxu1 %v4903_v57  ;;  %v4706_v51 = vld [vmem:[%s7651_s13 + $0x8] sm:$0xf] }
  0x2c   : > { %v4886_v61 = vld [vmem:[%s10438_s2 + $0x140] sm:$0xf]  ;;  %v6718_v63 = vld [vmem:[%s10438_s2 + $0x14c] sm:$0xf0]  ;;  %v4759_v4 = vor.u32 %v6686_v60, %v4758_v59  ;;  %1693 = vmatpush.bf16.msra.mxu2 %v5031_v58  ;;  %v6673_v52 = vld [vmem:[%s7651_s13 + $0x20] sm:$0xf0] }
  0x2d   : > { %v5014_v0 = vld [vmem:[%s10438_s2 + $0x240] sm:$0xf]  ;;  %v6750_v1 = vld [vmem:[%s10438_s2 + $0x24c] sm:$0xf0]  ;;  %v4887_v6 = vor.u32 %v6718_v63, %v4886_v61  ;;  %1707 = vmatpush.bf16.msra.mxu3 %v5159_v62  ;;  %v7665_v54 = vor.u32 %v6673_v52, %v4706_v51  ;;  %v6672_v57 = vld [vmem:[%s7651_s13 + $0x18] sm:$0xf0] }
  0x2e   : > { %v5142_v2 = vld [vmem:[%s10438_s2 + $0x340] sm:$0xf]  ;;  %v6782_v3 = vld [vmem:[%s10438_s2 + $0x34c] sm:$0xf0]  ;;  %v5015_v7 = vor.u32 %v6750_v1, %v5014_v0  ;;  %1666 = vmatpush.bf16.msra.mxu0 %v4759_v4  ;;  %v6670_v58 = vld [vmem:[%s7651_s13 + $0xc] sm:$0xf]  ;;  %v4827_v4 = vor.u32 %v6700_v49, %v4824_v50 }
  0x2f   : > { %v4742_v5 = vld [vmem:[%s10438_s2 + $0x20] sm:$0xf]  ;;  %v6682_v8 = vld [vmem:[%s10438_s2 + $0x2c] sm:$0xf0]  ;;  %v5143_v11 = vor.u32 %v6782_v3, %v5142_v2  ;;  %1680 = vmatpush.bf16.msra.mxu1 %v4887_v6  ;;  %v4708_v59 = vld [vmem:[%s7651_s13 + $0x24] sm:$0xf0] }
  0x30   : > { %v4870_v9 = vld [vmem:[%s10438_s2 + $0x120] sm:$0xf]  ;;  %v6714_v10 = vld [vmem:[%s10438_s2 + $0x12c] sm:$0xf0]  ;;  %v4743_v18 = vor.u32 %v6682_v8, %v4742_v5  ;;  %1694 = vmatpush.bf16.msra.mxu2 %v5015_v7  ;;  %v6732_v60 = vld [vmem:[%s10438_s2 + $0x1c4] sm:$0xf]  ;;  %v7675_v62 = vor.u32 %v6670_v58, %v4708_v59 }
  0x31   : > { %v4998_v12 = vld [vmem:[%s10438_s2 + $0x220] sm:$0xf]  ;;  %v6746_v13 = vld [vmem:[%s10438_s2 + $0x22c] sm:$0xf0]  ;;  %v4871_v23 = vor.u32 %v6714_v10, %v4870_v9  ;;  %1708 = vmatpush.bf16.msra.mxu3 %v5143_v11  ;;  %v6669_v0 = vld [vmem:[%s7651_s13 + $0x4] sm:$0xf] }
  0x32   : > { %v5126_v14 = vld [vmem:[%s10438_s2 + $0x320] sm:$0xf]  ;;  %v6778_v15 = vld [vmem:[%s10438_s2 + $0x32c] sm:$0xf0]  ;;  %v4999_v24 = vor.u32 %v6746_v13, %v4998_v12  ;;  %1667 = vmatpush.bf16.msra.mxu0 %v4743_v18  ;;  %v4952_v2 = vld [vmem:[%s10438_s2 + $0x1d0] sm:$0xf0] }
  0x33   : > { %v4726_v16 = vld [vmem:[%s10438_s2] sm:$0xf]  ;;  %v6678_v17 = vld [vmem:[%s10438_s2 + $0xc] sm:$0xf0]  ;;  %v5127_v27 = vor.u32 %v6778_v15, %v5126_v14  ;;  %1681 = vmatpush.bf16.msra.mxu1 %v4871_v23  ;;  %v6696_v10 = vld [vmem:[%s10438_s2 + $0xa4] sm:$0xf]  ;;  %v4955_v12 = vor.u32 %v6732_v60, %v4952_v2 }
  0x34   : > { %v4854_v19 = vld [vmem:[%s10438_s2 + $0x100] sm:$0xf]  ;;  %v6710_v20 = vld [vmem:[%s10438_s2 + $0x10c] sm:$0xf0]  ;;  %v4727_v33 = vor.u32 %v6678_v17, %v4726_v16  ;;  %1695 = vmatpush.bf16.msra.mxu2 %v4999_v24  ;;  %v4808_v11 = vld [vmem:[%s10438_s2 + $0xb0] sm:$0xf0] }
  0x35   : > { %v4982_v21 = vld [vmem:[%s10438_s2 + $0x200] sm:$0xf]  ;;  %v6742_v22 = vld [vmem:[%s10438_s2 + $0x20c] sm:$0xf0]  ;;  %v4855_v37 = vor.u32 %v6710_v20, %v4854_v19  ;;  %1709 = vmatpush.bf16.msra.mxu3 %v5127_v27  ;;  %v6728_v14 = vld [vmem:[%s10438_s2 + $0x1a4] sm:$0xf]  ;;  %v4811_v17 = vor.u32 %v6696_v10, %v4808_v11 }
  0x36   : > { %v5110_v25 = vld [vmem:[%s10438_s2 + $0x300] sm:$0xf]  ;;  %v6774_v26 = vld [vmem:[%s10438_s2 + $0x30c] sm:$0xf0]  ;;  %v4983_v38 = vor.u32 %v6742_v22, %v4982_v21  ;;  %1668 = vmatpush.bf16.msra.mxu0 %v4727_v33  ;;  %v4936_v15 = vld [vmem:[%s10438_s2 + $0x1b0] sm:$0xf0] }
  0x37   : > { %v5350_v28 = vld [vmem:[%s10438_s2 + $0x4e0] sm:$0xf]  ;;  %v6834_v29 = vld [vmem:[%s10438_s2 + $0x4ec] sm:$0xf0]  ;;  %v5111_v41 = vor.u32 %v6774_v26, %v5110_v25  ;;  %1682 = vmatpush.bf16.msra.mxu1 %v4855_v37  ;;  %v6692_v22 = vld [vmem:[%s10438_s2 + $0x84] sm:$0xf]  ;;  %v4939_v24 = vor.u32 %v6728_v14, %v4936_v15 }
  0x38   : > { %v5478_v30 = vld [vmem:[%s10438_s2 + $0x5e0] sm:$0xf]  ;;  %v6866_v31 = vld [vmem:[%s10438_s2 + $0x5ec] sm:$0xf0]  ;;  %v5351_v42 = vor.u32 %v6834_v29, %v5350_v28  ;;  %1696 = vmatpush.bf16.msra.mxu2 %v4983_v38  ;;  %v4792_v23 = vld [vmem:[%s10438_s2 + $0x90] sm:$0xf0] }
  0x39   : > { %v5494_v35 = vld [vmem:[%s10438_s2 + $0x600] sm:$0xf]  ;;  %v6870_v36 = vld [vmem:[%s10438_s2 + $0x60c] sm:$0xf0]  ;;  %v5479_v46 = vor.u32 %v6866_v31, %v5478_v30  ;;  %1710 = vmatpush.bf16.msra.mxu3 %v5111_v41  ;;  %v6724_v26 = vld [vmem:[%s10438_s2 + $0x184] sm:$0xf]  ;;  %v4795_v29 = vor.u32 %v6692_v22, %v4792_v23 }
  0x3a   : > { %v5334_v43 = vld [vmem:[%s10438_s2 + $0x4c0] sm:$0xf]  ;;  %v6830_v44 = vld [vmem:[%s10438_s2 + $0x4cc] sm:$0xf0]  ;;  %v5495_v55 = vor.u32 %v6870_v36, %v5494_v35  ;;  %1717 = vmatpush.bf16.msrb.mxu0 %v5351_v42  ;;  %v4920_v27 = vld [vmem:[%s10438_s2 + $0x190] sm:$0xf0] }
  0x3b   : > { %v5462_v45 = vld [vmem:[%s10438_s2 + $0x5c0] sm:$0xf]  ;;  %v6862_v48 = vld [vmem:[%s10438_s2 + $0x5cc] sm:$0xf0]  ;;  %v5335_v63 = vor.u32 %v6830_v44, %v5334_v43  ;;  %1731 = vmatpush.bf16.msrb.mxu1 %v5479_v46  ;;  %1697 = vmatmul.bf16.vlgmr.msra.gmra.mxu2 %v7665_v54  ;;  %v4776_v35 = vld [vmem:[%s10438_s2 + $0x70] sm:$0xf0]  ;;  %v4923_v38 = vor.u32 %v6724_v26, %v4920_v27 }
  0x3c   : > { %v4698_v53 = vld [vmem:[%s7651_s13] sm:$0xf]  ;;  %v5463_v3 = vor.u32 %v6862_v48, %v5462_v45  ;;  %v6826_v6 = vld [vmem:[%s10438_s2 + $0x4ac] sm:$0xf0]  ;;  %1752 = vmatpush.bf16.msrb.mxu2 %v5495_v55  ;;  %1711 = vmatmul.bf16.vlgmr.msra.gmra.mxu3 %v7675_v62  ;;  %v4722_v36 = vld [vmem:[%s7651_s13 + $0x18] sm:$0xf]  ;;  %v4779_v43 = vor.u32 %v6688_v34, %v4776_v35 }
  0x3d   : > { %v7673_v61 = vor.u32 %v6672_v57, %v4698_v53  ;;  %v4700_v1 = vld [vmem:[%s7651_s13 + $0x1c] sm:$0xf0]  ;;  %1759 = vmatpush.bf16.msrb.mxu3 %v4843_v47  ;;  %v6858_v9 = vld [vmem:[%s10438_s2 + $0x5ac] sm:$0xf0]  ;;  %v6675_v37 = vld [vmem:[%s7651_s13 + $0x30] sm:$0xf0] }
  0x3e   : > { %v5318_v5 = vld [vmem:[%s10438_s2 + $0x4a0] sm:$0xf]  ;;  %v7693_v8 = vor.u32 %v6669_v0, %v4700_v1  ;;  %1718 = vmatpush.bf16.msrb.mxu0 %v5335_v63  ;;  %v6822_v19 = vld [vmem:[%s10438_s2 + $0x48c] sm:$0xf0]  ;;  %v6720_v40 = vld [vmem:[%s10438_s2 + $0x164] sm:$0xf]  ;;  %v7780_v50 = vor.u32 %v6675_v37, %v4722_v36 }
  0x3f   : > { %v5446_v7 = vld [vmem:[%s10438_s2 + $0x5a0] sm:$0xf]  ;;  %1669 = vmatmul.bf16.vlgmr.msra.gmra.mxu0 %v7673_v61  ;;  %v5319_v13 = vor.u32 %v6826_v6, %v5318_v5  ;;  %1732 = vmatpush.bf16.msrb.mxu1 %v5463_v3  ;;  %v6854_v21 = vld [vmem:[%s10438_s2 + $0x58c] sm:$0xf0]  ;;  %v4904_v41 = vld [vmem:[%s10438_s2 + $0x170] sm:$0xf0] }
  0x40   : > { %1773 = vmatpush.bf16.msra.mxu2 %v4971_v56  ;;  %v5447_v16 = vor.u32 %v6858_v9, %v5446_v7  ;;  %v5302_v18 = vld [vmem:[%s10438_s2 + $0x480] sm:$0xf]  ;;  %1683 = vmatmul.bf16.vlgmr.msra.gmra.mxu1 %v7693_v8  ;;  %v6818_v31 = vld [vmem:[%s10438_s2 + $0x46c] sm:$0xf0]  ;;  %v6684_v48 = vld [vmem:[%s10438_s2 + $0x44] sm:$0xf]  ;;  %v4907_v51 = vor.u32 %v6720_v40, %v4904_v41 }
  0x41   : > { %1760 = vmatpush.bf16.msrb.mxu3 %v4827_v4  ;;  %v5430_v20 = vld [vmem:[%s10438_s2 + $0x580] sm:$0xf]  ;;  %v5303_v25 = vor.u32 %v6822_v19, %v5302_v18  ;;  %v6850_v33 = vld [vmem:[%s10438_s2 + $0x56c] sm:$0xf0]  ;;  %v4760_v49 = vld [vmem:[%s10438_s2 + $0x50] sm:$0xf0] }
  0x42   : > { %1719 = vmatpush.bf16.msrb.mxu0 %v5319_v13  ;;  %v5431_v28 = vor.u32 %v6854_v21, %v5430_v20  ;;  %v5286_v30 = vld [vmem:[%s10438_s2 + $0x460] sm:$0xf]  ;;  %v6814_v45 = vld [vmem:[%s10438_s2 + $0x44c] sm:$0xf0]  ;;  %v6716_v53 = vld [vmem:[%s10438_s2 + $0x144] sm:$0xf]  ;;  %v4763_v57 = vor.u32 %v6684_v48, %v4760_v49 }
  0x43   : > { %1733 = vmatpush.bf16.msrb.mxu1 %v5447_v16  ;;  %v5414_v32 = vld [vmem:[%s10438_s2 + $0x560] sm:$0xf]  ;;  %v5287_v39 = vor.u32 %v6818_v31, %v5286_v30  ;;  %v6846_v47 = vld [vmem:[%s10438_s2 + $0x54c] sm:$0xf0]  ;;  %v4888_v55 = vld [vmem:[%s10438_s2 + $0x150] sm:$0xf0] }
  0x44   : > { %1774 = vmatpush.bf16.msra.mxu2 %v4955_v12  ;;  %v5415_v42 = vor.u32 %v6850_v33, %v5414_v32  ;;  %v5270_v44 = vld [vmem:[%s10438_s2 + $0x440] sm:$0xf]  ;;  %v6810_v59 = vld [vmem:[%s10438_s2 + $0x42c] sm:$0xf0]  ;;  %v6680_v0 = vld [vmem:[%s10438_s2 + $0x24] sm:$0xf]  ;;  %v4891_v4 = vor.u32 %v6716_v53, %v4888_v55 }
  0x45   : > { %1761 = vmatpush.bf16.msrb.mxu3 %v4811_v17  ;;  %v5398_v46 = vld [vmem:[%s10438_s2 + $0x540] sm:$0xf]  ;;  %v5271_v52 = vor.u32 %v6814_v45, %v5270_v44  ;;  %v6842_v63 = vld [vmem:[%s10438_s2 + $0x52c] sm:$0xf0]  ;;  %v4744_v1 = vld [vmem:[%s10438_s2 + $0x30] sm:$0xf0] }
  0x46   : > { %1720 = vmatpush.bf16.msrb.mxu0 %v5303_v25  ;;  %v5399_v56 = vor.u32 %v6846_v47, %v5398_v46  ;;  %v5254_v58 = vld [vmem:[%s10438_s2 + $0x420] sm:$0xf]  ;;  %v6712_v2 = vld [vmem:[%s10438_s2 + $0x124] sm:$0xf]  ;;  %v4872_v3 = vld [vmem:[%s10438_s2 + $0x130] sm:$0xf0]  ;;  %v4747_v11 = vor.u32 %v6680_v0, %v4744_v1 }
  0x47   : > { %1734 = vmatpush.bf16.msrb.mxu1 %v5431_v28  ;;  %v5382_v60 = vld [vmem:[%s10438_s2 + $0x520] sm:$0xf]  ;;  %v5255_v5 = vor.u32 %v6810_v59, %v5254_v58  ;;  %v6806_v7 = vld [vmem:[%s10438_s2 + $0x40c] sm:$0xf0]  ;;  %v6676_v13 = vld [vmem:[%s10438_s2 + $0x4] sm:$0xf]  ;;  %v4875_v21 = vor.u32 %v6712_v2, %v4872_v3 }
  0x48   : > { %1775 = vmatpush.bf16.msra.mxu2 %v4939_v24  ;;  %v5238_v6 = vld [vmem:[%s10438_s2 + $0x400] sm:$0xf]  ;;  %v5383_v10 = vor.u32 %v6842_v63, %v5382_v60  ;;  %v6838_v12 = vld [vmem:[%s10438_s2 + $0x50c] sm:$0xf0]  ;;  %v4728_v14 = vld [vmem:[%s10438_s2 + $0x10] sm:$0xf0] }
  0x49   : > { %1762 = vmatpush.bf16.msrb.mxu3 %v4795_v29  ;;  %v5366_v9 = vld [vmem:[%s10438_s2 + $0x500] sm:$0xf]  ;;  %v6768_v15 = vld [vmem:[%s10438_s2 + $0x2e4] sm:$0xf]  ;;  %v5096_v16 = vld [vmem:[%s10438_s2 + $0x2f0] sm:$0xf0]  ;;  %v5239_v22 = vor.u32 %v6806_v7, %v5238_v6  ;;  %v4731_v27 = vor.u32 %v6676_v13, %v4728_v14 }
  0x4a   : > { %1721 = vmatpush.bf16.msrb.mxu0 %v5287_v39  ;;  %v6800_v17 = vld [vmem:[%s10438_s2 + $0x3e4] sm:$0xf]  ;;  %v5224_v18 = vld [vmem:[%s10438_s2 + $0x3f0] sm:$0xf0]  ;;  %v4714_v23 = vld [vmem:[%s7651_s13 + $0x10] sm:$0xf]  ;;  %v5367_v26 = vor.u32 %v6838_v12, %v5366_v9  ;;  %v5099_v31 = vor.u32 %v6768_v15, %v5096_v16 }
  0x4b   : > { %1735 = vmatpush.bf16.msrb.mxu1 %v5415_v42  ;;  %5508 = vmatmul.msk.bf16.vlgmr.msrb.gmra.mxu2 %vm1657_vm0, %v7780_v50  ;;  %v6832_v19 = vld [vmem:[%s10438_s2 + $0x4e4] sm:$0xf]  ;;  %v5352_v20 = vld [vmem:[%s10438_s2 + $0x4f0] sm:$0xf0]  ;;  %v6674_v24 = vld [vmem:[%s7651_s13 + $0x28] sm:$0xf0]  ;;  %v5227_v32 = vor.u32 %v6800_v17, %v5224_v18 }
  0x4c   : > { %1776 = vmatpush.bf16.msra.mxu2 %v4923_v38  ;;  %v6708_v25 = vld [vmem:[%s10438_s2 + $0x104] sm:$0xf]  ;;  %v4856_v28 = vld [vmem:[%s10438_s2 + $0x110] sm:$0xf0]  ;;  %v4716_v30 = vld [vmem:[%s7651_s13 + $0x2c] sm:$0xf0]  ;;  %v5355_v36 = vor.u32 %v6832_v19, %v5352_v20  ;;  %v7869_v37 = vor.u32 %v6674_v24, %v4714_v23 }
  0x4d   : > { %1763 = vmatpush.bf16.msrb.mxu3 %v4779_v43  ;;  %v6671_v29 = vld [vmem:[%s7651_s13 + $0x14] sm:$0xf]  ;;  %v6864_v33 = vld [vmem:[%s10438_s2 + $0x5e4] sm:$0xf]  ;;  %v4859_v41 = vor.u32 %v6708_v25, %v4856_v28  ;;  %s418_s13 = scalar_lea.vmem %s10437_s1, %s4693_s15  ;;  %s10379_s15 = scalar_lea.vmem [#allocation2], %s7160_s19 }
  0x4e   : > { %1722 = vmatpush.bf16.msrb.mxu0 %v5271_v52  ;;  %v5480_v34 = vld [vmem:[%s10438_s2 + $0x5f0] sm:$0xf0]  ;;  %v6764_v35 = vld [vmem:[%s10438_s2 + $0x2c4] sm:$0xf]  ;;  %v7880_v42 = vor.u32 %v6671_v29, %v4716_v30  ;;  %s4580_s26 = sshll.u32 %s10379_s15, 4  ;;  %s4581_s26 = int_to_ptr.vmem [resolvable:$true] %s4580_s26 }
  0x4f   : > { %1736 = vmatpush.bf16.msrb.mxu1 %v5399_v56  ;;  %v5080_v38 = vld [vmem:[%s10438_s2 + $0x2d0] sm:$0xf0]  ;;  %v6796_v39 = vld [vmem:[%s10438_s2 + $0x3c4] sm:$0xf]  ;;  %v5483_v45 = vor.u32 %v6864_v33, %v5480_v34 }
  0x50   : > { %1777 = vmatpush.bf16.msra.mxu2 %v4907_v51  ;;  %v5208_v40 = vld [vmem:[%s10438_s2 + $0x3d0] sm:$0xf0]  ;;  %v6828_v43 = vld [vmem:[%s10438_s2 + $0x4c4] sm:$0xf]  ;;  %v5083_v46 = vor.u32 %v6764_v35, %v5080_v38 }
  0x51   : > { %1764 = vmatpush.bf16.msrb.mxu3 %v4763_v57  ;;  %v5336_v44 = vld [vmem:[%s10438_s2 + $0x4d0] sm:$0xf0]  ;;  %v5211_v47 = vor.u32 %v6796_v39, %v5208_v40  ;;  %v6860_v48 = vld [vmem:[%s10438_s2 + $0x5c4] sm:$0xf] }
  0x52   : > { %1723 = vmatpush.bf16.msrb.mxu0 %v5255_v5  ;;  %v5464_v49 = vld [vmem:[%s10438_s2 + $0x5d0] sm:$0xf0]  ;;  %v6760_v51 = vld [vmem:[%s10438_s2 + $0x2a4] sm:$0xf]  ;;  %v5339_v52 = vor.u32 %v6828_v43, %v5336_v44 }
  0x53   : > { %1737 = vmatpush.bf16.msrb.mxu1 %v5383_v10  ;;  %v5064_v53 = vld [vmem:[%s10438_s2 + $0x2b0] sm:$0xf0]  ;;  %v6792_v55 = vld [vmem:[%s10438_s2 + $0x3a4] sm:$0xf]  ;;  %v5467_v59 = vor.u32 %v6860_v48, %v5464_v49 }
  0x54   : > { %1778 = vmatpush.bf16.msra.mxu2 %v4891_v4  ;;  %v5192_v56 = vld [vmem:[%s10438_s2 + $0x3b0] sm:$0xf0]  ;;  %v6824_v57 = vld [vmem:[%s10438_s2 + $0x4a4] sm:$0xf]  ;;  %v5067_v60 = vor.u32 %v6760_v51, %v5064_v53 }
  0x55   : > { %1765 = vmatpush.bf16.msrb.mxu3 %v4747_v11  ;;  %v5320_v58 = vld [vmem:[%s10438_s2 + $0x4b0] sm:$0xf0]  ;;  %v5195_v63 = vor.u32 %v6792_v55, %v5192_v56  ;;  %v6856_v0 = vld [vmem:[%s10438_s2 + $0x5a4] sm:$0xf] }
  0x56   : > { %1724 = vmatpush.bf16.msrb.mxu0 %v5239_v22  ;;  %v5448_v1 = vld [vmem:[%s10438_s2 + $0x5b0] sm:$0xf0]  ;;  %v6756_v2 = vld [vmem:[%s10438_s2 + $0x284] sm:$0xf]  ;;  %v5323_v3 = vor.u32 %v6824_v57, %v5320_v58 }
  0x57   : > { %1738 = vmatpush.bf16.msrb.mxu1 %v5367_v26  ;;  %v5048_v4 = vld [vmem:[%s10438_s2 + $0x290] sm:$0xf0]  ;;  %v6788_v5 = vld [vmem:[%s10438_s2 + $0x384] sm:$0xf]  ;;  %v5451_v10 = vor.u32 %v6856_v0, %v5448_v1  ;;  %v4846_v0 = vld [vmem:[%s10438_s2 + $0xe8] sm:$0xf] }
  0x58   : > { %1779 = vmatpush.bf16.msra.mxu2 %v4875_v21  ;;  %v5176_v6 = vld [vmem:[%s10438_s2 + $0x390] sm:$0xf0]  ;;  %v6820_v7 = vld [vmem:[%s10438_s2 + $0x484] sm:$0xf]  ;;  %v5051_v11 = vor.u32 %v6756_v2, %v5048_v4  ;;  %v6707_v1 = vld [vmem:[%s10438_s2 + $0xf4] sm:$0xf0] }
  0x59   : > { %1766 = vmatpush.bf16.msrb.mxu3 %v4731_v27  ;;  %1725 = vmatmul.bf16.vlgmr.msrb.gmra.mxu0 %v7869_v37  ;;  %v5304_v9 = vld [vmem:[%s10438_s2 + $0x490] sm:$0xf0]  ;;  %v5179_v12 = vor.u32 %v6788_v5, %v5176_v6  ;;  %v6852_v13 = vld [vmem:[%s10438_s2 + $0x584] sm:$0xf]  ;;  %v5102_v5 = vld [vmem:[%s10438_s2 + $0x2e8] sm:$0xf] }
  0x5a   : > { %1787 = vmatpush.bf16.msra.mxu0 %v5099_v31  ;;  %1739 = vmatmul.bf16.vlgmr.msrb.gmra.mxu1 %v7880_v42  ;;  %v5432_v14 = vld [vmem:[%s10438_s2 + $0x590] sm:$0xf0]  ;;  %v6752_v15 = vld [vmem:[%s10438_s2 + $0x264] sm:$0xf]  ;;  %v5307_v16 = vor.u32 %v6820_v7, %v5304_v9  ;;  %v6771_v6 = vld [vmem:[%s10438_s2 + $0x2f4] sm:$0xf0] }
  0x5b   : > { %1801 = vmatpush.bf16.msra.mxu1 %v5227_v32  ;;  %v5032_v17 = vld [vmem:[%s10438_s2 + $0x270] sm:$0xf0]  ;;  %v6784_v18 = vld [vmem:[%s10438_s2 + $0x364] sm:$0xf]  ;;  %v5435_v22 = vor.u32 %v6852_v13, %v5432_v14  ;;  %v4847_v13 = vor.u32 %v6707_v1, %v4846_v0  ;;  %v5230_v14 = vld [vmem:[%s10438_s2 + $0x3e8] sm:$0xf] }
  0x5c   : > { %1780 = vmatpush.bf16.msra.mxu2 %v4859_v41  ;;  %1767 = vmatmul.bf16.vlgmr.msrb.gmra.mxu3 %v7673_v61  ;;  %v5160_v19 = vld [vmem:[%s10438_s2 + $0x370] sm:$0xf0]  ;;  %v6816_v20 = vld [vmem:[%s10438_s2 + $0x464] sm:$0xf]  ;;  %v5035_v23 = vor.u32 %v6752_v15, %v5032_v17  ;;  %v6803_v15 = vld [vmem:[%s10438_s2 + $0x3f4] sm:$0xf0] }
  0x5d   : > { %1815 = vmatpush.bf16.msra.mxu3 %v5355_v36  ;;  %v5288_v21 = vld [vmem:[%s10438_s2 + $0x470] sm:$0xf0]  ;;  %v5163_v24 = vor.u32 %v6784_v18, %v5160_v19  ;;  %v6848_v25 = vld [vmem:[%s10438_s2 + $0x564] sm:$0xf]  ;;  %v4974_v17 = vld [vmem:[%s10438_s2 + $0x1e8] sm:$0xf]  ;;  %v5103_v19 = vor.u32 %v6771_v6, %v5102_v5 }
  0x5e   : > { %1788 = vmatpush.bf16.msra.mxu0 %v5083_v46  ;;  %v5416_v26 = vld [vmem:[%s10438_s2 + $0x570] sm:$0xf0]  ;;  %v6748_v27 = vld [vmem:[%s10438_s2 + $0x244] sm:$0xf]  ;;  %v5291_v28 = vor.u32 %v6816_v20, %v5288_v21  ;;  %v6739_v18 = vld [vmem:[%s10438_s2 + $0x1f4] sm:$0xf0] }
  0x5f   : > { %1802 = vmatpush.bf16.msra.mxu1 %v5211_v47  ;;  %1781 = vmatmul.bf16.vlgmr.msra.gmra.mxu2 %v7693_v8  ;;  %v5016_v29 = vld [vmem:[%s10438_s2 + $0x250] sm:$0xf0]  ;;  %v6780_v30 = vld [vmem:[%s10438_s2 + $0x344] sm:$0xf]  ;;  %v5419_v34 = vor.u32 %v6848_v25, %v5416_v26  ;;  %v4830_v21 = vld [vmem:[%s10438_s2 + $0xc8] sm:$0xf]  ;;  %v4975_v26 = vor.u32 %v6739_v18, %v4974_v17 }
  0x60   : > { %1829 = vmatpush.bf16.msrb.mxu2 %v5483_v45  ;;  %v5144_v31 = vld [vmem:[%s10438_s2 + $0x350] sm:$0xf0]  ;;  %v6812_v32 = vld [vmem:[%s10438_s2 + $0x444] sm:$0xf]  ;;  %v5019_v35 = vor.u32 %v6748_v27, %v5016_v29  ;;  %v6767_v25 = vld [vmem:[%s10438_s2 + $0x2d4] sm:$0xf0] }
  0x61   : > { %1816 = vmatpush.bf16.msra.mxu3 %v5339_v52  ;;  %v5272_v33 = vld [vmem:[%s10438_s2 + $0x450] sm:$0xf0]  ;;  %v5147_v36 = vor.u32 %v6780_v30, %v5144_v31  ;;  %v6844_v38 = vld [vmem:[%s10438_s2 + $0x544] sm:$0xf]  ;;  %v5214_v27 = vld [vmem:[%s10438_s2 + $0x3c8] sm:$0xf] }
  0x62   : > { %1789 = vmatpush.bf16.msra.mxu0 %v5067_v60  ;;  %v5400_v39 = vld [vmem:[%s10438_s2 + $0x550] sm:$0xf0]  ;;  %v6744_v40 = vld [vmem:[%s10438_s2 + $0x224] sm:$0xf]  ;;  %v5275_v41 = vor.u32 %v6812_v32, %v5272_v33  ;;  %v4958_v30 = vld [vmem:[%s10438_s2 + $0x1c8] sm:$0xf] }
  0x63   : > { %1803 = vmatpush.bf16.msra.mxu1 %v5195_v63  ;;  %v5000_v43 = vld [vmem:[%s10438_s2 + $0x230] sm:$0xf0]  ;;  %v6776_v44 = vld [vmem:[%s10438_s2 + $0x324] sm:$0xf]  ;;  %v5403_v48 = vor.u32 %v6844_v38, %v5400_v39  ;;  %v6735_v31 = vld [vmem:[%s10438_s2 + $0x1d4] sm:$0xf0] }
  0x64   : > { %1830 = vmatpush.bf16.msrb.mxu2 %v5467_v59  ;;  %v5128_v45 = vld [vmem:[%s10438_s2 + $0x330] sm:$0xf0]  ;;  %v6808_v46 = vld [vmem:[%s10438_s2 + $0x424] sm:$0xf]  ;;  %v5003_v52 = vor.u32 %v6744_v40, %v5000_v43  ;;  %v4814_v33 = vld [vmem:[%s10438_s2 + $0xa8] sm:$0xf]  ;;  %v4959_v39 = vor.u32 %v6735_v31, %v4958_v30 }
  0x65   : > { %1817 = vmatpush.bf16.msra.mxu3 %v5323_v3  ;;  %v5256_v47 = vld [vmem:[%s10438_s2 + $0x430] sm:$0xf0]  ;;  %v6840_v49 = vld [vmem:[%s10438_s2 + $0x524] sm:$0xf]  ;;  %v5131_v53 = vor.u32 %v6776_v44, %v5128_v45  ;;  %v6763_v38 = vld [vmem:[%s10438_s2 + $0x2b4] sm:$0xf0] }
  0x66   : > { %1790 = vmatpush.bf16.msra.mxu0 %v5051_v11  ;;  %v5384_v51 = vld [vmem:[%s10438_s2 + $0x530] sm:$0xf0]  ;;  %v6740_v55 = vld [vmem:[%s10438_s2 + $0x204] sm:$0xf]  ;;  %v5259_v58 = vor.u32 %v6808_v46, %v5256_v47  ;;  %v5198_v40 = vld [vmem:[%s10438_s2 + $0x3a8] sm:$0xf] }
  0x67   : > { %1804 = vmatpush.bf16.msra.mxu1 %v5179_v12  ;;  %v4984_v56 = vld [vmem:[%s10438_s2 + $0x210] sm:$0xf0]  ;;  %v6772_v57 = vld [vmem:[%s10438_s2 + $0x304] sm:$0xf]  ;;  %v5387_v3 = vor.u32 %v6840_v49, %v5384_v51  ;;  %v4942_v44 = vld [vmem:[%s10438_s2 + $0x1a8] sm:$0xf] }
  0x68   : > { %1831 = vmatpush.bf16.msrb.mxu2 %v5451_v10  ;;  %v5112_v59 = vld [vmem:[%s10438_s2 + $0x310] sm:$0xf0]  ;;  %v6804_v60 = vld [vmem:[%s10438_s2 + $0x404] sm:$0xf]  ;;  %v4987_v7 = vor.u32 %v6740_v55, %v4984_v56  ;;  %v6731_v45 = vld [vmem:[%s10438_s2 + $0x1b4] sm:$0xf0] }
  0x69   : > { %1818 = vmatpush.bf16.msra.mxu3 %v5307_v16  ;;  %v5240_v63 = vld [vmem:[%s10438_s2 + $0x410] sm:$0xf0]  ;;  %v6868_v2 = vld [vmem:[%s10438_s2 + $0x604] sm:$0xf]  ;;  %v5115_v9 = vor.u32 %v6772_v57, %v5112_v59  ;;  %v4798_v47 = vld [vmem:[%s10438_s2 + $0x88] sm:$0xf] }
  0x6a   : > { %1791 = vmatpush.bf16.msra.mxu0 %v5035_v23  ;;  %v5496_v4 = vld [vmem:[%s10438_s2 + $0x610] sm:$0xf0]  ;;  %v6836_v10 = vld [vmem:[%s10438_s2 + $0x504] sm:$0xf]  ;;  %v5243_v12 = vor.u32 %v6804_v60, %v5240_v63  ;;  %v5231_v23 = vor.u32 %v6803_v15, %v5230_v14  ;;  %v5054_v51 = vld [vmem:[%s10438_s2 + $0x288] sm:$0xf] }
  0x6b   : > { %1805 = vmatpush.bf16.msra.mxu1 %v5163_v24  ;;  %v5368_v11 = vld [vmem:[%s10438_s2 + $0x510] sm:$0xf0]  ;;  %v5499_v16 = vor.u32 %v6868_v2, %v5496_v4  ;;  %v5086_v24 = vld [vmem:[%s10438_s2 + $0x2c8] sm:$0xf]  ;;  %v6791_v56 = vld [vmem:[%s10438_s2 + $0x394] sm:$0xf0] }
  0x6c   : > { %1832 = vmatpush.bf16.msrb.mxu2 %v5435_v22  ;;  %v5371_v20 = vor.u32 %v6836_v10, %v5368_v11  ;;  %v6703_v22 = vld [vmem:[%s10438_s2 + $0xd4] sm:$0xf0]  ;;  %v5087_v32 = vor.u32 %v6767_v25, %v5086_v24  ;;  %v5182_v55 = vld [vmem:[%s10438_s2 + $0x388] sm:$0xf] }
  0x6d   : > { %1819 = vmatpush.bf16.msra.mxu3 %v5291_v28  ;;  %v6799_v28 = vld [vmem:[%s10438_s2 + $0x3d4] sm:$0xf0]  ;;  %v4831_v29 = vor.u32 %v6703_v22, %v4830_v21  ;;  %v4782_v63 = vld [vmem:[%s10438_s2 + $0x68] sm:$0xf]  ;;  %v5183_v1 = vor.u32 %v6791_v56, %v5182_v55  ;;  %v6705_v55 = vld [vmem:[%s10438_s2 + $0xec] sm:$0xf] }
  0x6e   : > { %1792 = vmatpush.bf16.msra.mxu0 %v5019_v35  ;;  %v5215_v35 = vor.u32 %v6799_v28, %v5214_v27  ;;  %v6727_v59 = vld [vmem:[%s10438_s2 + $0x194] sm:$0xf0]  ;;  %v5038_v2 = vld [vmem:[%s10438_s2 + $0x268] sm:$0xf]  ;;  %v4848_v56 = vld [vmem:[%s10438_s2 + $0xf8] sm:$0xf0] }
  0x6f   : > { %1806 = vmatpush.bf16.msra.mxu1 %v5147_v36  ;;  %v5070_v36 = vld [vmem:[%s10438_s2 + $0x2a8] sm:$0xf]  ;;  %v6691_v0 = vld [vmem:[%s10438_s2 + $0x74] sm:$0xf0] }
  0x70   : > { %1833 = vmatpush.bf16.msrb.mxu2 %v5419_v34  ;;  %v6699_v34 = vld [vmem:[%s10438_s2 + $0xb4] sm:$0xf0]  ;;  %v5071_v46 = vor.u32 %v6763_v38, %v5070_v36  ;;  %v5166_v5 = vld [vmem:[%s10438_s2 + $0x368] sm:$0xf] }
  0x71   : > { %1820 = vmatpush.bf16.msra.mxu3 %v5275_v41  ;;  %v6795_v41 = vld [vmem:[%s10438_s2 + $0x3b4] sm:$0xf0]  ;;  %v4815_v43 = vor.u32 %v6699_v34, %v4814_v33  ;;  %v5022_v15 = vld [vmem:[%s10438_s2 + $0x248] sm:$0xf] }
  0x72   : > { %1793 = vmatpush.bf16.msra.mxu0 %v5003_v52  ;;  %v5199_v49 = vor.u32 %v6795_v41, %v5198_v40  ;;  %v6759_v52 = vld [vmem:[%s10438_s2 + $0x294] sm:$0xf0]  ;;  %v5150_v18 = vld [vmem:[%s10438_s2 + $0x348] sm:$0xf] }
  0x73   : > { %1807 = vmatpush.bf16.msra.mxu1 %v5131_v53  ;;  %v4943_v53 = vor.u32 %v6731_v45, %v4942_v44  ;;  %v5055_v60 = vor.u32 %v6759_v52, %v5054_v51  ;;  %v6787_v6 = vld [vmem:[%s10438_s2 + $0x374] sm:$0xf0]  ;;  %v4894_v21 = vld [vmem:[%s10438_s2 + $0x148] sm:$0xf] }
  0x74   : > { %1834 = vmatpush.bf16.msrb.mxu2 %v5403_v48  ;;  %v6695_v48 = vld [vmem:[%s10438_s2 + $0x94] sm:$0xf0]  ;;  %v5167_v14 = vor.u32 %v6787_v6, %v5166_v5  ;;  %v4750_v24 = vld [vmem:[%s10438_s2 + $0x28] sm:$0xf]  ;;  %v4851_v6 = vor.u32 %v6705_v55, %v4848_v56 }
  0x75   : > { %1821 = vmatpush.bf16.msra.mxu3 %v5259_v58  ;;  %v4799_v57 = vor.u32 %v6695_v48, %v4798_v47  ;;  %v4926_v58 = vld [vmem:[%s10438_s2 + $0x188] sm:$0xf]  ;;  %v6723_v10 = vld [vmem:[%s10438_s2 + $0x174] sm:$0xf0] }
  0x76   : > { %1794 = vmatpush.bf16.msra.mxu0 %v4987_v7  ;;  %v4927_v4 = vor.u32 %v6727_v59, %v4926_v58  ;;  %v4783_v7 = vor.u32 %v6691_v0, %v4782_v63  ;;  %v6719_v22 = vld [vmem:[%s10438_s2 + $0x154] sm:$0xf0]  ;;  %v5006_v27 = vld [vmem:[%s10438_s2 + $0x228] sm:$0xf] }
  0x77   : > { %1808 = vmatpush.bf16.msra.mxu1 %v5115_v9  ;;  %v4910_v9 = vld [vmem:[%s10438_s2 + $0x168] sm:$0xf]  ;;  %v6683_v25 = vld [vmem:[%s10438_s2 + $0x34] sm:$0xf0] }
  0x78   : > { %1835 = vmatpush.bf16.msrb.mxu2 %v5387_v3  ;;  %v6755_v3 = vld [vmem:[%s10438_s2 + $0x274] sm:$0xf0]  ;;  %v4911_v17 = vor.u32 %v6723_v10, %v4910_v9  ;;  %v5134_v30 = vld [vmem:[%s10438_s2 + $0x328] sm:$0xf]  ;;  %v6701_v9 = vld [vmem:[%s10438_s2 + $0xcc] sm:$0xf] }
  0x79   : > { %1822 = vmatpush.bf16.msra.mxu3 %v5243_v12  ;;  %1795 = vmatmul.bf16.vlgmr.msra.gmra.mxu0 %v7665_v54  ;;  %v5039_v11 = vor.u32 %v6755_v3, %v5038_v2  ;;  %v4766_v12 = vld [vmem:[%s10438_s2 + $0x48] sm:$0xf]  ;;  %v6747_v28 = vld [vmem:[%s10438_s2 + $0x234] sm:$0xf0]  ;;  %v6737_v3 = vld [vmem:[%s10438_s2 + $0x1ec] sm:$0xf] }
  0x7a   : > { %1885 = vmatpush.bf16.msrb.mxu0 %v5103_v19  ;;  %1809 = vmatmul.bf16.vlgmr.msra.gmra.mxu1 %v7675_v62  ;;  %v6783_v19 = vld [vmem:[%s10438_s2 + $0x354] sm:$0xf0]  ;;  %v4878_v33 = vld [vmem:[%s10438_s2 + $0x128] sm:$0xf]  ;;  %v5007_v36 = vor.u32 %v6747_v28, %v5006_v27  ;;  %v4832_v10 = vld [vmem:[%s10438_s2 + $0xd8] sm:$0xf0] }
  0x7b   : > { %1857 = vmatpush.bf16.msrb.mxu1 %v4847_v13  ;;  %v6687_v13 = vld [vmem:[%s10438_s2 + $0x54] sm:$0xf0]  ;;  %v4990_v44 = vld [vmem:[%s10438_s2 + $0x208] sm:$0xf] }
  0x7c   : > { %1836 = vmatpush.bf16.msrb.mxu2 %v5371_v20  ;;  %1823 = vmatmul.bf16.vlgmr.msra.gmra.mxu3 %v7869_v37  ;;  %v4767_v20 = vor.u32 %v6687_v13, %v4766_v12  ;;  %v6779_v31 = vld [vmem:[%s10438_s2 + $0x334] sm:$0xf0]  ;;  %v5486_v59 = vld [vmem:[%s10438_s2 + $0x5e8] sm:$0xf] }
  0x7d   : > { %1850 = vmatpush.bf16.msrb.mxu3 %v5499_v16  ;;  %v6751_v16 = vld [vmem:[%s10438_s2 + $0x254] sm:$0xf0]  ;;  %v5135_v41 = vor.u32 %v6779_v31, %v5134_v30  ;;  %v5342_v63 = vld [vmem:[%s10438_s2 + $0x4c8] sm:$0xf]  ;;  %v4944_v30 = vld [vmem:[%s10438_s2 + $0x1b8] sm:$0xf0] }
  0x7e   : > { %1886 = vmatpush.bf16.msrb.mxu0 %v5087_v32  ;;  %v4751_v32 = vor.u32 %v6683_v25, %v4750_v24  ;;  %v6715_v34 = vld [vmem:[%s10438_s2 + $0x134] sm:$0xf0]  ;;  %v5470_v13 = vld [vmem:[%s10438_s2 + $0x5c8] sm:$0xf] }
  0x7f   : > { %1858 = vmatpush.bf16.msrb.mxu1 %v4831_v29  ;;  %1837 = vmatmul.bf16.vlgmr.msrb.gmra.mxu2 %v7880_v42  ;;  %v4895_v29 = vor.u32 %v6719_v22, %v4894_v21  ;;  %v6679_v38 = vld [vmem:[%s10438_s2 + $0x14] sm:$0xf0]  ;;  %v4879_v47 = vor.u32 %v6715_v34, %v4878_v33  ;;  %v6697_v21 = vld [vmem:[%s10438_s2 + $0xac] sm:$0xf]  ;;  %v4816_v22 = vld [vmem:[%s10438_s2 + $0xb8] sm:$0xf0] }
  0x80   : > { %1899 = vmatpush.bf16.msra.mxu2 %v5231_v23  ;;  %v5023_v23 = vor.u32 %v6751_v16, %v5022_v15  ;;  %v6835_v40 = vld [vmem:[%s10438_s2 + $0x4f4] sm:$0xf0]  ;;  %v5326_v15 = vld [vmem:[%s10438_s2 + $0x4a8] sm:$0xf]  ;;  %v4819_v31 = vor.u32 %v6697_v21, %v4816_v22  ;;  %v6693_v33 = vld [vmem:[%s10438_s2 + $0x8c] sm:$0xf] }
  0x81   : > { %1871 = vmatpush.bf16.msra.mxu3 %v4975_v26  ;;  %v5151_v26 = vor.u32 %v6783_v19, %v5150_v18  ;;  %v6743_v45 = vld [vmem:[%s10438_s2 + $0x214] sm:$0xf0]  ;;  %v4960_v18 = vld [vmem:[%s10438_s2 + $0x1d8] sm:$0xf0]  ;;  %v4835_v19 = vor.u32 %v6701_v9, %v4832_v10  ;;  %v5454_v25 = vld [vmem:[%s10438_s2 + $0x5a8] sm:$0xf] }
  0x82   : > { %1887 = vmatpush.bf16.msrb.mxu0 %v5071_v46  ;;  %v5118_v46 = vld [vmem:[%s10438_s2 + $0x308] sm:$0xf]  ;;  %v6775_v48 = vld [vmem:[%s10438_s2 + $0x314] sm:$0xf0]  ;;  %v4991_v58 = vor.u32 %v6743_v45, %v4990_v44  ;;  %v4800_v34 = vld [vmem:[%s10438_s2 + $0x98] sm:$0xf0] }
  0x83   : > { %1859 = vmatpush.bf16.msrb.mxu1 %v4815_v43  ;;  %v4862_v43 = vld [vmem:[%s10438_s2 + $0x108] sm:$0xf]  ;;  %v6871_v51 = vld [vmem:[%s10438_s2 + $0x614] sm:$0xf0]  ;;  %v5119_v0 = vor.u32 %v6775_v48, %v5118_v46  ;;  %v4928_v44 = vld [vmem:[%s10438_s2 + $0x198] sm:$0xf0]  ;;  %v4803_v45 = vor.u32 %v6693_v33, %v4800_v34 }
  0x84   : > { %1900 = vmatpush.bf16.msra.mxu2 %v5215_v35  ;;  %v4734_v35 = vld [vmem:[%s10438_s2 + $0x8] sm:$0xf]  ;;  %v6827_v16 = vld [vmem:[%s10438_s2 + $0x4b4] sm:$0xf0]  ;;  %v4784_v48 = vld [vmem:[%s10438_s2 + $0x78] sm:$0xf0] }
  0x85   : > { %1872 = vmatpush.bf16.msra.mxu3 %v4959_v39  ;;  %v5358_v39 = vld [vmem:[%s10438_s2 + $0x4e8] sm:$0xf]  ;;  %v4735_v52 = vor.u32 %v6679_v38, %v4734_v35  ;;  %v6823_v28 = vld [vmem:[%s10438_s2 + $0x494] sm:$0xf0]  ;;  %v4896_v9 = vld [vmem:[%s10438_s2 + $0x158] sm:$0xf0] }
  0x86   : > { %1888 = vmatpush.bf16.msrb.mxu0 %v5055_v60  ;;  %v6867_v60 = vld [vmem:[%s10438_s2 + $0x5f4] sm:$0xf0]  ;;  %v5310_v27 = vld [vmem:[%s10438_s2 + $0x488] sm:$0xf]  ;;  %v4880_v21 = vld [vmem:[%s10438_s2 + $0x138] sm:$0xf0] }
  0x87   : > { %1860 = vmatpush.bf16.msrb.mxu1 %v4799_v57  ;;  %v5359_v57 = vor.u32 %v6835_v40, %v5358_v39  ;;  %v5311_v35 = vor.u32 %v6823_v28, %v5310_v27  ;;  %v5438_v38 = vld [vmem:[%s10438_s2 + $0x588] sm:$0xf]  ;;  %v6855_v39 = vld [vmem:[%s10438_s2 + $0x594] sm:$0xf0]  ;;  %v6677_v27 = vld [vmem:[%s10438_s2 + $0xc] sm:$0xf] }
  0x88   : > { %1901 = vmatpush.bf16.msra.mxu2 %v5199_v49  ;;  %v5502_v49 = vld [vmem:[%s10438_s2 + $0x608] sm:$0xf]  ;;  %v5439_v46 = vor.u32 %v6855_v39, %v5438_v38  ;;  %v6815_v56 = vld [vmem:[%s10438_s2 + $0x454] sm:$0xf0]  ;;  %v4736_v28 = vld [vmem:[%s10438_s2 + $0x18] sm:$0xf0] }
  0x89   : > { %1873 = vmatpush.bf16.msra.mxu3 %v4943_v53  ;;  %v6711_v53 = vld [vmem:[%s10438_s2 + $0x114] sm:$0xf0]  ;;  %v5503_v2 = vor.u32 %v6871_v51, %v5502_v49  ;;  %v5294_v40 = vld [vmem:[%s10438_s2 + $0x468] sm:$0xf]  ;;  %v5232_v33 = vld [vmem:[%s10438_s2 + $0x3f8] sm:$0xf0]  ;;  %v4739_v39 = vor.u32 %v6677_v27, %v4736_v28 }
  0x8a   : > { %1889 = vmatpush.bf16.msrb.mxu0 %v5039_v11  ;;  %v4863_v5 = vor.u32 %v6711_v53, %v4862_v43  ;;  %v6725_v43 = vld [vmem:[%s10438_s2 + $0x18c] sm:$0xf]  ;;  %v6851_v53 = vld [vmem:[%s10438_s2 + $0x574] sm:$0xf0]  ;;  %v5278_v55 = vld [vmem:[%s10438_s2 + $0x448] sm:$0xf] }
  0x8b   : > { %1861 = vmatpush.bf16.msrb.mxu1 %v4783_v7  ;;  %v5487_v7 = vor.u32 %v6867_v60, %v5486_v59  ;;  %v4931_v51 = vor.u32 %v6725_v43, %v4928_v44  ;;  %v6765_v38 = vld [vmem:[%s10438_s2 + $0x2cc] sm:$0xf]  ;;  %v4864_v43 = vld [vmem:[%s10438_s2 + $0x118] sm:$0xf0] }
  0x8c   : > { %1902 = vmatpush.bf16.msra.mxu2 %v5183_v1  ;;  %5509 = vmatmul.msk.bf16.vlgmr.msrb.gmra.mxu3 %vm1657_vm0, %v7780_v50  ;;  %v6831_v1 = vld [vmem:[%s10438_s2 + $0x4d4] sm:$0xf0]  ;;  %v5168_v27 = vld [vmem:[%s10438_s2 + $0x378] sm:$0xf0]  ;;  %v6817_v28 = vld [vmem:[%s10438_s2 + $0x46c] sm:$0xf] }
  0x8d   : > { %1874 = vmatpush.bf16.msra.mxu3 %v4927_v4  ;;  %v4976_v4 = vld [vmem:[%s10438_s2 + $0x1f8] sm:$0xf0]  ;;  %v5343_v11 = vor.u32 %v6831_v1, %v5342_v63  ;;  %v6685_v63 = vld [vmem:[%s10438_s2 + $0x4c] sm:$0xf]  ;;  %v5279_v1 = vor.u32 %v6815_v56, %v5278_v55 }
  0x8e   : > { %1890 = vmatpush.bf16.msrb.mxu0 %v5023_v23  ;;  %v4979_v12 = vor.u32 %v6737_v3, %v4976_v4  ;;  %v5327_v23 = vor.u32 %v6827_v16, %v5326_v15  ;;  %v5406_v3 = vld [vmem:[%s10438_s2 + $0x548] sm:$0xf]  ;;  %v6847_v4 = vld [vmem:[%s10438_s2 + $0x554] sm:$0xf0]  ;;  %v6829_v55 = vld [vmem:[%s10438_s2 + $0x4cc] sm:$0xf] }
  0x8f   : > { %1862 = vmatpush.bf16.msrb.mxu1 %v4767_v20  ;;  %v5390_v16 = vld [vmem:[%s10438_s2 + $0x528] sm:$0xf]  ;;  %v5344_v56 = vld [vmem:[%s10438_s2 + $0x4d8] sm:$0xf0] }
  0x90   : > { %1903 = vmatpush.bf16.msra.mxu2 %v5167_v14  ;;  %v6863_v14 = vld [vmem:[%s10438_s2 + $0x5d4] sm:$0xf0] }
  0x91   : > { %1875 = vmatpush.bf16.msra.mxu3 %v4911_v17  ;;  %v6733_v17 = vld [vmem:[%s10438_s2 + $0x1cc] sm:$0xf]  ;;  %v5471_v20 = vor.u32 %v6863_v14, %v5470_v13  ;;  %v4752_v13 = vld [vmem:[%s10438_s2 + $0x38] sm:$0xf0] }
  0x92   : > { %1891 = vmatpush.bf16.msrb.mxu0 %v5007_v36  ;;  %v4963_v24 = vor.u32 %v6733_v17, %v4960_v18  ;;  %v6843_v17 = vld [vmem:[%s10438_s2 + $0x534] sm:$0xf0]  ;;  %v5246_v18 = vld [vmem:[%s10438_s2 + $0x408] sm:$0xf] }
  0x93   : > { %1863 = vmatpush.bf16.msrb.mxu1 %v4751_v32 }
  0x94   : > { %1904 = vmatpush.bf16.msra.mxu2 %v5151_v26  ;;  %v6859_v26 = vld [vmem:[%s10438_s2 + $0x5b4] sm:$0xf0] }
  0x95   : > { %1876 = vmatpush.bf16.msra.mxu3 %v4895_v29  ;;  %v6729_v29 = vld [vmem:[%s10438_s2 + $0x1ac] sm:$0xf]  ;;  %v5455_v32 = vor.u32 %v6859_v26, %v5454_v25  ;;  %v5391_v25 = vor.u32 %v6843_v17, %v5390_v16  ;;  %v5374_v26 = vld [vmem:[%s10438_s2 + $0x508] sm:$0xf] }
  0x96   : > { %1892 = vmatpush.bf16.msrb.mxu0 %v4991_v58  ;;  %v4947_v36 = vor.u32 %v6729_v29, %v4944_v30  ;;  %v4912_v58 = vld [vmem:[%s10438_s2 + $0x178] sm:$0xf0]  ;;  %v6821_v17 = vld [vmem:[%s10438_s2 + $0x48c] sm:$0xf] }
  0x97   : > { %1864 = vmatpush.bf16.msrb.mxu1 %v4735_v52  ;;  %v5422_v52 = vld [vmem:[%s10438_s2 + $0x568] sm:$0xf] }
  0x98   : > { %1905 = vmatpush.bf16.msra.mxu2 %v5135_v41  ;;  %v6819_v41 = vld [vmem:[%s10438_s2 + $0x474] sm:$0xf0]  ;;  %v5423_v60 = vor.u32 %v6851_v53, %v5422_v52  ;;  %v5216_v53 = vld [vmem:[%s10438_s2 + $0x3d8] sm:$0xf0] }
  0x99   : > { %1877 = vmatpush.bf16.msra.mxu3 %v4879_v47  ;;  %1893 = vmatmul.bf16.vlgmr.msrb.gmra.mxu0 %v7665_v54  ;;  %v6689_v47 = vld [vmem:[%s10438_s2 + $0x6c] sm:$0xf]  ;;  %v5295_v49 = vor.u32 %v6819_v41, %v5294_v40  ;;  %v5088_v40 = vld [vmem:[%s10438_s2 + $0x2d8] sm:$0xf0] }
  0x9a   : > { %1948 = vmatpush.bf16.msra.mxu0 %v5503_v2  ;;  %1865 = vmatmul.bf16.vlgmr.msrb.gmra.mxu1 %v7673_v61  ;;  %v4787_v59 = vor.u32 %v6689_v47, %v4784_v48  ;;  %v6709_v41 = vld [vmem:[%s10438_s2 + $0x10c] sm:$0xf] }
  0x9b   : > { %1913 = vmatpush.bf16.msra.mxu1 %v5359_v57  ;;  %v6721_v57 = vld [vmem:[%s10438_s2 + $0x16c] sm:$0xf]  ;;  %v4867_v52 = vor.u32 %v6709_v41, %v4864_v43  ;;  %v5280_v43 = vld [vmem:[%s10438_s2 + $0x458] sm:$0xf0] }
  0x9c   : > { %1906 = vmatpush.bf16.msra.mxu2 %v5119_v0  ;;  %v4768_v0 = vld [vmem:[%s10438_s2 + $0x58] sm:$0xf0]  ;;  %v4915_v2 = vor.u32 %v6721_v57, %v4912_v58  ;;  %v6761_v58 = vld [vmem:[%s10438_s2 + $0x2ac] sm:$0xf] }
  0x9d   : > { %1878 = vmatpush.bf16.msra.mxu3 %v4863_v5  ;;  %v5262_v5 = vld [vmem:[%s10438_s2 + $0x428] sm:$0xf]  ;;  %v4771_v10 = vor.u32 %v6685_v63, %v4768_v0  ;;  %v5472_v63 = vld [vmem:[%s10438_s2 + $0x5d8] sm:$0xf0]  ;;  %v6813_v41 = vld [vmem:[%s10438_s2 + $0x44c] sm:$0xf] }
  0x9e   : > { %1969 = vmatpush.bf16.msrb.mxu0 %v4979_v12  ;;  %v6681_v12 = vld [vmem:[%s10438_s2 + $0x2c] sm:$0xf] }
  0x9f   : > { %1914 = vmatpush.bf16.msra.mxu1 %v5343_v11  ;;  %1907 = vmatmul.bf16.vlgmr.msra.gmra.mxu2 %v7675_v62  ;;  %v5407_v11 = vor.u32 %v6847_v4, %v5406_v3  ;;  %v4755_v22 = vor.u32 %v6681_v12, %v4752_v13  ;;  %v5200_v4 = vld [vmem:[%s10438_s2 + $0x3b8] sm:$0xf0] }
  0xa0   : > { %1955 = vmatpush.bf16.msrb.mxu2 %v4851_v6  ;;  %1879 = vmatmul.bf16.vlgmr.msra.gmra.mxu3 %v7693_v8  ;;  %v6811_v6 = vld [vmem:[%s10438_s2 + $0x434] sm:$0xf0]  ;;  %v5456_v12 = vld [vmem:[%s10438_s2 + $0x5b8] sm:$0xf0] }
  0xa1   : > { %1927 = vmatpush.bf16.msrb.mxu3 %v5487_v7  ;;  %v6717_v7 = vld [vmem:[%s10438_s2 + $0x14c] sm:$0xf]  ;;  %v5263_v14 = vor.u32 %v6811_v6, %v5262_v5  ;;  %v5328_v6 = vld [vmem:[%s10438_s2 + $0x4b8] sm:$0xf0] }
  0xa2   : > { %1970 = vmatpush.bf16.msrb.mxu0 %v4963_v24  ;;  %v4899_v15 = vor.u32 %v6717_v7, %v4896_v9  ;;  %v5104_v24 = vld [vmem:[%s10438_s2 + $0x2f8] sm:$0xf0]  ;;  %v6825_v5 = vld [vmem:[%s10438_s2 + $0x4ac] sm:$0xf] }
  0xa3   : > { %1915 = vmatpush.bf16.msra.mxu1 %v5327_v23  ;;  %v6769_v23 = vld [vmem:[%s10438_s2 + $0x2ec] sm:$0xf] }
  0xa4   : > { %1956 = vmatpush.bf16.msrb.mxu2 %v4835_v19  ;;  %v6807_v19 = vld [vmem:[%s10438_s2 + $0x414] sm:$0xf0]  ;;  %v5107_v34 = vor.u32 %v6769_v23, %v5104_v24  ;;  %v6757_v9 = vld [vmem:[%s10438_s2 + $0x28c] sm:$0xf]  ;;  %v5440_v23 = vld [vmem:[%s10438_s2 + $0x598] sm:$0xf0] }
  0xa5   : > { %1928 = vmatpush.bf16.msrb.mxu3 %v5471_v20  ;;  %v6713_v20 = vld [vmem:[%s10438_s2 + $0x12c] sm:$0xf]  ;;  %v5247_v29 = vor.u32 %v6807_v19, %v5246_v18  ;;  %v5312_v18 = vld [vmem:[%s10438_s2 + $0x498] sm:$0xf0] }
  0xa6   : > { %1971 = vmatpush.bf16.msrb.mxu0 %v4947_v36  ;;  %v4883_v30 = vor.u32 %v6713_v20, %v4880_v21  ;;  %v5360_v36 = vld [vmem:[%s10438_s2 + $0x4f8] sm:$0xf0]  ;;  %v6753_v20 = vld [vmem:[%s10438_s2 + $0x26c] sm:$0xf]  ;;  %v5315_v24 = vor.u32 %v6821_v17, %v5312_v18 }
  0xa7   : > { %1916 = vmatpush.bf16.msra.mxu1 %v5311_v35  ;;  %v6833_v35 = vld [vmem:[%s10438_s2 + $0x4ec] sm:$0xf]  ;;  %v5040_v21 = vld [vmem:[%s10438_s2 + $0x278] sm:$0xf0] }
  0xa8   : > { %1957 = vmatpush.bf16.msrb.mxu2 %v4819_v31  ;;  %v6839_v31 = vld [vmem:[%s10438_s2 + $0x514] sm:$0xf0]  ;;  %v5363_v48 = vor.u32 %v6833_v35, %v5360_v36  ;;  %v5376_v17 = vld [vmem:[%s10438_s2 + $0x518] sm:$0xf0] }
  0xa9   : > { %1929 = vmatpush.bf16.msrb.mxu3 %v5455_v32  ;;  %5510 = vmatmul.msk.bf16.vlgmr.msra.gmra.mxu0 %vm1657_vm0, %v7780_v50  ;;  %v6801_v32 = vld [vmem:[%s10438_s2 + $0x3ec] sm:$0xf]  ;;  %v5375_v44 = vor.u32 %v6839_v31, %v5374_v26  ;;  %v5043_v26 = vor.u32 %v6753_v20, %v5040_v21  ;;  %v6879_v20 = vld [vmem:[%s10440_s4 + $0x38] sm:$0xff] }
  0xaa   : > { %1972 = vmatpush.bf16.msrb.mxu0 %v4931_v51  ;;  %v5235_v47 = vor.u32 %v6801_v32, %v5232_v33  ;;  %v5091_v51 = vor.u32 %v6765_v38, %v5088_v40  ;;  %v6749_v31 = vld [vmem:[%s10438_s2 + $0x24c] sm:$0xf]  ;;  %v5024_v32 = vld [vmem:[%s10438_s2 + $0x258] sm:$0xf0] }
  0xab   : > { %1917 = vmatpush.bf16.msra.mxu1 %v5295_v49  ;;  %v6797_v49 = vld [vmem:[%s10438_s2 + $0x3cc] sm:$0xf]  ;;  %v5152_v40 = vld [vmem:[%s10438_s2 + $0x358] sm:$0xf0] }
  0xac   : > { %1958 = vmatpush.bf16.msrb.mxu2 %v4803_v45  ;;  %v6865_v45 = vld [vmem:[%s10438_s2 + $0x5ec] sm:$0xf]  ;;  %v5219_v0 = vor.u32 %v6797_v49, %v5216_v53 }
  0xad   : > { %1930 = vmatpush.bf16.msrb.mxu3 %v5439_v46  ;;  %v5488_v46 = vld [vmem:[%s10438_s2 + $0x5f8] sm:$0xf0]  ;;  %v6849_v33 = vld [vmem:[%s10438_s2 + $0x56c] sm:$0xf] }
  0xae   : > { %1973 = vmatpush.bf16.msrb.mxu0 %v4915_v2  ;;  %v5491_v57 = vor.u32 %v6865_v45, %v5488_v46  ;;  %v6793_v2 = vld [vmem:[%s10438_s2 + $0x3ac] sm:$0xf]  ;;  %v5008_v46 = vld [vmem:[%s10438_s2 + $0x238] sm:$0xf0] }
  0xaf   : > { %1918 = vmatpush.bf16.msra.mxu1 %v5279_v1  ;;  %v5347_v1 = vor.u32 %v6829_v55, %v5344_v56  ;;  %v5203_v13 = vor.u32 %v6793_v2, %v5200_v4  ;;  %v6781_v38 = vld [vmem:[%s10438_s2 + $0x34c] sm:$0xf]  ;;  %v5136_v56 = vld [vmem:[%s10438_s2 + $0x338] sm:$0xf0] }
  0xb0   : > { %1959 = vmatpush.bf16.msrb.mxu2 %v4787_v59  ;;  %v5072_v59 = vld [vmem:[%s10438_s2 + $0x2b8] sm:$0xf0]  ;;  %v6745_v45 = vld [vmem:[%s10438_s2 + $0x22c] sm:$0xf]  ;;  %v5155_v49 = vor.u32 %v6781_v38, %v5152_v40 }
  0xb1   : > { %1931 = vmatpush.bf16.msrb.mxu3 %v5423_v60  ;;  %v6861_v60 = vld [vmem:[%s10438_s2 + $0x5cc] sm:$0xf]  ;;  %v5075_v3 = vor.u32 %v6761_v58, %v5072_v59  ;;  %v5011_v55 = vor.u32 %v6745_v45, %v5008_v46  ;;  %v5264_v58 = vld [vmem:[%s10438_s2 + $0x438] sm:$0xf0]  ;;  %v6874_v46 = vld [vmem:[%s10440_s4 + $0x10] sm:$0xff] }
  0xb2   : > { %1974 = vmatpush.bf16.msrb.mxu0 %v4899_v15  ;;  %v5475_v7 = vor.u32 %v6861_v60, %v5472_v63  ;;  %v6789_v15 = vld [vmem:[%s10438_s2 + $0x38c] sm:$0xf]  ;;  %v5392_v2 = vld [vmem:[%s10438_s2 + $0x538] sm:$0xf0] }
  0xb3   : > { %1919 = vmatpush.bf16.msra.mxu1 %v5263_v14  ;;  %v5331_v14 = vor.u32 %v6825_v5, %v5328_v6  ;;  %v6741_v63 = vld [vmem:[%s10438_s2 + $0x20c] sm:$0xf]  ;;  %v5504_v4 = vld [vmem:[%s10438_s2 + $0x618] sm:$0xf0] }
  0xb4   : > { %1960 = vmatpush.bf16.msrb.mxu2 %v4771_v10  ;;  %v5056_v10 = vld [vmem:[%s10438_s2 + $0x298] sm:$0xf0] }
  0xb5   : > { %1932 = vmatpush.bf16.msrb.mxu3 %v5407_v11  ;;  %v6857_v11 = vld [vmem:[%s10438_s2 + $0x5ac] sm:$0xf]  ;;  %v5059_v16 = vor.u32 %v6757_v9, %v5056_v10 }
  0xb6   : > { %1975 = vmatpush.bf16.msrb.mxu0 %v4883_v30  ;;  %v5459_v19 = vor.u32 %v6857_v11, %v5456_v12  ;;  %v6773_v10 = vld [vmem:[%s10438_s2 + $0x30c] sm:$0xf]  ;;  %v5120_v11 = vld [vmem:[%s10438_s2 + $0x318] sm:$0xf0] }
  0xb7   : > { %1920 = vmatpush.bf16.msra.mxu1 %v5247_v29  ;;  %v5296_v29 = vld [vmem:[%s10438_s2 + $0x478] sm:$0xf0]  ;;  %v5123_v18 = vor.u32 %v6773_v10, %v5120_v11 }
  0xb8   : > { %1961 = vmatpush.bf16.msrb.mxu2 %v4755_v22  ;;  %v6853_v22 = vld [vmem:[%s10438_s2 + $0x58c] sm:$0xf]  ;;  %v5299_v36 = vor.u32 %v6817_v28, %v5296_v29 }
  0xb9   : > { %1933 = vmatpush.bf16.msrb.mxu3 %v5391_v25  ;;  %v6785_v25 = vld [vmem:[%s10438_s2 + $0x36c] sm:$0xf]  ;;  %v5443_v30 = vor.u32 %v6853_v22, %v5440_v23 }
  0xba   : > { %1921 = vmatmul.bf16.vlgmr.msra.gmra.mxu1 %v7869_v37  ;;  %1976 = vmatpush.bf16.msrb.mxu0 %v4867_v52  ;;  %v5171_v35 = vor.u32 %v6785_v25, %v5168_v27  ;;  %v6777_v52 = vld [vmem:[%s10438_s2 + $0x32c] sm:$0xf]  ;;  %v6878_v25 = vld [vmem:[%s10440_s4 + $0x30] sm:$0xff] }
  0xbb   : > { %1983 = vmatpush.bf16.msrb.mxu1 %v5107_v34  ;;  %v5424_v34 = vld [vmem:[%s10438_s2 + $0x578] sm:$0xf0]  ;;  %v5139_v5 = vor.u32 %v6777_v52, %v5136_v56  ;;  %v6872_v56 = vld [vmem:[%s10440_s4] sm:$0xff] }
  0xbc   : > { %1962 = vmatpush.bf16.msrb.mxu2 %v4739_v39  ;;  %v5027_v39 = vor.u32 %v6749_v31, %v5024_v32  ;;  %v1670_v53 = vpop.f32.mrf.mxu0 }
  0xbd   : > { %1934 = vmatpush.bf16.msrb.mxu3 %v5375_v44  ;;  %1977 = vmatmul.bf16.vlgmr.msrb.gmra.mxu0 %v7693_v8  ;;  %v5427_v44 = vor.u32 %v6849_v33, %v5424_v34  ;;  %v1684_v59 = vpop.f32.mrf.mxu1  ;;  %v6876_v33 = vld [vmem:[%s10440_s4 + $0x20] sm:$0xff] }
  0xbe   : > { %2025 = vmatpush.bf16.msra.mxu0 %v5491_v57  ;;  %v6809_v57 = vld [vmem:[%s10438_s2 + $0x42c] sm:$0xf] }
  0xbf   : > { %1984 = vmatpush.bf16.msrb.mxu1 %v5091_v51  ;;  %1963 = vmatmul.bf16.vlgmr.msrb.gmra.mxu2 %v7673_v61  ;;  %v5184_v61 = vld [vmem:[%s10438_s2 + $0x398] sm:$0xf0]  ;;  %v5283_v51 = vor.u32 %v6813_v41, %v5280_v43  ;;  %v5267_v6 = vor.u32 %v6809_v57, %v5264_v58  ;;  %v6886_v41 = vld [vmem:[%s10440_s4 + $0x70] sm:$0xff] }
  0xc0   : > { %2011 = vmatpush.bf16.msra.mxu2 %v5363_v48  ;;  %1935 = vmatmul.bf16.vlgmr.msrb.gmra.mxu3 %v7880_v42  ;;  %v5187_v8 = vor.u32 %v6789_v15, %v5184_v61  ;;  %v5408_v48 = vld [vmem:[%s10438_s2 + $0x558] sm:$0xf0]  ;;  %v6837_v61 = vld [vmem:[%s10438_s2 + $0x50c] sm:$0xf] }
  0xc1   : > { %1997 = vmatpush.bf16.msra.mxu3 %v5235_v47  ;;  %v6845_v47 = vld [vmem:[%s10438_s2 + $0x54c] sm:$0xf]  ;;  %v5379_v22 = vor.u32 %v6837_v61, %v5376_v17 }
  0xc2   : > { %2026 = vmatpush.bf16.msra.mxu0 %v5475_v7  ;;  %v5411_v60 = vor.u32 %v6845_v47, %v5408_v48  ;;  %v1698_v7 = vpop.f32.mrf.mxu2  ;;  %v6885_v48 = vld [vmem:[%s10440_s4 + $0x68] sm:$0xff] }
  0xc3   : > { %1985 = vmatpush.bf16.msrb.mxu1 %v5075_v3  ;;  %v6869_v3 = vld [vmem:[%s10438_s2 + $0x60c] sm:$0xf] }
  0xc4   : > { %2012 = vmatpush.bf16.msra.mxu2 %v5347_v1  ;;  %v6841_v1 = vld [vmem:[%s10438_s2 + $0x52c] sm:$0xf]  ;;  %v5507_v15 = vor.u32 %v6869_v3, %v5504_v4  ;;  %v1672_v23 = vpop.f32.mrf.mxu0  ;;  %v6880_v4 = vld [vmem:[%s10440_s4 + $0x40] sm:$0xff] }
  0xc5   : > { %1998 = vmatpush.bf16.msra.mxu3 %v5219_v0  ;;  %v4992_v0 = vld [vmem:[%s10438_s2 + $0x218] sm:$0xf0]  ;;  %v5395_v12 = vor.u32 %v6841_v1, %v5392_v2  ;;  %v6881_v1 = vld [vmem:[%s10440_s4 + $0x48] sm:$0xff] }
  0xc6   : > { %2027 = vmatpush.bf16.msra.mxu0 %v5459_v19  ;;  %v4995_v9 = vor.u32 %v6741_v63, %v4992_v0  ;;  %v6882_v0 = vld [vmem:[%s10440_s4 + $0x50] sm:$0xff] }
  0xc7   : > { %1986 = vmatpush.bf16.msrb.mxu1 %v5059_v16  ;;  %v8649_v16 = vld [vmem:[%s10439_s3] sm:$0xf] }
  0xc8   : > { %2013 = vmatpush.bf16.msra.mxu2 %v5331_v14  ;;  %v5248_v14 = vld [vmem:[%s10438_s2 + $0x418] sm:$0xf0]  ;;  %v634_v21 = vperm.slane %v8649_v16, 0 }
  0xc9   : > { %1999 = vmatpush.bf16.msra.mxu3 %v5203_v13  ;;  %v6805_v13 = vld [vmem:[%s10438_s2 + $0x40c] sm:$0xf] }
  0xca   : > { %2028 = vmatpush.bf16.msra.mxu0 %v5443_v30  ;;  %v5251_v19 = vor.u32 %v6805_v13, %v5248_v14  ;;  %v1673_v27 = vadd.f32 %v1672_v23, %v634_v21  ;;  %v1700_v28 = vpop.f32.mrf.mxu2  ;;  %v6894_v23 = vld [vmem:[%s10440_s4 + $0xb0] sm:$0xff] }
  0xcb   : > { %1987 = vmatpush.bf16.msrb.mxu1 %v5043_v26  ;;  %v1671_v26 = vadd.f32 %v1670_v53, %v634_v21  ;;  %v6884_v53 = vld [vmem:[%s10440_s4 + $0x60] sm:$0xff] }
  0xcc   : > { %2014 = vmatpush.bf16.msra.mxu2 %v5315_v24  ;;  %v1712_v24 = vpop.f32.mrf.mxu3 }
  0xcd   : > { %2000 = vmatpush.bf16.msra.mxu3 %v5187_v8  ;;  %v1686_v8 = vpop.f32.mrf.mxu1  ;;  %v1685_v29 = vadd.f32 %v1684_v59, %v1671_v26  ;;  %v6883_v59 = vld [vmem:[%s10440_s4 + $0x58] sm:$0xff] }
  0xce   : > { %2029 = vmatpush.bf16.msra.mxu0 %v5427_v44  ;;  %v1687_v30 = vadd.f32 %v1686_v8, %v1673_v27 }
  0xcf   : > { %1988 = vmatpush.bf16.msrb.mxu1 %v5027_v39  ;;  %v1699_v34 = vadd.f32 %v1698_v7, %v1685_v29  ;;  %v635_v7 = vperm.slane %v8649_v16, 1 }
  0xd0   : > { %2015 = vmatpush.bf16.msra.mxu2 %v5299_v36  ;;  %v6875_v36 = vld [vmem:[%s10440_s4 + $0x18] sm:$0xff] }
  0xd1   : > { %2001 = vmatpush.bf16.msra.mxu3 %v5171_v35  ;;  %v1713_v38 = vadd.f32 %v1712_v24, %v1699_v34 }
  0xd2   : > { %2030 = vmatpush.bf16.msra.mxu0 %v5411_v60 }
  0xd3   : > { %1989 = vmatpush.bf16.msrb.mxu1 %v5011_v55 }
  0xd4   : > { %2016 = vmatpush.bf16.msra.mxu2 %v5283_v51  ;;  %v1714_v35 = vpop.f32.mrf.mxu3 }
  0xd5   : > { %2002 = vmatpush.bf16.msra.mxu3 %v5155_v49 }
  0xd6   : > { %2031 = vmatpush.bf16.msra.mxu0 %v5395_v12  ;;  %v1726_v31 = vpop.f32.mrf.mxu0 }
  0xd7   : > { %1990 = vmatpush.bf16.msrb.mxu1 %v4995_v9  ;;  %v1740_v32 = vpop.f32.mrf.mxu1  ;;  %v1727_v43 = vadd.f32 %v1726_v31, %v1713_v38  ;;  %v6892_v31 = vld [vmem:[%s10440_s4 + $0xa0] sm:$0xff] }
  0xd8   : > { %2017 = vmatpush.bf16.msra.mxu2 %v5267_v6 }
  0xd9   : > { %2003 = vmatpush.bf16.msra.mxu3 %v5139_v5  ;;  %v1741_v49 = vadd.f32 %v1740_v32, %v1727_v43 }
  0xda   : > { %1991 = vmatmul.bf16.vlgmr.msrb.gmra.mxu1 %v7665_v54  ;;  %2032 = vmatpush.bf16.msra.mxu0 %v5379_v22  ;;  %v6877_v54 = vld [vmem:[%s10440_s4 + $0x28] sm:$0xff] }
  0xdb   : > { %2046 = vmatpush.bf16.msra.mxu1 %v5507_v15 }
  0xdc   : > { %2018 = vmatpush.bf16.msra.mxu2 %v5251_v19 }
  0xdd   : > { %2004 = vmatpush.bf16.msra.mxu3 %v5123_v18  ;;  %2033 = vmatmul.bf16.vlgmr.msra.gmra.mxu0 %v7880_v42  ;;  %v6887_v42 = vld [vmem:[%s10440_s4 + $0x78] sm:$0xff] }
  0xde   : > { %v1728_v40 = vpop.f32.mrf.mxu0 }
  0xdf   : > { %2019 = vmatmul.bf16.vlgmr.msra.gmra.mxu2 %v7869_v37  ;;  %v1754_v37 = vpop.f32.mrf.mxu2  ;;  %2339 = vmatpush.bf16.msrb.mxu1 %v6887_v42  ;;  %v1742_v45 = vpop.f32.mrf.mxu1 }
  0xe0   : > { %2005 = vmatmul.bf16.vlgmr.msra.gmra.mxu3 %v7675_v62  ;;  %v1701_v62 = vadd.f32 %v1700_v28, %v1687_v30  ;;  %v1755_v55 = vadd.f32 %v1754_v37, %v1741_v49  ;;  %v1768_v58 = vpop.f32.mrf.mxu3  ;;  %v6891_v37 = vld [vmem:[%s10440_s4 + $0x98] sm:$0xff] }
  0xe1   : > { %2325 = vmatpush.bf16.msrb.mxu3 %v6879_v20  ;;  %v1769_v11 = vadd.f32 %v1768_v58, %v635_v7  ;;  %v6895_v20 = vld [vmem:[%s10440_s4 + $0xb8] sm:$0xff] }
  0xe2   : > { %v1715_v39 = vadd.f32 %v1714_v35, %v1701_v62  ;;  %v2053_v60 = vmax.f32 %v1755_v55, 0.0  ;;  %2353 = vmatpush.bf16.msrb.mxu2 %v6895_v20 }
  0xe3   : > { %2340 = vmatpush.bf16.msrb.mxu1 %v6886_v41 }
  0xe4   : > { %v1729_v44 = vadd.f32 %v1728_v40, %v1715_v39  ;;  %v6889_v39 = vld [vmem:[%s10440_s4 + $0x88] sm:$0xff]  ;;  %v6888_v40 = vld [vmem:[%s10440_s4 + $0x80] sm:$0xff] }
  0xe5   : > { %2326 = vmatpush.bf16.msrb.mxu3 %v6878_v25 }
  0xe6   : > { %v1743_v47 = vadd.f32 %v1742_v45, %v1729_v44  ;;  %2354 = vmatpush.bf16.msrb.mxu2 %v6894_v23  ;;  %v636_v44 = vperm.slane %v8649_v16, 2 }
  0xe7   : > { %v1756_v51 = vpop.f32.mrf.mxu2  ;;  %2341 = vmatpush.bf16.msrb.mxu1 %v6885_v48  ;;  %v6902_v48 = vld [vmem:[%s10440_s4 + $0xf0] sm:$0xff] }
  0xe8   : > { %v1757_v52 = vadd.f32 %v1756_v51, %v1743_v47  ;;  %v1770_v3 = vpop.f32.mrf.mxu3 }
  0xe9   : > { %2327 = vmatpush.bf16.msrb.mxu3 %v6877_v54  ;;  %v1771_v12 = vadd.f32 %v1770_v3, %v635_v7  ;;  %v6893_v54 = vld [vmem:[%s10440_s4 + $0xa8] sm:$0xff] }
  0xea   : > { %5511 = vmatmul.msk.bf16.vlgmr.msra.gmra.mxu1 %vm1657_vm0, %v7780_v50  ;;  %v6873_v50 = vld [vmem:[%s10440_s4 + $0x8] sm:$0xff]  ;;  %v2057_v57 = vmax.f32 %v1757_v52, 0.0  ;;  %2355 = vmatpush.bf16.msrb.mxu2 %v6893_v54 }
  0xeb   : > { %2342 = vmatpush.bf16.msrb.mxu1 %v6884_v53 }
  0xec   : > { %v2061_v63 = vpack.c.bf16 %v2057_v57, %v2053_v60 }
  0xed   : > { %2328 = vmatpush.bf16.msrb.mxu3 %v6876_v33 }
  0xee   : > { %2356 = vmatpush.bf16.msrb.mxu2 %v6892_v31 }
  0xef   : > { %2343 = vmatpush.bf16.msrb.mxu1 %v6883_v59  ;;  %v1782_v2 = vpop.f32.mrf.mxu2  ;;  %v6900_v59 = vld [vmem:[%s10440_s4 + $0xe0] sm:$0xff] }
  0xf0   : > { %v1783_v14 = vadd.f32 %v1782_v2, %v1769_v11 }
  0xf1   : > { %2329 = vmatpush.bf16.msrb.mxu3 %v6875_v36  ;;  %v6890_v36 = vld [vmem:[%s10440_s4 + $0x90] sm:$0xff] }
  0xf2   : > { %2357 = vmatpush.bf16.msrb.mxu2 %v6891_v37 }
  0xf3   : > { %2344 = vmatpush.bf16.msrb.mxu1 %v6882_v0 }
  0xf5   : > { %2330 = vmatpush.bf16.msrb.mxu3 %v6874_v46  ;;  %v6903_v46 = vld [vmem:[%s10440_s4 + $0xf8] sm:$0xff] }
  0xf6   : > { %v1796_v5 = vpop.f32.mrf.mxu0  ;;  %2358 = vmatpush.bf16.msrb.mxu2 %v6890_v36  ;;  %2367 = vmatpush.bf16.msrb.mxu0 %v6903_v46 }
  0xf7   : > { %2345 = vmatpush.bf16.msrb.mxu1 %v6881_v1  ;;  %v1784_v9 = vpop.f32.mrf.mxu2  ;;  %v1810_v10 = vpop.f32.mrf.mxu1  ;;  %v1797_v18 = vadd.f32 %v1796_v5, %v1783_v14 }
  0xf8   : > { %v1785_v17 = vadd.f32 %v1784_v9, %v1771_v12 }
  0xf9   : > { %2331 = vmatpush.bf16.msrb.mxu3 %v6873_v50  ;;  %v1811_v22 = vadd.f32 %v1810_v10, %v1797_v18  ;;  %v6898_v10 = vld [vmem:[%s10440_s4 + $0xd0] sm:$0xff] }
  0xfa   : > { %2359 = vmatpush.bf16.msrb.mxu2 %v6889_v39  ;;  %2368 = vmatpush.bf16.msrb.mxu0 %v6902_v48  ;;  %v5754_v48 = vld [vmem:[%s10442_s6 + $0xe0] sm:$0xf] }
  0xfb   : > { %2346 = vmatpush.bf16.msrb.mxu1 %v6880_v4  ;;  %v6899_v4 = vld [vmem:[%s10440_s4 + $0xd8] sm:$0xff] }
  0xfd   : > { %2332 = vmatpush.bf16.msrb.mxu3 %v6872_v56  ;;  %v6901_v56 = vld [vmem:[%s10440_s4 + $0xe8] sm:$0xff] }
  0xfe   : > { %v1798_v15 = vpop.f32.mrf.mxu0  ;;  %2360 = vmatpush.bf16.msrb.mxu2 %v6888_v40  ;;  %2369 = vmatpush.bf16.msrb.mxu0 %v6901_v56 }
  0xff   : > { %v1824_v6 = vpop.f32.mrf.mxu3  ;;  %v1799_v19 = vadd.f32 %v1798_v15, %v1785_v17  ;;  %v1812_v21 = vpop.f32.mrf.mxu1 }
 0x100   : > { %2333 = vmatmul.bf16.vlgmr.msrb.gmra.mxu3 %v2061_v63  ;;  %v1825_v24 = vadd.f32 %v1824_v6, %v1811_v22  ;;  %v637_v22 = vperm.slane %v8649_v16, 3 }
 0x101   : > { %v1813_v25 = vadd.f32 %v1812_v21, %v1799_v19  ;;  %v6896_v21 = vld [vmem:[%s10440_s4 + $0xc0] sm:$0xff] }
 0x102   : > { %v1838_v61 = vpop.f32.mrf.mxu2  ;;  %2370 = vmatpush.bf16.msrb.mxu0 %v6900_v59  ;;  %v5764_v59 = vld [vmem:[%s10442_s6 + $0xf8] sm:$0xf0] }
 0x103   : > { %v1839_v28 = vadd.f32 %v1838_v61, %v1825_v24  ;;  %v6897_v61 = vld [vmem:[%s10440_s4 + $0xc8] sm:$0xff] }
 0x106   : > { %2371 = vmatpush.bf16.msrb.mxu0 %v6899_v4 }
 0x107   : > { %v1826_v13 = vpop.f32.mrf.mxu3 }
 0x108   : > { %v1827_v26 = vadd.f32 %v1826_v13, %v1813_v25 }
 0x10a   : > { %v1840_v27 = vpop.f32.mrf.mxu2  ;;  %2372 = vmatpush.bf16.msrb.mxu0 %v6898_v10  ;;  %v5748_v10 = vld [vmem:[%s10442_s6 + $0xd8] sm:$0xf0] }
 0x10b   : > { %v1841_v29 = vadd.f32 %v1840_v27, %v1827_v26 }
 0x10e   : > { %2373 = vmatpush.bf16.msrb.mxu0 %v6897_v61 }
 0x10f   : > { %v1852_v8 = vpop.f32.mrf.mxu3 }
 0x110   : > { %v1853_v30 = vadd.f32 %v1852_v8, %v1839_v28 }
 0x112   : > { %v2054_v34 = vmax.f32 %v1853_v30, 0.0  ;;  %2374 = vmatpush.bf16.msrb.mxu0 %v6896_v21 }
 0x116   : > { %v1894_v42 = vpop.f32.mrf.mxu0 }
 0x117   : > { %v1854_v32 = vpop.f32.mrf.mxu3  ;;  %v1866_v38 = vpop.f32.mrf.mxu1 }
 0x118   : > { %v1855_v33 = vadd.f32 %v1854_v32, %v1841_v29  ;;  %v1867_v47 = vadd.f32 %v1866_v38, %v636_v44 }
 0x11a   : > { %v2058_v62 = vmax.f32 %v1855_v33, 0.0 }
 0x11c   : > { %v2062_v35 = vpack.c.bf16 %v2058_v62, %v2054_v34 }
 0x11e   : > { %2347 = vmatmul.bf16.vlgmr.msrb.gmra.mxu1 %v2062_v35  ;;  %v1896_v43 = vpop.f32.mrf.mxu0 }
 0x11f   : > { %v1868_v45 = vpop.f32.mrf.mxu1 }
 0x120   : > { %v1869_v53 = vadd.f32 %v1868_v45, %v636_v44 }
 0x122   : > { %v1908_v51 = vpop.f32.mrf.mxu2 }
 0x123   : > { %v1880_v41 = vpop.f32.mrf.mxu3 }
 0x124   : > { %v1881_v52 = vadd.f32 %v1880_v41, %v1867_v47 }
 0x126   : > { %v1950_v49 = vpop.f32.mrf.mxu0  ;;  %v1895_v57 = vadd.f32 %v1894_v42, %v1881_v52  ;;  %v5756_v52 = vld [vmem:[%s10442_s6 + $0xf0] sm:$0xf0] }
 0x128   : > { %v1909_v63 = vadd.f32 %v1908_v51, %v1895_v57  ;;  %v6932_v51 = vld [vmem:[%s10442_s6 + $0xe4] sm:$0xf] }
 0x129   : > { %v5759_v56 = vor.u32 %v6932_v51, %v5756_v52  ;;  %v6918_v51 = vld [vmem:[%s10442_s6 + $0x6c] sm:$0xf0] }
 0x12a   : > { %v1910_v2 = vpop.f32.mrf.mxu2 }
 0x12b   : > { %v1882_v50 = vpop.f32.mrf.mxu3  ;;  %2619 = vmatpush.bf16.msra.mxu1 %v5759_v56  ;;  %v6919_v56 = vld [vmem:[%s10442_s6 + $0x74] sm:$0xf0] }
 0x12c   : > { %v1883_v58 = vadd.f32 %v1882_v50, %v1869_v53  ;;  %v5762_v53 = vld [vmem:[%s10442_s6 + $0xe8] sm:$0xf] }
 0x12e   : > { %v1897_v0 = vadd.f32 %v1896_v43, %v1883_v58  ;;  %v1952_v1 = vpop.f32.mrf.mxu0  ;;  %v6933_v58 = vld [vmem:[%s10442_s6 + $0xec] sm:$0xf] }
 0x130   : > { %v1911_v6 = vadd.f32 %v1910_v2, %v1897_v0  ;;  %v6930_v0 = vld [vmem:[%s10442_s6 + $0xcc] sm:$0xf0]  ;;  %v5740_v2 = vld [vmem:[%s10442_s6 + $0xd0] sm:$0xf0] }
 0x137   : > { %v1922_v55 = vpop.f32.mrf.mxu1 }
 0x138   : > { %v1923_v3 = vadd.f32 %v1922_v55, %v1909_v63  ;;  %v6935_v55 = vld [vmem:[%s10442_s6 + $0xf4] sm:$0xf0]  ;;  %v5767_v63 = vor.u32 %v6933_v58, %v5764_v59  ;;  %v6917_v59 = vld [vmem:[%s10442_s6 + $0x6c] sm:$0xf] }
 0x139   : > { %v5763_v57 = vor.u32 %v6935_v55, %v5762_v53  ;;  %v5692_v53 = vld [vmem:[%s10442_s6 + $0x70] sm:$0xf0]  ;;  %v5698_v55 = vld [vmem:[%s10442_s6 + $0x68] sm:$0xf] }
 0x13a   : > { %v1978_v15 = vpop.f32.mrf.mxu0  ;;  %2647 = vmatpush.bf16.msra.mxu0 %v5767_v63  ;;  %v5699_v58 = vor.u32 %v6919_v56, %v5698_v55 }
 0x13b   : > { %2633 = vmatpush.bf16.msra.mxu2 %v5763_v57 }
 0x13f   : > { %v1924_v5 = vpop.f32.mrf.mxu1 }
 0x140   : > { %v1925_v9 = vadd.f32 %v1924_v5, %v1911_v6  ;;  %v5746_v5 = vld [vmem:[%s10442_s6 + $0xc8] sm:$0xf]  ;;  %v6931_v6 = vld [vmem:[%s10442_s6 + $0xd4] sm:$0xf0] }
 0x142   : > { %v1964_v17 = vpop.f32.mrf.mxu2  ;;  %v1980_v24 = vpop.f32.mrf.mxu0 }
 0x143   : > { %v1936_v60 = vpop.f32.mrf.mxu3  ;;  %v1965_v8 = vadd.f32 %v1964_v17, %v637_v22 }
 0x144   : > { %v1937_v7 = vadd.f32 %v1936_v60, %v1923_v3  ;;  %v5738_v60 = vld [vmem:[%s10442_s6 + $0xc0] sm:$0xf] }
 0x145   : > { %v1979_v26 = vadd.f32 %v1978_v15, %v1965_v8  ;;  %v5739_v3 = vor.u32 %v6930_v0, %v5738_v60  ;;  %v5700_v60 = vld [vmem:[%s10442_s6 + $0x78] sm:$0xf0]  ;;  %v5674_v0 = vld [vmem:[%s10442_s6 + $0x40] sm:$0xf] }
 0x146   : > { %v1951_v12 = vadd.f32 %v1950_v49, %v1937_v7  ;;  %v6934_v49 = vld [vmem:[%s10442_s6 + $0xec] sm:$0xf0]  ;;  %v6929_v7 = vld [vmem:[%s10442_s6 + $0xcc] sm:$0xf]  ;;  %v5703_v63 = vor.u32 %v6917_v59, %v5700_v60  ;;  %v6582_v59 = vld [vmem:[%s10444_s8 + $0x658] sm:$0xf] }
 0x147   : > { %v5755_v50 = vor.u32 %v6934_v49, %v5754_v48  ;;  %v5690_v49 = vld [vmem:[%s10442_s6 + $0x60] sm:$0xf] }
 0x148   : > { %v2055_v18 = vmax.f32 %v1951_v12, 0.0  ;;  %v5691_v52 = vor.u32 %v6918_v51, %v5690_v49  ;;  %v6988_v49 = vld [vmem:[%s10444_s8 + $0x1a0] sm:$0xf0]  ;;  %v6414_v51 = vld [vmem:[%s10444_s8 + $0x508] sm:$0xf] }
 0x149   : > { %2605 = vmatpush.bf16.msra.mxu3 %v5755_v50  ;;  %v6916_v50 = vld [vmem:[%s10442_s6 + $0x64] sm:$0xf] }
 0x14a   : > { %v1966_v25 = vpop.f32.mrf.mxu2  ;;  %v5695_v57 = vor.u32 %v6916_v50, %v5692_v53  ;;  %v7100_v50 = vld [vmem:[%s10444_s8 + $0x520] sm:$0xf0] }
 0x14b   : > { %v1938_v11 = vpop.f32.mrf.mxu3  ;;  %v1967_v29 = vadd.f32 %v1966_v25, %v637_v22  ;;  %v6415_v56 = vor.u32 %v7100_v50, %v6414_v51  ;;  %v6274_v51 = vld [vmem:[%s10444_s8 + $0x3f0] sm:$0xf]  ;;  %v7065_v50 = vld [vmem:[%s10444_s8 + $0x408] sm:$0xf0] }
 0x14c   : > { %v1939_v13 = vadd.f32 %v1938_v11, %v1925_v9  ;;  %v5747_v9 = vor.u32 %v6931_v6, %v5746_v5  ;;  %v5751_v11 = vor.u32 %v6929_v7, %v5748_v10  ;;  %v5682_v5 = vld [vmem:[%s10442_s6 + $0x48] sm:$0xf]  ;;  %v6915_v6 = vld [vmem:[%s10442_s6 + $0x54] sm:$0xf0]  ;;  %v6913_v10 = vld [vmem:[%s10442_s6 + $0x4c] sm:$0xf] }
 0x14d   : > { %v1981_v33 = vadd.f32 %v1980_v24, %v1967_v29  ;;  %2606 = vmatpush.bf16.msra.mxu3 %v5739_v3  ;;  %v6924_v29 = vld [vmem:[%s10442_s6 + $0xa4] sm:$0xf] }
 0x14e   : > { %v1953_v14 = vadd.f32 %v1952_v1, %v1939_v13  ;;  %v6928_v1 = vld [vmem:[%s10442_s6 + $0xc4] sm:$0xf]  ;;  %2634 = vmatpush.bf16.msra.mxu2 %v5747_v9  ;;  %2648 = vmatpush.bf16.msra.mxu0 %v5751_v11  ;;  %v7205_v13 = vld [vmem:[%s10441_s5] ss:$0 sm:$0xff]  ;;  %v5683_v9 = vor.u32 %v6915_v6, %v5682_v5  ;;  %v5684_v11 = vld [vmem:[%s10442_s6 + $0x58] sm:$0xf0] }
 0x14f   : > { %v5743_v4 = vor.u32 %v6928_v1, %v5740_v2  ;;  %v6914_v1 = vld [vmem:[%s10442_s6 + $0x4c] sm:$0xf0]  ;;  %v6912_v2 = vld [vmem:[%s10442_s6 + $0x44] sm:$0xf]  ;;  %v7093_v6 = vld [vmem:[%s10444_s8 + $0x4e8] sm:$0xf0] }
 0x150   : > { %v2059_v19 = vmax.f32 %v1953_v14, 0.0  ;;  %v5675_v3 = vor.u32 %v6914_v1, %v5674_v0  ;;  %v5938_v0 = vld [vmem:[%s10444_s8 + $0x150] sm:$0xf] }
 0x151   : > { %2620 = vmatpush.bf16.msra.mxu1 %v5743_v4  ;;  %v5676_v4 = vld [vmem:[%s10442_s6 + $0x50] sm:$0xf0] }
 0x152   : > { %v2063_v20 = vpack.c.bf16 %v2059_v19, %v2055_v18  ;;  %v5679_v7 = vor.u32 %v6912_v2, %v5676_v4  ;;  %v6981_v2 = vld [vmem:[%s10444_s8 + $0x168] sm:$0xf0] }
 0x153   : > { %v5939_v5 = vor.u32 %v6981_v2, %v5938_v0  ;;  %v6275_v0 = vor.u32 %v7065_v50, %v6274_v51 }
 0x154   : > { %2361 = vmatmul.bf16.vlgmr.msrb.gmra.mxu2 %v2063_v20 }
 0x157   : > { %v1992_v23 = vpop.f32.mrf.mxu1 }
 0x158   : > { %v1993_v28 = vadd.f32 %v1992_v23, %v1979_v26 }
 0x15a   : > { %v2034_v31 = vpop.f32.mrf.mxu0 }
 0x15f   : > { %v1994_v27 = vpop.f32.mrf.mxu1 }
 0x160   : > { %v1995_v62 = vadd.f32 %v1994_v27, %v1981_v33  ;;  %v6927_v33 = vld [vmem:[%s10442_s6 + $0xb4] sm:$0xf0] }
 0x162   : > { %v2020_v30 = vpop.f32.mrf.mxu2  ;;  %v2036_v39 = vpop.f32.mrf.mxu0 }
 0x163   : > { %v2006_v54 = vpop.f32.mrf.mxu3 }
 0x164   : > { %v2007_v32 = vadd.f32 %v2006_v54, %v1993_v28  ;;  %v5722_v28 = vld [vmem:[%s10442_s6 + $0xa0] sm:$0xf]  ;;  %v6926_v54 = vld [vmem:[%s10442_s6 + $0xac] sm:$0xf0] }
 0x166   : > { %v2021_v34 = vadd.f32 %v2020_v30, %v2007_v32  ;;  %v5723_v30 = vor.u32 %v6926_v54, %v5722_v28  ;;  %v5730_v32 = vld [vmem:[%s10442_s6 + $0xa8] sm:$0xf]  ;;  %v6906_v28 = vld [vmem:[%s10442_s6 + $0xc] sm:$0xf0]  ;;  %v6904_v54 = vld [vmem:[%s10442_s6 + $0x4] sm:$0xf] }
 0x167   : > { %v2048_v35 = vpop.f32.mrf.mxu1 }
 0x168   : > { %v2035_v42 = vadd.f32 %v2034_v31, %v2021_v34  ;;  %v5724_v31 = vld [vmem:[%s10442_s6 + $0xb0] sm:$0xf0]  ;;  %2607 = vmatpush.bf16.msra.mxu3 %v5723_v30 }
 0x169   : > { %v5727_v34 = vor.u32 %v6924_v29, %v5724_v31  ;;  %v5644_v30 = vld [vmem:[%s10442_s6 + $0x10] sm:$0xf0]  ;;  %v5650_v31 = vld [vmem:[%s10442_s6 + $0x8] sm:$0xf] }
 0x16a   : > { %v2022_v36 = vpop.f32.mrf.mxu2  ;;  %v2049_v41 = vadd.f32 %v2048_v35, %v2035_v42  ;;  %v6925_v35 = vld [vmem:[%s10442_s6 + $0xac] sm:$0xf]  ;;  %v5706_v42 = vld [vmem:[%s10442_s6 + $0x80] sm:$0xf] }
 0x16b   : > { %v2008_v37 = vpop.f32.mrf.mxu3  ;;  %2621 = vmatpush.bf16.msra.mxu1 %v5727_v34  ;;  %v5647_v34 = vor.u32 %v6904_v54, %v5644_v30  ;;  %v6330_v54 = vld [vmem:[%s10444_s8 + $0x460] sm:$0xf] }
 0x16c   : > { %v2009_v16 = vadd.f32 %v2008_v37, %v1995_v62  ;;  %v2056_v45 = vmax.f32 %v2049_v41, 0.0  ;;  %v5731_v62 = vor.u32 %v6927_v33, %v5730_v32  ;;  %v5732_v37 = vld [vmem:[%s10442_s6 + $0xb8] sm:$0xf0]  ;;  %v5714_v41 = vld [vmem:[%s10442_s6 + $0x88] sm:$0xf] }
 0x16d   : > { %v6907_v32 = vld [vmem:[%s10442_s6 + $0x14] sm:$0xf0] }
 0x16e   : > { %v2023_v38 = vadd.f32 %v2022_v36, %v2009_v16  ;;  %v5735_v16 = vor.u32 %v6925_v35, %v5732_v37  ;;  %2635 = vmatpush.bf16.msra.mxu2 %v5731_v62  ;;  %v6922_v36 = vld [vmem:[%s10442_s6 + $0x8c] sm:$0xf0]  ;;  %v5651_v62 = vor.u32 %v6907_v32, %v5650_v31  ;;  %v6905_v35 = vld [vmem:[%s10442_s6 + $0xc] sm:$0xf]  ;;  %v5652_v37 = vld [vmem:[%s10442_s6 + $0x18] sm:$0xf0] }
 0x16f   : > { %v2050_v43 = vpop.f32.mrf.mxu1  ;;  %v6526_v31 = vld [vmem:[%s10444_s8 + $0x5e8] sm:$0xf]  ;;  %v7128_v32 = vld [vmem:[%s10444_s8 + $0x600] sm:$0xf0] }
 0x170   : > { %v2037_v40 = vadd.f32 %v2036_v39, %v2023_v38  ;;  %v6920_v38 = vld [vmem:[%s10442_s6 + $0x84] sm:$0xf]  ;;  %2649 = vmatpush.bf16.msra.mxu0 %v5735_v16  ;;  %v5707_v39 = vor.u32 %v6922_v36, %v5706_v42  ;;  %v5655_v16 = vor.u32 %v6905_v35, %v5652_v37  ;;  %v6190_v42 = vld [vmem:[%s10444_s8 + $0x348] sm:$0xf] }
 0x171   : > { %v7044_v36 = vld [vmem:[%s10444_s8 + $0x360] sm:$0xf0] }
 0x172   : > { %v2051_v44 = vadd.f32 %v2050_v43, %v2037_v40  ;;  %v5708_v40 = vld [vmem:[%s10442_s6 + $0x90] sm:$0xf0]  ;;  %v6923_v43 = vld [vmem:[%s10442_s6 + $0x94] sm:$0xf0]  ;;  %2608 = vmatpush.bf16.msra.mxu3 %v5707_v39  ;;  %v6191_v39 = vor.u32 %v7044_v36, %v6190_v42  ;;  %v6960_v42 = vld [vmem:[%s10444_s8 + $0xc0] sm:$0xf0] }
 0x173   : > { %v6302_v36 = vld [vmem:[%s10444_s8 + $0x428] sm:$0xf] }
 0x174   : > { %v2060_v46 = vmax.f32 %v2051_v44, 0.0  ;;  %v5711_v44 = vor.u32 %v6920_v38, %v5708_v40  ;;  %v6638_v38 = vld [vmem:[%s10444_s8 + $0x6c8] sm:$0xf]  ;;  %v7156_v40 = vld [vmem:[%s10444_s8 + $0x6e0] sm:$0xf0] }
 0x176   : > { %v2064_v47 = vpack.c.bf16 %v2060_v46, %v2056_v45  ;;  %v5715_v45 = vor.u32 %v6923_v43, %v5714_v41  ;;  %v6921_v46 = vld [vmem:[%s10442_s6 + $0x8c] sm:$0xf]  ;;  %2622 = vmatpush.bf16.msra.mxu1 %v5711_v44  ;;  %2609 = vmatpush.bf16.msra.mxu3 %v5691_v52  ;;  %v6162_v41 = vld [vmem:[%s10444_s8 + $0x310] sm:$0xf]  ;;  %v6639_v44 = vor.u32 %v7156_v40, %v6638_v38 }
 0x177   : > { %v7037_v43 = vld [vmem:[%s10444_s8 + $0x328] sm:$0xf0] }
 0x178   : > { %2375 = vmatmul.bf16.vlgmr.msrb.gmra.mxu0 %v2064_v47  ;;  %v5716_v47 = vld [vmem:[%s10442_s6 + $0x98] sm:$0xf0]  ;;  %2636 = vmatpush.bf16.msra.mxu2 %v5715_v45  ;;  %v6610_v45 = vld [vmem:[%s10444_s8 + $0x690] sm:$0xf]  ;;  %v7009_v40 = vld [vmem:[%s10444_s8 + $0x248] sm:$0xf0] }
 0x179   : > { %v5719_v48 = vor.u32 %v6921_v46, %v5716_v47  ;;  %v7149_v46 = vld [vmem:[%s10444_s8 + $0x6a8] sm:$0xf0]  ;;  %v5966_v47 = vld [vmem:[%s10444_s8 + $0x188] sm:$0xf] }
 0x17a   : > { %2623 = vmatpush.bf16.msra.mxu1 %v5695_v57  ;;  %2610 = vmatpush.bf16.msra.mxu3 %v5675_v3  ;;  %v6611_v53 = vor.u32 %v7149_v46, %v6610_v45  ;;  %v5967_v55 = vor.u32 %v6988_v49, %v5966_v47  ;;  %v6134_v57 = vld [vmem:[%s10444_s8 + $0x2d8] sm:$0xf]  ;;  %v6386_v3 = vld [vmem:[%s10444_s8 + $0x4d0] sm:$0xf]  ;;  %v6953_v49 = vld [vmem:[%s10444_s8 + $0x88] sm:$0xf0] }
 0x17b   : > { %2650 = vmatpush.bf16.msra.mxu0 %v5719_v48  ;;  %v6163_v48 = vor.u32 %v7037_v43, %v6162_v41  ;;  %v7072_v41 = vld [vmem:[%s10444_s8 + $0x440] sm:$0xf0]  ;;  %v6498_v43 = vld [vmem:[%s10444_s8 + $0x5b0] sm:$0xf] }
 0x17c   : > { %2637 = vmatpush.bf16.msra.mxu2 %v5699_v58  ;;  %v7030_v58 = vld [vmem:[%s10444_s8 + $0x2f0] sm:$0xf0]  ;;  %v6303_v46 = vor.u32 %v7072_v41, %v6302_v36  ;;  %v5826_v47 = vld [vmem:[%s10444_s8 + $0x70] sm:$0xf] }
 0x17d   : > { %v6135_v4 = vor.u32 %v7030_v58, %v6134_v57  ;;  %v7002_v57 = vld [vmem:[%s10444_s8 + $0x210] sm:$0xf0]  ;;  %v6470_v58 = vld [vmem:[%s10444_s8 + $0x578] sm:$0xf] }
 0x17e   : > { %2624 = vmatpush.bf16.msra.mxu1 %v5679_v7  ;;  %v6106_v7 = vld [vmem:[%s10444_s8 + $0x2a0] sm:$0xf]  ;;  %v7090_v41 = vld [vmem:[%s10444_s8 + $0x4d4] sm:$0xf] }
 0x17f   : > { %2651 = vmatpush.bf16.msra.mxu0 %v5703_v63  ;;  %v7142_v63 = vld [vmem:[%s10444_s8 + $0x670] sm:$0xf0] }
 0x180   : > { %2638 = vmatpush.bf16.msra.mxu2 %v5683_v9  ;;  %v6583_v9 = vor.u32 %v7142_v63, %v6582_v59  ;;  %v7114_v59 = vld [vmem:[%s10444_s8 + $0x590] sm:$0xf0]  ;;  %v5827_v63 = vor.u32 %v6953_v49, %v5826_v47  ;;  %v6136_v47 = vld [vmem:[%s10444_s8 + $0x2f4] sm:$0xf0] }
 0x181   : > { %v6584_v49 = vld [vmem:[%s10444_s8 + $0x674] sm:$0xf0] }
 0x183   : > { %v2334_v12 = vpop.f32.mrf.mxu3 }
 0x184   : > { %v2335_v61 = vadd.f32 %v7205_v13, %v2334_v12  ;;  %v5687_v12 = vor.u32 %v6913_v10, %v5684_v11  ;;  %v6387_v10 = vor.u32 %v7093_v6, %v6386_v3  ;;  %v7023_v11 = vld [vmem:[%s10444_s8 + $0x2b8] sm:$0xf0]  ;;  %v7058_v6 = vld [vmem:[%s10444_s8 + $0x3d0] sm:$0xf0] }
 0x186   : > { %2652 = vmatpush.bf16.msra.mxu0 %v5687_v12  ;;  %v6554_v12 = vld [vmem:[%s10444_s8 + $0x620] sm:$0xf] }
 0x18b   : > { %v2336_v19 = vpop.f32.mrf.mxu3 }
 0x18c   : > { %v2337_v23 = vadd.f32 %v7205_v13, %v2336_v19  ;;  %v5658_v13 = vld [vmem:[%s10442_s6 + $0x20] sm:$0xf]  ;;  %v5666_v19 = vld [vmem:[%s10442_s6 + $0x28] sm:$0xf] }
 0x19b   : > { %v2348_v14 = vpop.f32.mrf.mxu1 }
 0x19c   : > { %v2349_v17 = vadd.f32 %v2348_v14, %v2335_v61  ;;  %v6910_v14 = vld [vmem:[%s10442_s6 + $0x2c] sm:$0xf0]  ;;  %v2385_v61 = vlaneseq }
 0x19e   : > { %v8966_v33 = vand.u32 127, %v2385_v61  ;;  %v6358_v61 = vld [vmem:[%s10444_s8 + $0x498] sm:$0xf] }
 0x1a0   : > { %vm2387_vm1 = vcmp.lt.s32.totalorder %v8966_v33, 32  ;;  %v6050_v33 = vld [vmem:[%s10444_s8 + $0x230] sm:$0xf] }
 0x1a3   : > { %v2350_v22 = vpop.f32.mrf.mxu1 }
 0x1a4   : > { %v2351_v24 = vadd.f32 %v2350_v22, %v2337_v23 }
 0x1d7   : > { %v2362_v15 = vpop.f32.mrf.mxu2 }
 0x1d8   : > { %v2363_v18 = vadd.f32 %v2362_v15, %v2349_v17  ;;  %v6908_v15 = vld [vmem:[%s10442_s6 + $0x24] sm:$0xf]  ;;  %v5659_v17 = vor.u32 %v6910_v14, %v5658_v13  ;;  %v7135_v13 = vld [vmem:[%s10444_s8 + $0x638] sm:$0xf0]  ;;  %v5910_v14 = vld [vmem:[%s10444_s8 + $0x118] sm:$0xf] }
 0x1da   : > { %2611 = vmatpush.bf16.msra.mxu3 %v5659_v17 }
 0x1df   : > { %v2364_v8 = vpop.f32.mrf.mxu2 }
 0x1e0   : > { %v2365_v25 = vadd.f32 %v2364_v8, %v2351_v24  ;;  %v6909_v8 = vld [vmem:[%s10442_s6 + $0x2c] sm:$0xf]  ;;  %v5668_v24 = vld [vmem:[%s10442_s6 + $0x38] sm:$0xf0] }
 0x1f5   : > { %v2376_v20 = vpop.f32.mrf.mxu0 }
 0x1f6   : > { %v8820_v21 = vadd.f32 %v2376_v20, %v2363_v18  ;;  %v5660_v18 = vld [vmem:[%s10442_s6 + $0x30] sm:$0xf0]  ;;  %v6911_v20 = vld [vmem:[%s10442_s6 + $0x34] sm:$0xf0] }
 0x1f7   : > { %v5663_v22 = vor.u32 %v6908_v15, %v5660_v18  ;;  %v5667_v23 = vor.u32 %v6911_v20, %v5666_v19  ;;  %v6974_v15 = vld [vmem:[%s10444_s8 + $0x130] sm:$0xf0]  ;;  %v6107_v20 = vor.u32 %v7023_v11, %v6106_v7 }
 0x1f8   : > { %4559 = vst [vmem:[%s425_s24] sm:$0xff] %v8820_v21  ;;  %2381 = vrot.lane.b32.xlu0 %v8820_v21, %s7302_s23  ;;  %v5911_v18 = vor.u32 %v6974_v15, %v5910_v14  ;;  %v7086_v19 = vld [vmem:[%s10444_s8 + $0x4b0] sm:$0xf0]  ;;  %v7107_v14 = vld [vmem:[%s10444_s8 + $0x558] sm:$0xf0] }
 0x1f9   : > { %2625 = vmatpush.bf16.msra.mxu1 %v5663_v22  ;;  %2639 = vmatpush.bf16.msra.mxu2 %v5667_v23  ;;  %v6359_v22 = vor.u32 %v7086_v19, %v6358_v61  ;;  %v6078_v23 = vld [vmem:[%s10444_s8 + $0x268] sm:$0xf]  ;;  %v7041_v15 = vld [vmem:[%s10444_s8 + $0x34c] sm:$0xf] }
 0x1fa   : > { %v6192_v61 = vld [vmem:[%s10444_s8 + $0x364] sm:$0xf0] }
 0x1fd   : > { %v2378_v26 = vpop.f32.mrf.mxu0  ;;  %2626 = vmatpush.bf16.msra.mxu1 %v5647_v34  ;;  %2640 = vmatpush.bf16.msra.mxu2 %v5651_v62 }
 0x1fe   : > { %v8824_v27 = vadd.f32 %v2378_v26, %v2365_v25  ;;  %v5671_v25 = vor.u32 %v6909_v8, %v5668_v24  ;;  %v5642_v26 = vld [vmem:[%s10442_s6] sm:$0xf]  ;;  %v7016_v8 = vld [vmem:[%s10444_s8 + $0x280] sm:$0xf0] }
 0x1ff   : > { %v5643_v29 = vor.u32 %v6906_v28, %v5642_v26  ;;  %v5882_v24 = vld [vmem:[%s10444_s8 + $0xe0] sm:$0xf]  ;;  %v6555_v26 = vor.u32 %v7135_v13, %v6554_v12  ;;  %v6967_v28 = vld [vmem:[%s10444_s8 + $0xf8] sm:$0xf0]  ;;  %v6079_v37 = vor.u32 %v7016_v8, %v6078_v23  ;;  %v6640_v23 = vld [vmem:[%s10444_s8 + $0x6e4] sm:$0xf0] }
 0x200   : > { %4560 = vst [vmem:[%s425_s24 + $0x8] sm:$0xff] %v8824_v27  ;;  %2383 = vrot.lane.b32.xlu0 %v8824_v27, %s7302_s23  ;;  %2653 = vmatpush.bf16.msra.mxu0 %v5671_v25  ;;  %v5883_v62 = vor.u32 %v6967_v28, %v5882_v24  ;;  %v6995_v12 = vld [vmem:[%s10444_s8 + $0x1d8] sm:$0xf0]  ;;  %v6442_v13 = vld [vmem:[%s10444_s8 + $0x540] sm:$0xf] }
 0x201   : > { %2612 = vmatpush.bf16.msra.mxu3 %v5643_v29  ;;  %4111 = vmatpush.bf16.msrb.mxu1 %v6191_v39  ;;  %v7079_v29 = vld [vmem:[%s10444_s8 + $0x478] sm:$0xf0]  ;;  %v6527_v39 = vor.u32 %v7128_v32, %v6526_v31  ;;  %v5770_v8 = vld [vmem:[%s10444_s8] sm:$0xf]  ;;  %v6416_v31 = vld [vmem:[%s10444_s8 + $0x524] sm:$0xf0]  ;;  %v6195_v32 = vor.u32 %v7041_v15, %v6192_v61 }
 0x202   : > { %4125 = vmatpush.bf16.msrb.mxu2 %v6415_v56  ;;  %v6331_v35 = vor.u32 %v7079_v29, %v6330_v54  ;;  %v6022_v56 = vld [vmem:[%s10444_s8 + $0x1f8] sm:$0xf]  ;;  %v6939_v24 = vld [vmem:[%s10444_s8 + $0x18] sm:$0xf0]  ;;  %v6443_v54 = vor.u32 %v7107_v14, %v6442_v13  ;;  %v5968_v29 = vld [vmem:[%s10444_s8 + $0x1a4] sm:$0xf0] }
 0x203   : > { %v6023_v3 = vor.u32 %v7002_v57, %v6022_v56  ;;  %v6108_v56 = vld [vmem:[%s10444_s8 + $0x2bc] sm:$0xf0]  ;;  %v7132_v57 = vld [vmem:[%s10444_s8 + $0x624] sm:$0xf] }
 0x204   : > { %2654 = vmatpush.bf16.msra.mxu0 %v5655_v16  ;;  %v5854_v16 = vld [vmem:[%s10444_s8 + $0xa8] sm:$0xf]  ;;  %v5884_v13 = vld [vmem:[%s10444_s8 + $0xfc] sm:$0xf0]  ;;  %v7076_v14 = vld [vmem:[%s10444_s8 + $0x464] sm:$0xf] }
 0x205   : > { %4097 = vmatpush.bf16.msrb.mxu3 %v5967_v55  ;;  %4112 = vmatpush.bf16.msrb.mxu1 %v6163_v48  ;;  %v5855_v45 = vor.u32 %v6960_v42, %v5854_v16  ;;  %v6051_v48 = vor.u32 %v7009_v40, %v6050_v33  ;;  %v7146_v33 = vld [vmem:[%s10444_s8 + $0x694] sm:$0xf]  ;;  %v5771_v16 = vor.u32 %v6939_v24, %v5770_v8  ;;  %v5940_v40 = vld [vmem:[%s10444_s8 + $0x16c] sm:$0xf0]  ;;  %v6332_v61 = vld [vmem:[%s10444_s8 + $0x47c] sm:$0xf0] }
 0x206   : > { %4126 = vmatpush.bf16.msrb.mxu2 %v6387_v10  ;;  %v5994_v10 = vld [vmem:[%s10444_s8 + $0x1c0] sm:$0xf]  ;;  %v6957_v24 = vld [vmem:[%s10444_s8 + $0xac] sm:$0xf] }
 0x207   : > { %v5995_v28 = vor.u32 %v6995_v12, %v5994_v10  ;;  %v6528_v10 = vld [vmem:[%s10444_s8 + $0x604] sm:$0xf0]  ;;  %v6964_v12 = vld [vmem:[%s10444_s8 + $0xe4] sm:$0xf] }
 0x208   : > { %4139 = vmatpush.bf16.msrb.mxu0 %v6639_v44  ;;  %v7121_v44 = vld [vmem:[%s10444_s8 + $0x5c8] sm:$0xf0]  ;;  %v5887_v15 = vor.u32 %v6964_v12, %v5884_v13  ;;  %v6646_v13 = vld [vmem:[%s10444_s8 + $0x6d0] sm:$0xf] }
 0x209   : > { %4098 = vmatpush.bf16.msrb.mxu3 %v5939_v5  ;;  %4113 = vmatpush.bf16.msrb.mxu1 %v6135_v4  ;;  %v6499_v55 = vor.u32 %v7121_v44, %v6498_v43  ;;  %v6946_v4 = vld [vmem:[%s10444_s8 + $0x50] sm:$0xf0]  ;;  %v6246_v5 = vld [vmem:[%s10444_s8 + $0x3b8] sm:$0xf]  ;;  %v6388_v43 = vld [vmem:[%s10444_s8 + $0x4ec] sm:$0xf0] }
 0x20a   : > { %4127 = vmatpush.bf16.msrb.mxu2 %v6359_v22  ;;  %v6247_v19 = vor.u32 %v7058_v6, %v6246_v5  ;;  %v6391_v50 = vor.u32 %v7090_v41, %v6388_v43  ;;  %v7013_v5 = vld [vmem:[%s10444_s8 + $0x26c] sm:$0xf]  ;;  %v6080_v6 = vld [vmem:[%s10444_s8 + $0x284] sm:$0xf0]  ;;  %v6444_v41 = vld [vmem:[%s10444_s8 + $0x55c] sm:$0xf0] }
 0x20c   : > { %4140 = vmatpush.bf16.msrb.mxu0 %v6611_v53  ;;  %v2396_v53 = vld [vmem:[%s418_s13] sm:$0xff] }
 0x20d   : > { %4099 = vmatpush.bf16.msrb.mxu3 %v5911_v18  ;;  %4114 = vmatpush.bf16.msrb.mxu1 %v6107_v20 }
 0x20e   : > { %4128 = vmatpush.bf16.msrb.mxu2 %v6331_v35  ;;  %v6164_v35 = vld [vmem:[%s10444_s8 + $0x32c] sm:$0xf0] }
 0x210   : > { %4141 = vmatpush.bf16.msrb.mxu0 %v6583_v9  ;;  %v6471_v9 = vor.u32 %v7114_v59, %v6470_v58  ;;  %v6556_v58 = vld [vmem:[%s10444_s8 + $0x63c] sm:$0xf0] }
 0x211   : > { %4100 = vmatpush.bf16.msrb.mxu3 %v5883_v62  ;;  %4115 = vmatpush.bf16.msrb.mxu1 %v6079_v37  ;;  %v7034_v62 = vld [vmem:[%s10444_s8 + $0x314] sm:$0xf]  ;;  %v6612_v37 = vld [vmem:[%s10444_s8 + $0x6ac] sm:$0xf0] }
 0x212   : > { %4129 = vmatpush.bf16.msrb.mxu2 %v6303_v46  ;;  %v6167_v44 = vor.u32 %v7034_v62, %v6164_v35  ;;  %v7027_v46 = vld [vmem:[%s10444_s8 + $0x2dc] sm:$0xf]  ;;  %v6950_v62 = vld [vmem:[%s10444_s8 + $0x74] sm:$0xf]  ;;  %v5828_v35 = vld [vmem:[%s10444_s8 + $0x8c] sm:$0xf0] }
 0x214   : > { %4142 = vmatpush.bf16.msrb.mxu0 %v6555_v26 }
 0x215   : > { %4101 = vmatpush.bf16.msrb.mxu3 %v5855_v45  ;;  %4116 = vmatpush.bf16.msrb.mxu1 %v6051_v48  ;;  %v6615_v45 = vor.u32 %v7146_v33, %v6612_v37  ;;  %v7139_v48 = vld [vmem:[%s10444_s8 + $0x65c] sm:$0xf]  ;;  %v7062_v33 = vld [vmem:[%s10444_s8 + $0x3f4] sm:$0xf]  ;;  %v5831_v37 = vor.u32 %v6950_v62, %v5828_v35  ;;  %v6422_v62 = vld [vmem:[%s10444_s8 + $0x510] sm:$0xf] }
 0x216   : > { %4130 = vmatpush.bf16.msrb.mxu2 %v6275_v0  ;;  %v5912_v0 = vld [vmem:[%s10444_s8 + $0x134] sm:$0xf0]  ;;  %v7101_v35 = vld [vmem:[%s10444_s8 + $0x528] sm:$0xf0] }
 0x218   : > { %4143 = vmatpush.bf16.msrb.mxu0 %v6527_v39  ;;  %v6978_v39 = vld [vmem:[%s10444_s8 + $0x154] sm:$0xf] }
 0x219   : > { %4102 = vmatpush.bf16.msrb.mxu3 %v5827_v63  ;;  %4117 = vmatpush.bf16.msrb.mxu1 %v6023_v3  ;;  %v5943_v51 = vor.u32 %v6978_v39, %v5940_v40  ;;  %v6971_v63 = vld [vmem:[%s10444_s8 + $0x11c] sm:$0xf]  ;;  %v6360_v3 = vld [vmem:[%s10444_s8 + $0x4b4] sm:$0xf0]  ;;  %v7104_v39 = vld [vmem:[%s10444_s8 + $0x544] sm:$0xf] }
 0x21a   : > { %4131 = vmatpush.bf16.msrb.mxu2 %v6247_v19  ;;  %v6052_v19 = vld [vmem:[%s10444_s8 + $0x24c] sm:$0xf0]  ;;  %v6447_v43 = vor.u32 %v7104_v39, %v6444_v41  ;;  %v6590_v41 = vld [vmem:[%s10444_s8 + $0x660] sm:$0xf] }
 0x21c   : > { %4144 = vmatpush.bf16.msrb.mxu0 %v6499_v55  ;;  %v7020_v55 = vld [vmem:[%s10444_s8 + $0x2a4] sm:$0xf] }
 0x21d   : > { %4118 = vmatpush.bf16.msrb.mxu1 %v5995_v28  ;;  %v6111_v59 = vor.u32 %v7020_v55, %v6108_v56  ;;  %v6220_v55 = vld [vmem:[%s10444_s8 + $0x39c] sm:$0xf0] }
 0x220   : > { %4145 = vmatpush.bf16.msrb.mxu0 %v6471_v9  ;;  %v7125_v9 = vld [vmem:[%s10444_s8 + $0x5ec] sm:$0xf] }
 0x224   : > { %4146 = vmatpush.bf16.msrb.mxu0 %v6443_v54  ;;  %v6999_v54 = vld [vmem:[%s10444_s8 + $0x1fc] sm:$0xf] }
 0x26a   : > { %v2382_v52 = vpop.permute.xlu0 %2381 }
 0x26b   : > { %v2388_v60 = vsel %vm2387_vm1, %v2382_v52, 0.0 }
 0x26c   : > { %v2390_v1 = vmul.f32 0.5, %v2388_v60  ;;  %v2397_v60 = vld [vmem:[%s418_s13 + $0x8] sm:$0xff]  ;;  %s4582_s13 = sshll.u32 %s4579_s29, 4  ;;  %s4583_s13 = int_to_ptr.hbm [resolvable:$true] %s4582_s13 }
 0x26d   : > { %s7252_s25 = sshra.s32 %s4583_s13, 4  ;;  %s7253_s25 = int_to_ptr.hbm [resolvable:$true] %s7252_s25 }
 0x26e   : > { %v2392_v17 = vmul.f32 1.442695, %v2390_v1  ;;  %v5798_v1 = vld [vmem:[%s10444_s8 + $0x38] sm:$0xf]  ;;  %s7254_s30 = scalar_lea.hbm %s7253_s25, 112  ;;  %p7259_p0 = scmp.lt.s32.totalorder %s7253_s25, %s10446_s10 }
 0x26f   : > { %v5799_v18 = vor.u32 %v6946_v4, %v5798_v1  ;;  %v7083_v1 = vld [vmem:[%s10444_s8 + $0x49c] sm:$0xf]  ;;  %p7255_p11 = scmp.ne.s32.totalorder %s7253_s25, %s7254_s30  ;;  %p7260_p1 = scmp.lt.s32.totalorder %s7258_s0, %s7254_s30 }
 0x270   : > { %7206 = vpow2.f32 %v2392_v17  ;;  %v7153_v17 = vld [vmem:[%s10444_s8 + $0x6cc] sm:$0xf]  ;;  %v6363_v4 = vor.u32 %v7083_v1, %v6360_v3 }
 0x271   : > { %4103 = vmatpush.bf16.msrb.mxu3 %v5799_v18  ;;  %v7006_v18 = vld [vmem:[%s10444_s8 + $0x234] sm:$0xf]  ;;  %p7256_p12 = pnand %p7255_p11, %p7403_p5  ;;  %p7261_p2 = por %p7260_p1, %p7259_p0 }
 0x272   : > { %v2384_v25 = vpop.permute.xlu0 %2383 }
 0x273   : > { %v2389_v30 = vsel %vm2387_vm1, %v2384_v25, 0.0  ;;  %v6985_v25 = vld [vmem:[%s10444_s8 + $0x18c] sm:$0xf]  ;;  %p7257_p13 = pneg %p7256_p12 }
 0x274   : > { %v2391_v34 = vmul.f32 0.5, %v2389_v30  ;;  %v7097_v30 = vld [vmem:[%s10444_s8 + $0x50c] sm:$0xf]  ;;  %v5971_v36 = vor.u32 %v6985_v25, %v5968_v29  ;;  %v6024_v29 = vld [vmem:[%s10444_s8 + $0x214] sm:$0xf0] }
 0x275   : > { %4104 = vmatpush.bf16.msrb.mxu3 %v5771_v16  ;;  %v7069_v25 = vld [vmem:[%s10444_s8 + $0x42c] sm:$0xf]  ;;  %v6276_v16 = vld [vmem:[%s10444_s8 + $0x40c] sm:$0xf0]  ;;  %p7262_p3 = pnand %p7261_p2, %p7257_p13 }
 0x276   : > { %v2394_v38 = vmul.f32 1.442695, %v2391_v34  ;;  %v7207_v52 = vpop.eup %7206  ;;  %v6643_v34 = vor.u32 %v7153_v17, %v6640_v23  ;;  %v6335_v17 = vor.u32 %v7076_v14, %v6332_v61  ;;  %v6500_v23 = vld [vmem:[%s10444_s8 + $0x5cc] sm:$0xf0]  ;;  %v7157_v14 = vld [vmem:[%s10444_s8 + $0x6e8] sm:$0xf0] }
 0x277   : > { %v2398_v2 = vmul.f32 %v7207_v52, %v2396_v53  ;;  %v6139_v52 = vor.u32 %v7027_v46, %v6136_v47  ;;  %v6587_v53 = vor.u32 %v7139_v48, %v6584_v49  ;;  %v7055_v46 = vld [vmem:[%s10444_s8 + $0x3bc] sm:$0xf]  ;;  %v6248_v48 = vld [vmem:[%s10444_s8 + $0x3d4] sm:$0xf0] }
 0x278   : > { %7208 = vpow2.f32 %v2394_v38  ;;  %v6419_v38 = vor.u32 %v7097_v30, %v6416_v31  ;;  %v7111_v30 = vld [vmem:[%s10444_s8 + $0x57c] sm:$0xf]  ;;  %v6027_v31 = vor.u32 %v6999_v54, %v6024_v29  ;;  %v6251_v49 = vor.u32 %v7055_v46, %v6248_v48  ;;  %v5946_v46 = vld [vmem:[%s10444_s8 + $0x158] sm:$0xf] }
 0x279   : > { %v2400_v20 = vadd.f32 %v2398_v2, %v8820_v21  ;;  %v6218_v21 = vld [vmem:[%s10444_s8 + $0x380] sm:$0xf]  ;;  %v5915_v2 = vor.u32 %v6971_v63, %v5912_v0 }
 0x27e   : > { %v7209_v7 = vpop.eup %7208 }
 0x27f   : > { %v2399_v11 = vmul.f32 %v7209_v7, %v2397_v60  ;;  %v6559_v60 = vor.u32 %v7132_v57, %v6556_v58  ;;  %v6083_v7 = vor.u32 %v7013_v5, %v6080_v6  ;;  %v2435_v57 = vld [vmem:[%s10443_s7] sm:$0xf] }
 0x280   : > { %v2440_v63 = vperm.slane %v2435_v57, 3  ;;  %v2437_v5 = vperm.slane %v2435_v57, 0 }
 0x281   : > { %v2401_v22 = vadd.f32 %v2399_v11, %v8824_v27  ;;  %v7051_v27 = vld [vmem:[%s10444_s8 + $0x398] sm:$0xf0]  ;;  %v6531_v11 = vor.u32 %v7125_v9, %v6528_v10  ;;  %v6198_v9 = vld [vmem:[%s10444_s8 + $0x350] sm:$0xf]  ;;  %v7045_v10 = vld [vmem:[%s10444_s8 + $0x368] sm:$0xf0] }
 0x282   : > { %v6219_v42 = vor.u32 %v7051_v27, %v6218_v21  ;;  %v5856_v21 = vld [vmem:[%s10444_s8 + $0xc4] sm:$0xf0] }
 0x283   : > { %v2402_v26 = vpack.c.bf16 %v2401_v22, %v2400_v20  ;;  %v6055_v20 = vor.u32 %v7006_v18, %v6052_v19  ;;  %v7118_v22 = vld [vmem:[%s10444_s8 + $0x5b4] sm:$0xf]  ;;  %v5859_v27 = vor.u32 %v6957_v24, %v5856_v21  ;;  %v6199_v19 = vor.u32 %v7045_v10, %v6198_v9  ;;  %v7129_v9 = vld [vmem:[%s10444_s8 + $0x608] sm:$0xf0] }
 0x284   : > { %4132 = vmatpush.bf16.msrb.mxu2 %v6219_v42  ;;  %v6503_v8 = vor.u32 %v7118_v22, %v6500_v23  ;;  %v6279_v42 = vor.u32 %v7062_v33, %v6276_v16  ;;  %v6647_v23 = vor.u32 %v7157_v14, %v6646_v13  ;;  %v7038_v24 = vld [vmem:[%s10444_s8 + $0x330] sm:$0xf0]  ;;  %v6338_v14 = vld [vmem:[%s10444_s8 + $0x468] sm:$0xf] }
 0x285   : > { %2613 = vmatmul.bf16.vlgmr.msra.gmra.mxu3 %v2402_v26  ;;  %2627 = vmatmul.bf16.vlgmr.msra.gmra.mxu1 %v2402_v26 }
 0x286   : > { %2641 = vmatmul.bf16.vlgmr.msra.gmra.mxu2 %v2402_v26  ;;  %2655 = vmatmul.bf16.vlgmr.msra.gmra.mxu0 %v2402_v26  ;;  %v6304_v26 = vld [vmem:[%s10444_s8 + $0x444] sm:$0xf0] }
 0x287   : > { %4167 = vmatpush.bf16.msra.mxu1 %v6195_v32  ;;  %4195 = vmatpush.bf16.msra.mxu0 %v6643_v34  ;;  %v6307_v28 = vor.u32 %v7069_v25, %v6304_v26  ;;  %v6472_v32 = vld [vmem:[%s10444_s8 + $0x594] sm:$0xf0] }
 0x288   : > { %4153 = vmatpush.bf16.msra.mxu3 %v5971_v36  ;;  %4181 = vmatpush.bf16.msra.mxu2 %v6419_v38  ;;  %v6475_v34 = vor.u32 %v7111_v30, %v6472_v32  ;;  %v6992_v36 = vld [vmem:[%s10444_s8 + $0x1c4] sm:$0xf]  ;;  %v5996_v38 = vld [vmem:[%s10444_s8 + $0x1dc] sm:$0xf0]  ;;  %v6618_v26 = vld [vmem:[%s10444_s8 + $0x698] sm:$0xf] }
 0x289   : > { %v5999_v40 = vor.u32 %v6992_v36, %v5996_v38  ;;  %v5974_v30 = vld [vmem:[%s10444_s8 + $0x190] sm:$0xf]  ;;  %v7031_v36 = vld [vmem:[%s10444_s8 + $0x2f8] sm:$0xf0] }
 0x28b   : > { %4168 = vmatpush.bf16.msra.mxu1 %v6167_v44  ;;  %4196 = vmatpush.bf16.msra.mxu0 %v6615_v45  ;;  %v6943_v44 = vld [vmem:[%s10444_s8 + $0x3c] sm:$0xf]  ;;  %v5800_v45 = vld [vmem:[%s10444_s8 + $0x54] sm:$0xf0] }
 0x28c   : > { %4154 = vmatpush.bf16.msra.mxu3 %v5943_v51  ;;  %4182 = vmatpush.bf16.msra.mxu2 %v6391_v50  ;;  %v5803_v47 = vor.u32 %v6943_v44, %v5800_v45  ;;  %v6936_v51 = vld [vmem:[%s10444_s8 + $0x4] sm:$0xf]  ;;  %v5772_v50 = vld [vmem:[%s10444_s8 + $0x1c] sm:$0xf0]  ;;  %v6423_v45 = vor.u32 %v7101_v35, %v6422_v62  ;;  %v5834_v35 = vld [vmem:[%s10444_s8 + $0x78] sm:$0xf] }
 0x28f   : > { %4169 = vmatpush.bf16.msra.mxu1 %v6139_v52  ;;  %4197 = vmatpush.bf16.msra.mxu0 %v6587_v53  ;;  %v5775_v52 = vor.u32 %v6936_v51, %v5772_v50  ;;  %v7048_v53 = vld [vmem:[%s10444_s8 + $0x384] sm:$0xf]  ;;  %v6394_v51 = vld [vmem:[%s10444_s8 + $0x4d8] sm:$0xf]  ;;  %v7094_v50 = vld [vmem:[%s10444_s8 + $0x4f0] sm:$0xf0] }
 0x290   : > { %4155 = vmatpush.bf16.msra.mxu3 %v5915_v2  ;;  %4183 = vmatpush.bf16.msra.mxu2 %v6363_v4  ;;  %v6223_v56 = vor.u32 %v7048_v53, %v6220_v55  ;;  %v6114_v53 = vld [vmem:[%s10444_s8 + $0x2a8] sm:$0xf]  ;;  %v7024_v55 = vld [vmem:[%s10444_s8 + $0x2c0] sm:$0xf0] }
 0x293   : > { %4170 = vmatpush.bf16.msra.mxu1 %v6111_v59  ;;  %4198 = vmatpush.bf16.msra.mxu0 %v6559_v60  ;;  %v2438_v60 = vperm.slane %v2435_v57, 1 }
 0x294   : > { %4156 = vmatpush.bf16.msra.mxu3 %v5887_v15  ;;  %4184 = vmatpush.bf16.msra.mxu2 %v6335_v17 }
 0x297   : > { %4171 = vmatpush.bf16.msra.mxu1 %v6083_v7  ;;  %4199 = vmatpush.bf16.msra.mxu0 %v6531_v11  ;;  %v2439_v11 = vperm.slane %v2435_v57, 2  ;;  %v6562_v57 = vld [vmem:[%s10444_s8 + $0x628] sm:$0xf] }
 0x298   : > { %4157 = vmatpush.bf16.msra.mxu3 %v5859_v27  ;;  %4185 = vmatpush.bf16.msra.mxu2 %v6307_v28  ;;  %v7150_v28 = vld [vmem:[%s10444_s8 + $0x6b0] sm:$0xf0] }
 0x299   : > { %v6619_v16 = vor.u32 %v7150_v28, %v6618_v26  ;;  %v6310_v26 = vld [vmem:[%s10444_s8 + $0x430] sm:$0xf]  ;;  %v7073_v28 = vld [vmem:[%s10444_s8 + $0x448] sm:$0xf0] }
 0x29a   : > { %v6311_v62 = vor.u32 %v7073_v28, %v6310_v26  ;;  %v7091_v26 = vld [vmem:[%s10444_s8 + $0x4dc] sm:$0xf]  ;;  %v6396_v28 = vld [vmem:[%s10444_s8 + $0x4f4] sm:$0xf0] }
 0x29b   : > { %4172 = vmatpush.bf16.msra.mxu1 %v6055_v20  ;;  %4200 = vmatpush.bf16.msra.mxu0 %v6503_v8  ;;  %v6170_v8 = vld [vmem:[%s10444_s8 + $0x318] sm:$0xf] }
 0x29c   : > { %4158 = vmatpush.bf16.msra.mxu3 %v5831_v37  ;;  %4186 = vmatpush.bf16.msra.mxu2 %v6279_v42  ;;  %v6142_v42 = vld [vmem:[%s10444_s8 + $0x2e0] sm:$0xf] }
 0x29f   : > { %4173 = vmatpush.bf16.msra.mxu1 %v6027_v31  ;;  %4201 = vmatpush.bf16.msra.mxu0 %v6475_v34  ;;  %v6989_v31 = vld [vmem:[%s10444_s8 + $0x1a8] sm:$0xf0]  ;;  %v6171_v34 = vor.u32 %v7038_v24, %v6170_v8  ;;  %v5862_v24 = vld [vmem:[%s10444_s8 + $0xb0] sm:$0xf] }
 0x2a0   : > { %4159 = vmatpush.bf16.msra.mxu3 %v5803_v47  ;;  %4187 = vmatpush.bf16.msra.mxu2 %v6251_v49  ;;  %v6982_v47 = vld [vmem:[%s10444_s8 + $0x170] sm:$0xf0]  ;;  %v6143_v49 = vor.u32 %v7031_v36, %v6142_v42  ;;  %v6002_v36 = vld [vmem:[%s10444_s8 + $0x1c8] sm:$0xf] }
 0x2a1   : > { %v7066_v42 = vld [vmem:[%s10444_s8 + $0x410] sm:$0xf0] }
 0x2a3   : > { %4174 = vmatpush.bf16.msra.mxu1 %v5999_v40  ;;  %4202 = vmatpush.bf16.msra.mxu0 %v6447_v43  ;;  %v5975_v40 = vor.u32 %v6989_v31, %v5974_v30  ;;  %v7143_v43 = vld [vmem:[%s10444_s8 + $0x678] sm:$0xf0] }
 0x2a4   : > { %4160 = vmatpush.bf16.msra.mxu3 %v5775_v52  ;;  %4188 = vmatpush.bf16.msra.mxu2 %v6223_v56  ;;  %v6591_v52 = vor.u32 %v7143_v43, %v6590_v41  ;;  %v5947_v56 = vor.u32 %v6982_v47, %v5946_v46  ;;  %v7003_v30 = vld [vmem:[%s10444_s8 + $0x218] sm:$0xf0]  ;;  %v7108_v41 = vld [vmem:[%s10444_s8 + $0x560] sm:$0xf0]  ;;  %v6200_v46 = vld [vmem:[%s10444_s8 + $0x36c] sm:$0xf0] }
 0x2a5   : > { %v7154_v47 = vld [vmem:[%s10444_s8 + $0x6d4] sm:$0xf] }
 0x302   : > { %v2628_v58 = vpop.f32.mrf.mxu1 }
 0x303   : > { %v2656_v59 = vpop.f32.mrf.mxu0  ;;  %v2629_v1 = vadd.f32 %v2628_v58, %v2438_v60  ;;  %v7136_v58 = vld [vmem:[%s10444_s8 + $0x640] sm:$0xf0] }
 0x304   : > { %v2657_v3 = vadd.f32 %v2656_v59, %v2440_v63  ;;  %v6395_v59 = vor.u32 %v7094_v50, %v6394_v51  ;;  %v6648_v51 = vld [vmem:[%s10444_s8 + $0x6ec] sm:$0xf0]  ;;  %v5806_v50 = vld [vmem:[%s10444_s8 + $0x40] sm:$0xf] }
 0x305   : > { %v2662_v15 = vmax.f32 %v2629_v1, 0.0  ;;  %v6366_v1 = vld [vmem:[%s10444_s8 + $0x4a0] sm:$0xf] }
 0x306   : > { %v2664_v17 = vmax.f32 %v2657_v3, 0.0  ;;  %v6563_v3 = vor.u32 %v7136_v58, %v6562_v57 }
 0x308   : > { %v2614_v0 = vpop.f32.mrf.mxu3 }
 0x309   : > { %v2642_v2 = vpop.f32.mrf.mxu2  ;;  %v2615_v20 = vadd.f32 %v2614_v0, %v2437_v5  ;;  %v6115_v0 = vor.u32 %v7024_v55, %v6114_v53  ;;  %v6254_v55 = vld [vmem:[%s10444_s8 + $0x3c0] sm:$0xf] }
 0x30a   : > { %v2630_v4 = vpop.f32.mrf.mxu1  ;;  %v2643_v21 = vadd.f32 %v2642_v2, %v2439_v11  ;;  %v7087_v2 = vld [vmem:[%s10444_s8 + $0x4b8] sm:$0xf0] }
 0x30b   : > { %v2631_v6 = vadd.f32 %v2630_v4, %v2438_v60  ;;  %v2658_v7 = vpop.f32.mrf.mxu0  ;;  %v2661_v33 = vmax.f32 %v2615_v20, 0.0  ;;  %v5918_v60 = vld [vmem:[%s10444_s8 + $0x120] sm:$0xf]  ;;  %v6086_v4 = vld [vmem:[%s10444_s8 + $0x270] sm:$0xf]  ;;  %v6367_v10 = vor.u32 %v7087_v2, %v6366_v1 }
 0x30c   : > { %v2659_v12 = vadd.f32 %v2658_v7, %v2440_v63  ;;  %v2663_v38 = vmax.f32 %v2643_v21, 0.0  ;;  %v6975_v63 = vld [vmem:[%s10444_s8 + $0x138] sm:$0xf0]  ;;  %v6534_v7 = vld [vmem:[%s10444_s8 + $0x5f0] sm:$0xf] }
 0x30d   : > { %v2666_v61 = vmax.f32 %v2631_v6, 0.0  ;;  %v5919_v6 = vor.u32 %v6975_v63, %v5918_v60  ;;  %v6506_v20 = vld [vmem:[%s10444_s8 + $0x5b8] sm:$0xf]  ;;  %v6961_v21 = vld [vmem:[%s10444_s8 + $0xc8] sm:$0xf0]  ;;  %v6651_v60 = vor.u32 %v7154_v47, %v6648_v51 }
 0x30e   : > { %v2668_v18 = vmax.f32 %v2659_v12, 0.0  ;;  %v6968_v12 = vld [vmem:[%s10444_s8 + $0x100] sm:$0xf0]  ;;  %v5863_v31 = vor.u32 %v6961_v21, %v5862_v24  ;;  %v7147_v1 = vld [vmem:[%s10444_s8 + $0x69c] sm:$0xf] }
 0x30f   : > { %v9385_v22 = vpack.c.bf16 %v2666_v61, %v2662_v15  ;;  %v7080_v15 = vld [vmem:[%s10444_s8 + $0x480] sm:$0xf0]  ;;  %v6535_v61 = vor.u32 %v7129_v9, %v6534_v7  ;;  %v6620_v2 = vld [vmem:[%s10444_s8 + $0x6b4] sm:$0xf0]  ;;  %v6986_v9 = vld [vmem:[%s10444_s8 + $0x194] sm:$0xf] }
 0x310   : > { %v9393_v27 = vpack.c.bf16 %v2668_v18, %v2664_v17  ;;  %v2616_v25 = vpop.f32.mrf.mxu3  ;;  %v6058_v17 = vld [vmem:[%s10444_s8 + $0x238] sm:$0xf]  ;;  %v7010_v18 = vld [vmem:[%s10444_s8 + $0x250] sm:$0xf0]  ;;  %v6339_v8 = vor.u32 %v7080_v15, %v6338_v14  ;;  %v7052_v7 = vld [vmem:[%s10444_s8 + $0x3a0] sm:$0xf0]  ;;  %v6623_v14 = vor.u32 %v7147_v1, %v6620_v2 }
 0x311   : > { %v2617_v54 = vadd.f32 %v2616_v25, %v2437_v5  ;;  %v2644_v29 = vpop.f32.mrf.mxu2  ;;  %4119 = vmatmul.bf16.vlgmr.msrb.gmra.mxu1 %v9385_v22  ;;  %v7017_v5 = vld [vmem:[%s10444_s8 + $0x288] sm:$0xf0]  ;;  %v6059_v25 = vor.u32 %v7010_v18, %v6058_v17  ;;  %v6144_v17 = vld [vmem:[%s10444_s8 + $0x2fc] sm:$0xf0]  ;;  %v6979_v24 = vld [vmem:[%s10444_s8 + $0x15c] sm:$0xf] }
 0x312   : > { %v2645_v32 = vadd.f32 %v2644_v29, %v2439_v11  ;;  %4147 = vmatmul.bf16.vlgmr.msrb.gmra.mxu0 %v9393_v27  ;;  %4223 = vmatpush.bf16.msrb.mxu1 %v6199_v19  ;;  %v5890_v11 = vld [vmem:[%s10444_s8 + $0xe8] sm:$0xf]  ;;  %v6087_v13 = vor.u32 %v7017_v5, %v6086_v4  ;;  %v6030_v29 = vld [vmem:[%s10444_s8 + $0x200] sm:$0xf]  ;;  %v6940_v5 = vld [vmem:[%s10444_s8 + $0x20] sm:$0xf0] }
 0x313   : > { %v2665_v37 = vmax.f32 %v2617_v54, 0.0  ;;  %4251 = vmatpush.bf16.msrb.mxu0 %v6647_v23  ;;  %v5891_v19 = vor.u32 %v6968_v12, %v5890_v11  ;;  %v7122_v23 = vld [vmem:[%s10444_s8 + $0x5d0] sm:$0xf0]  ;;  %v5778_v4 = vld [vmem:[%s10444_s8 + $0x8] sm:$0xf] }
 0x314   : > { %v2667_v39 = vmax.f32 %v2645_v32, 0.0  ;;  %v6507_v54 = vor.u32 %v7122_v23, %v6506_v20  ;;  %v6478_v32 = vld [vmem:[%s10444_s8 + $0x580] sm:$0xf]  ;;  %v7098_v12 = vld [vmem:[%s10444_s8 + $0x514] sm:$0xf]  ;;  %v5779_v15 = vor.u32 %v6940_v5, %v5778_v4 }
 0x315   : > { %v9427_v44 = vpack.c.bf16 %v2665_v37, %v2661_v33  ;;  %v6954_v33 = vld [vmem:[%s10444_s8 + $0x90] sm:$0xf0]  ;;  %v6031_v37 = vor.u32 %v7003_v30, %v6030_v29  ;;  %v7140_v20 = vld [vmem:[%s10444_s8 + $0x664] sm:$0xf]  ;;  %v6592_v23 = vld [vmem:[%s10444_s8 + $0x67c] sm:$0xf0] }
 0x316   : > { %v9435_v48 = vpack.c.bf16 %v2667_v39, %v2663_v38  ;;  %4224 = vmatpush.bf16.msrb.mxu1 %v6171_v34  ;;  %v7115_v34 = vld [vmem:[%s10444_s8 + $0x598] sm:$0xf0]  ;;  %v6996_v39 = vld [vmem:[%s10444_s8 + $0x1e0] sm:$0xf0]  ;;  %v5835_v43 = vor.u32 %v6954_v33, %v5834_v35  ;;  %v5948_v21 = vld [vmem:[%s10444_s8 + $0x174] sm:$0xf0] }
 0x317   : > { %4252 = vmatpush.bf16.msrb.mxu0 %v6619_v16  ;;  %4105 = vmatmul.bf16.vlgmr.msrb.gmra.mxu3 %v9427_v44  ;;  %v6282_v16 = vld [vmem:[%s10444_s8 + $0x3f8] sm:$0xf]  ;;  %v6479_v38 = vor.u32 %v7115_v34, %v6478_v32  ;;  %v6003_v53 = vor.u32 %v6996_v39, %v6002_v36  ;;  %v7021_v29 = vld [vmem:[%s10444_s8 + $0x2ac] sm:$0xf]  ;;  %v6116_v30 = vld [vmem:[%s10444_s8 + $0x2c4] sm:$0xf0] }
 0x318   : > { %4133 = vmatmul.bf16.vlgmr.msrb.gmra.mxu2 %v9435_v48  ;;  %4209 = vmatpush.bf16.msrb.mxu3 %v5975_v40  ;;  %v6450_v40 = vld [vmem:[%s10444_s8 + $0x548] sm:$0xf]  ;;  %v7133_v32 = vld [vmem:[%s10444_s8 + $0x62c] sm:$0xf]  ;;  %v6972_v35 = vld [vmem:[%s10444_s8 + $0x124] sm:$0xf] }
 0x319   : > { %4237 = vmatpush.bf16.msrb.mxu2 %v6423_v45  ;;  %v7042_v45 = vld [vmem:[%s10444_s8 + $0x354] sm:$0xf]  ;;  %v6451_v57 = vor.u32 %v7108_v41, %v6450_v40  ;;  %v6564_v34 = vld [vmem:[%s10444_s8 + $0x644] sm:$0xf0]  ;;  %v5920_v33 = vld [vmem:[%s10444_s8 + $0x13c] sm:$0xf0] }
 0x31a   : > { %4225 = vmatpush.bf16.msrb.mxu1 %v6143_v49  ;;  %v6283_v49 = vor.u32 %v7066_v42, %v6282_v16  ;;  %v6203_v58 = vor.u32 %v7042_v45, %v6200_v46  ;;  %v7084_v16 = vld [vmem:[%s10444_s8 + $0x4a4] sm:$0xf]  ;;  %v6368_v42 = vld [vmem:[%s10444_s8 + $0x4bc] sm:$0xf0]  ;;  %v6567_v36 = vor.u32 %v7133_v32, %v6564_v34  ;;  %v6088_v39 = vld [vmem:[%s10444_s8 + $0x28c] sm:$0xf0]  ;;  %v5923_v40 = vor.u32 %v6972_v35, %v5920_v33 }
 0x31b   : > { %4253 = vmatpush.bf16.msrb.mxu0 %v6591_v52  ;;  %v6947_v52 = vld [vmem:[%s10444_s8 + $0x58] sm:$0xf0]  ;;  %v7126_v41 = vld [vmem:[%s10444_s8 + $0x5f4] sm:$0xf]  ;;  %v6371_v45 = vor.u32 %v7084_v16, %v6368_v42  ;;  %v6965_v46 = vld [vmem:[%s10444_s8 + $0xec] sm:$0xf] }
 0x31c   : > { %4210 = vmatpush.bf16.msrb.mxu3 %v5947_v56  ;;  %v7059_v56 = vld [vmem:[%s10444_s8 + $0x3d8] sm:$0xf0]  ;;  %v5807_v63 = vor.u32 %v6947_v52, %v5806_v50  ;;  %v5892_v47 = vld [vmem:[%s10444_s8 + $0x104] sm:$0xf0]  ;;  %v7077_v51 = vld [vmem:[%s10444_s8 + $0x46c] sm:$0xf] }
 0x31d   : > { %4238 = vmatpush.bf16.msrb.mxu2 %v6395_v59  ;;  %v7035_v59 = vld [vmem:[%s10444_s8 + $0x31c] sm:$0xf]  ;;  %v6340_v50 = vld [vmem:[%s10444_s8 + $0x484] sm:$0xf0]  ;;  %v7070_v1 = vld [vmem:[%s10444_s8 + $0x434] sm:$0xf] }
 0x31e   : > { %4226 = vmatpush.bf16.msrb.mxu1 %v6115_v0  ;;  %v6172_v0 = vld [vmem:[%s10444_s8 + $0x334] sm:$0xf0]  ;;  %v6312_v2 = vld [vmem:[%s10444_s8 + $0x44c] sm:$0xf0]  ;;  %v7000_v4 = vld [vmem:[%s10444_s8 + $0x204] sm:$0xf] }
 0x31f   : > { %4254 = vmatpush.bf16.msrb.mxu0 %v6563_v3  ;;  %v6255_v3 = vor.u32 %v7059_v56, %v6254_v55  ;;  %v6175_v11 = vor.u32 %v7035_v59, %v6172_v0  ;;  %v6060_v55 = vld [vmem:[%s10444_s8 + $0x254] sm:$0xf0]  ;;  %v5895_v56 = vor.u32 %v6965_v46, %v5892_v47  ;;  %v6343_v59 = vor.u32 %v7077_v51, %v6340_v50  ;;  %v6032_v5 = vld [vmem:[%s10444_s8 + $0x21c] sm:$0xf0]  ;;  %v7151_v42 = vld [vmem:[%s10444_s8 + $0x6b8] sm:$0xf0] }
 0x320   : > { %4211 = vmatpush.bf16.msrb.mxu3 %v5919_v6  ;;  %v6226_v6 = vld [vmem:[%s10444_s8 + $0x388] sm:$0xf]  ;;  %v6626_v16 = vld [vmem:[%s10444_s8 + $0x6a0] sm:$0xf]  ;;  %v6430_v47 = vld [vmem:[%s10444_s8 + $0x518] sm:$0xf] }
 0x321   : > { %4239 = vmatpush.bf16.msrb.mxu2 %v6367_v10  ;;  %4175 = vmatmul.bf16.vlgmr.msra.gmra.mxu1 %v9385_v22  ;;  %v5976_v10 = vld [vmem:[%s10444_s8 + $0x1ac] sm:$0xf0]  ;;  %v6227_v18 = vor.u32 %v7052_v7, %v6226_v6  ;;  %v7112_v7 = vld [vmem:[%s10444_s8 + $0x584] sm:$0xf]  ;;  %v6627_v51 = vor.u32 %v7151_v42, %v6626_v16  ;;  %v6318_v16 = vld [vmem:[%s10444_s8 + $0x438] sm:$0xf] }
 0x322   : > { %4203 = vmatmul.bf16.vlgmr.msra.gmra.mxu0 %v9393_v27  ;;  %4227 = vmatpush.bf16.msrb.mxu1 %v6087_v13  ;;  %v6424_v13 = vld [vmem:[%s10444_s8 + $0x52c] sm:$0xf0]  ;;  %v7074_v42 = vld [vmem:[%s10444_s8 + $0x450] sm:$0xf0] }
 0x323   : > { %4255 = vmatpush.bf16.msrb.mxu0 %v6535_v61  ;;  %v7028_v61 = vld [vmem:[%s10444_s8 + $0x2e4] sm:$0xf] }
 0x324   : > { %4212 = vmatpush.bf16.msrb.mxu3 %v5891_v19  ;;  %v5979_v19 = vor.u32 %v6986_v9, %v5976_v10  ;;  %v6480_v9 = vld [vmem:[%s10444_s8 + $0x59c] sm:$0xf0]  ;;  %v6315_v10 = vor.u32 %v7070_v1, %v6312_v2  ;;  %v7095_v2 = vld [vmem:[%s10444_s8 + $0x4f8] sm:$0xf0] }
 0x325   : > { %4240 = vmatpush.bf16.msrb.mxu2 %v6339_v8  ;;  %v6427_v8 = vor.u32 %v7098_v12, %v6424_v13  ;;  %v5836_v12 = vld [vmem:[%s10444_s8 + $0x94] sm:$0xf0]  ;;  %v6035_v13 = vor.u32 %v7000_v4, %v6032_v5  ;;  %v6402_v1 = vld [vmem:[%s10444_s8 + $0x4e0] sm:$0xf]  ;;  %v6122_v4 = vld [vmem:[%s10444_s8 + $0x2b0] sm:$0xf] }
 0x326   : > { %4228 = vmatpush.bf16.msrb.mxu1 %v6059_v25  ;;  %v6147_v25 = vor.u32 %v7028_v61, %v6144_v17  ;;  %v6993_v61 = vld [vmem:[%s10444_s8 + $0x1cc] sm:$0xf]  ;;  %v6483_v17 = vor.u32 %v7112_v7, %v6480_v9  ;;  %v6570_v7 = vld [vmem:[%s10444_s8 + $0x630] sm:$0xf] }
 0x327   : > { %4256 = vmatpush.bf16.msrb.mxu0 %v6507_v54  ;;  %4161 = vmatmul.bf16.vlgmr.msra.gmra.mxu3 %v9427_v44  ;;  %v6595_v54 = vor.u32 %v7140_v20, %v6592_v23  ;;  %v6452_v20 = vld [vmem:[%s10444_s8 + $0x564] sm:$0xf0]  ;;  %v7025_v5 = vld [vmem:[%s10444_s8 + $0x2c8] sm:$0xf0] }
 0x328   : > { %4189 = vmatmul.bf16.vlgmr.msra.gmra.mxu2 %v9435_v48  ;;  %4213 = vmatpush.bf16.msrb.mxu3 %v5863_v31  ;;  %v5951_v31 = vor.u32 %v6979_v24, %v5948_v21  ;;  %v7046_v24 = vld [vmem:[%s10444_s8 + $0x370] sm:$0xf0]  ;;  %v6654_v21 = vld [vmem:[%s10444_s8 + $0x6d8] sm:$0xf]  ;;  %v7137_v9 = vld [vmem:[%s10444_s8 + $0x648] sm:$0xf0] }
 0x329   : > { %4241 = vmatpush.bf16.msrb.mxu2 %v6311_v62  ;;  %v6399_v62 = vor.u32 %v7091_v26, %v6396_v28  ;;  %v7158_v26 = vld [vmem:[%s10444_s8 + $0x6f0] sm:$0xf0]  ;;  %v6944_v28 = vld [vmem:[%s10444_s8 + $0x44] sm:$0xf] }
 0x32a   : > { %4229 = vmatpush.bf16.msrb.mxu1 %v6031_v37  ;;  %v6119_v37 = vor.u32 %v7021_v29, %v6116_v30  ;;  %v7056_v30 = vld [vmem:[%s10444_s8 + $0x3c4] sm:$0xf]  ;;  %v6655_v35 = vor.u32 %v7158_v26, %v6654_v21  ;;  %v6969_v21 = vld [vmem:[%s10444_s8 + $0x108] sm:$0xf0]  ;;  %v6346_v26 = vld [vmem:[%s10444_s8 + $0x470] sm:$0xf] }
 0x32b   : > { %4257 = vmatpush.bf16.msrb.mxu0 %v6479_v38  ;;  %v7014_v38 = vld [vmem:[%s10444_s8 + $0x274] sm:$0xf] }
 0x32c   : > { %4214 = vmatpush.bf16.msrb.mxu3 %v5835_v43  ;;  %v6536_v43 = vld [vmem:[%s10444_s8 + $0x60c] sm:$0xf0] }
 0x32d   : > { %4242 = vmatpush.bf16.msrb.mxu2 %v6283_v49  ;;  %v6091_v49 = vor.u32 %v7014_v38, %v6088_v39  ;;  %v6539_v52 = vor.u32 %v7126_v41, %v6536_v43  ;;  %v6937_v38 = vld [vmem:[%s10444_s8 + $0xc] sm:$0xf]  ;;  %v5780_v39 = vld [vmem:[%s10444_s8 + $0x24] sm:$0xf0]  ;;  %v5982_v43 = vld [vmem:[%s10444_s8 + $0x198] sm:$0xf] }
 0x32e   : > { %4230 = vmatpush.bf16.msrb.mxu1 %v6003_v53  ;;  %v7007_v53 = vld [vmem:[%s10444_s8 + $0x23c] sm:$0xf]  ;;  %v6228_v41 = vld [vmem:[%s10444_s8 + $0x3a4] sm:$0xf0]  ;;  %v5783_v50 = vor.u32 %v6937_v38, %v5780_v39  ;;  %v7004_v39 = vld [vmem:[%s10444_s8 + $0x220] sm:$0xf0] }
 0x32f   : > { %4258 = vmatpush.bf16.msrb.mxu0 %v6451_v57  ;;  %v7119_v57 = vld [vmem:[%s10444_s8 + $0x5bc] sm:$0xf]  ;;  %v6063_v0 = vor.u32 %v7007_v53, %v6060_v55  ;;  %v7032_v53 = vld [vmem:[%s10444_s8 + $0x300] sm:$0xf0]  ;;  %v6038_v38 = vld [vmem:[%s10444_s8 + $0x208] sm:$0xf] }
 0x330   : > { %4215 = vmatpush.bf16.msrb.mxu3 %v5807_v63  ;;  %v5864_v63 = vld [vmem:[%s10444_s8 + $0xcc] sm:$0xf0] }
 0x331   : > { %4243 = vmatpush.bf16.msrb.mxu2 %v6255_v3  ;;  %4231 = vmatmul.bf16.vlgmr.msrb.gmra.mxu1 %v9385_v22 }
 0x332   : > { %4279 = vmatpush.bf16.msra.mxu1 %v6203_v58  ;;  %4259 = vmatmul.bf16.vlgmr.msrb.gmra.mxu0 %v9393_v27  ;;  %v6508_v58 = vld [vmem:[%s10444_s8 + $0x5d4] sm:$0xf0] }
 0x333   : > { %4307 = vmatpush.bf16.msra.mxu0 %v6651_v60  ;;  %v6958_v60 = vld [vmem:[%s10444_s8 + $0xb4] sm:$0xf]  ;;  %v6511_v3 = vor.u32 %v7119_v57, %v6508_v58  ;;  %v6598_v57 = vld [vmem:[%s10444_s8 + $0x668] sm:$0xf]  ;;  %v7144_v58 = vld [vmem:[%s10444_s8 + $0x680] sm:$0xf0] }
 0x334   : > { %4216 = vmatpush.bf16.msrb.mxu3 %v5779_v15  ;;  %v5867_v6 = vor.u32 %v6958_v60, %v5864_v63  ;;  %v6284_v15 = vld [vmem:[%s10444_s8 + $0x414] sm:$0xf0]  ;;  %v5954_v60 = vld [vmem:[%s10444_s8 + $0x160] sm:$0xf]  ;;  %v6983_v63 = vld [vmem:[%s10444_s8 + $0x178] sm:$0xf0] }
 0x335   : > { %4244 = vmatpush.bf16.msrb.mxu2 %v6227_v18  ;;  %v6004_v18 = vld [vmem:[%s10444_s8 + $0x1e4] sm:$0xf0] }
 0x336   : > { %4280 = vmatpush.bf16.msra.mxu1 %v6175_v11  ;;  %v6951_v11 = vld [vmem:[%s10444_s8 + $0x7c] sm:$0xf]  ;;  %v6007_v29 = vor.u32 %v6993_v61, %v6004_v18  ;;  %v6571_v61 = vor.u32 %v7137_v9, %v6570_v7  ;;  %v7018_v18 = vld [vmem:[%s10444_s8 + $0x290] sm:$0xf0] }
 0x337   : > { %4308 = vmatpush.bf16.msra.mxu0 %v6623_v14  ;;  %4217 = vmatmul.bf16.vlgmr.msrb.gmra.mxu3 %v9427_v44  ;;  %v7063_v14 = vld [vmem:[%s10444_s8 + $0x3fc] sm:$0xf]  ;;  %v5839_v23 = vor.u32 %v6951_v11, %v5836_v12  ;;  %v5926_v11 = vld [vmem:[%s10444_s8 + $0x128] sm:$0xf]  ;;  %v6976_v12 = vld [vmem:[%s10444_s8 + $0x140] sm:$0xf0] }
 0x338   : > { %4265 = vmatpush.bf16.msra.mxu3 %v5979_v19  ;;  %4245 = vmatmul.bf16.vlgmr.msrb.gmra.mxu2 %v9435_v48  ;;  %v7105_v19 = vld [vmem:[%s10444_s8 + $0x54c] sm:$0xf] }
 0x339   : > { %4293 = vmatpush.bf16.msra.mxu2 %v6427_v8  ;;  %v6206_v8 = vld [vmem:[%s10444_s8 + $0x358] sm:$0xf]  ;;  %v6455_v32 = vor.u32 %v7105_v19, %v6452_v20  ;;  %v5927_v19 = vor.u32 %v6976_v12, %v5926_v11 }
 0x33a   : > { %4281 = vmatpush.bf16.msra.mxu1 %v6147_v25  ;;  %v6287_v25 = vor.u32 %v7063_v14, %v6284_v15  ;;  %v6207_v34 = vor.u32 %v7046_v24, %v6206_v8  ;;  %v6374_v14 = vld [vmem:[%s10444_s8 + $0x4a8] sm:$0xf]  ;;  %v7088_v15 = vld [vmem:[%s10444_s8 + $0x4c0] sm:$0xf0]  ;;  %v6542_v20 = vld [vmem:[%s10444_s8 + $0x5f8] sm:$0xf] }
 0x33b   : > { %4309 = vmatpush.bf16.msra.mxu0 %v6595_v54  ;;  %v5808_v54 = vld [vmem:[%s10444_s8 + $0x5c] sm:$0xf0]  ;;  %v6375_v8 = vor.u32 %v7088_v15, %v6374_v14  ;;  %v5898_v24 = vld [vmem:[%s10444_s8 + $0xf0] sm:$0xf]  ;;  %v7148_v14 = vld [vmem:[%s10444_s8 + $0x6a4] sm:$0xf] }
 0x33c   : > { %4266 = vmatpush.bf16.msra.mxu3 %v5951_v31  ;;  %v6256_v31 = vld [vmem:[%s10444_s8 + $0x3dc] sm:$0xf0]  ;;  %v5811_v33 = vor.u32 %v6944_v28, %v5808_v54  ;;  %v7081_v28 = vld [vmem:[%s10444_s8 + $0x488] sm:$0xf0] }
 0x33d   : > { %4294 = vmatpush.bf16.msra.mxu2 %v6399_v62  ;;  %v6178_v62 = vld [vmem:[%s10444_s8 + $0x320] sm:$0xf] }
 0x33e   : > { %4282 = vmatpush.bf16.msra.mxu1 %v6119_v37  ;;  %v7039_v37 = vld [vmem:[%s10444_s8 + $0x338] sm:$0xf0]  ;;  %v6628_v15 = vld [vmem:[%s10444_s8 + $0x6bc] sm:$0xf0] }
 0x33f   : > { %4310 = vmatpush.bf16.msra.mxu0 %v6567_v36  ;;  %v6259_v36 = vor.u32 %v7056_v30, %v6256_v31  ;;  %v6179_v46 = vor.u32 %v7039_v37, %v6178_v62  ;;  %v7011_v30 = vld [vmem:[%s10444_s8 + $0x258] sm:$0xf0]  ;;  %v5899_v31 = vor.u32 %v6969_v21, %v5898_v24  ;;  %v6347_v62 = vor.u32 %v7081_v28, %v6346_v26 }
 0x340   : > { %4267 = vmatpush.bf16.msra.mxu3 %v5923_v40  ;;  %v7049_v40 = vld [vmem:[%s10444_s8 + $0x38c] sm:$0xf]  ;;  %v7099_v21 = vld [vmem:[%s10444_s8 + $0x51c] sm:$0xf]  ;;  %v6631_v26 = vor.u32 %v7148_v14, %v6628_v15  ;;  %v6320_v15 = vld [vmem:[%s10444_s8 + $0x454] sm:$0xf0] }
 0x341   : > { %4295 = vmatpush.bf16.msra.mxu2 %v6371_v45  ;;  %v6990_v45 = vld [vmem:[%s10444_s8 + $0x1b0] sm:$0xf0]  ;;  %v6231_v55 = vor.u32 %v7049_v40, %v6228_v41  ;;  %v6486_v41 = vld [vmem:[%s10444_s8 + $0x588] sm:$0xf]  ;;  %v7071_v14 = vld [vmem:[%s10444_s8 + $0x43c] sm:$0xf] }
 0x342   : > { %4283 = vmatpush.bf16.msra.mxu1 %v6091_v49  ;;  %v7102_v49 = vld [vmem:[%s10444_s8 + $0x530] sm:$0xf0] }
 0x343   : > { %4311 = vmatpush.bf16.msra.mxu0 %v6539_v52  ;;  %v6150_v52 = vld [vmem:[%s10444_s8 + $0x2e8] sm:$0xf] }
 0x344   : > { %4268 = vmatpush.bf16.msra.mxu3 %v5895_v56  ;;  %v5983_v56 = vor.u32 %v6990_v45, %v5982_v43  ;;  %v7116_v43 = vld [vmem:[%s10444_s8 + $0x5a0] sm:$0xf0]  ;;  %v6319_v45 = vor.u32 %v7074_v42, %v6318_v16  ;;  %v6404_v42 = vld [vmem:[%s10444_s8 + $0x4fc] sm:$0xf0] }
 0x345   : > { %4296 = vmatpush.bf16.msra.mxu2 %v6343_v59  ;;  %v6431_v59 = vor.u32 %v7102_v49, %v6430_v47  ;;  %v6955_v47 = vld [vmem:[%s10444_s8 + $0x98] sm:$0xf0]  ;;  %v6039_v49 = vor.u32 %v7004_v39, %v6038_v38  ;;  %v7092_v16 = vld [vmem:[%s10444_s8 + $0x4e4] sm:$0xf]  ;;  %v7022_v38 = vld [vmem:[%s10444_s8 + $0x2b4] sm:$0xf] }
 0x346   : > { %4284 = vmatpush.bf16.msra.mxu1 %v6063_v0  ;;  %v6151_v0 = vor.u32 %v7032_v53, %v6150_v52  ;;  %v6010_v52 = vld [vmem:[%s10444_s8 + $0x1d0] sm:$0xf]  ;;  %v6487_v53 = vor.u32 %v7116_v43, %v6486_v41  ;;  %v7134_v41 = vld [vmem:[%s10444_s8 + $0x634] sm:$0xf] }
 0x347   : > { %4312 = vmatpush.bf16.msra.mxu0 %v6511_v3  ;;  %v6599_v3 = vor.u32 %v7144_v58, %v6598_v57  ;;  %v7109_v57 = vld [vmem:[%s10444_s8 + $0x568] sm:$0xf0]  ;;  %v6124_v39 = vld [vmem:[%s10444_s8 + $0x2cc] sm:$0xf0] }
 0x348   : > { %4269 = vmatpush.bf16.msra.mxu3 %v5867_v6  ;;  %v5955_v6 = vor.u32 %v6983_v63, %v5954_v60  ;;  %v6208_v60 = vld [vmem:[%s10444_s8 + $0x374] sm:$0xf0]  ;;  %v7155_v63 = vld [vmem:[%s10444_s8 + $0x6dc] sm:$0xf]  ;;  %v6572_v43 = vld [vmem:[%s10444_s8 + $0x64c] sm:$0xf0] }
 0x349   : > { %4297 = vmatpush.bf16.msra.mxu2 %v6315_v10  ;;  %v6403_v10 = vor.u32 %v7095_v2, %v6402_v1  ;;  %v6656_v1 = vld [vmem:[%s10444_s8 + $0x6f4] sm:$0xf0]  ;;  %v5814_v2 = vld [vmem:[%s10444_s8 + $0x48] sm:$0xf] }
 0x34a   : > { %4285 = vmatpush.bf16.msra.mxu1 %v6035_v13  ;;  %v6123_v13 = vor.u32 %v7025_v5, %v6122_v4  ;;  %v6262_v5 = vld [vmem:[%s10444_s8 + $0x3c8] sm:$0xf]  ;;  %v6659_v11 = vor.u32 %v7155_v63, %v6656_v1  ;;  %v5900_v63 = vld [vmem:[%s10444_s8 + $0x10c] sm:$0xf0]  ;;  %v7078_v1 = vld [vmem:[%s10444_s8 + $0x474] sm:$0xf] }
 0x34b   : > { %4313 = vmatpush.bf16.msra.mxu0 %v6483_v17  ;;  %v6094_v17 = vld [vmem:[%s10444_s8 + $0x278] sm:$0xf] }
 0x34c   : > { %4270 = vmatpush.bf16.msra.mxu3 %v5839_v23  ;;  %v7130_v23 = vld [vmem:[%s10444_s8 + $0x610] sm:$0xf0] }
 0x34d   : > { %4298 = vmatpush.bf16.msra.mxu2 %v6287_v25  ;;  %v6095_v25 = vor.u32 %v7018_v18, %v6094_v17  ;;  %v6543_v54 = vor.u32 %v7130_v23, %v6542_v20  ;;  %v5786_v17 = vld [vmem:[%s10444_s8 + $0x10] sm:$0xf]  ;;  %v6941_v18 = vld [vmem:[%s10444_s8 + $0x28] sm:$0xf0]  ;;  %v6987_v23 = vld [vmem:[%s10444_s8 + $0x19c] sm:$0xf] }
 0x34e   : > { %4286 = vmatpush.bf16.msra.mxu1 %v6007_v29  ;;  %v6066_v29 = vld [vmem:[%s10444_s8 + $0x240] sm:$0xf]  ;;  %v7053_v20 = vld [vmem:[%s10444_s8 + $0x3a8] sm:$0xf0]  ;;  %v5787_v28 = vor.u32 %v6941_v18, %v5786_v17  ;;  %v6040_v18 = vld [vmem:[%s10444_s8 + $0x224] sm:$0xf0] }
 0x34f   : > { %4314 = vmatpush.bf16.msra.mxu0 %v6455_v32  ;;  %v6514_v32 = vld [vmem:[%s10444_s8 + $0x5c0] sm:$0xf]  ;;  %v6067_v37 = vor.u32 %v7011_v30, %v6066_v29  ;;  %v6152_v29 = vld [vmem:[%s10444_s8 + $0x304] sm:$0xf0]  ;;  %v7001_v17 = vld [vmem:[%s10444_s8 + $0x20c] sm:$0xf] }
 0x350   : > { %4271 = vmatpush.bf16.msra.mxu3 %v5811_v33  ;;  %v6962_v33 = vld [vmem:[%s10444_s8 + $0xd0] sm:$0xf0] }
 0x351   : > { %4299 = vmatpush.bf16.msra.mxu2 %v6259_v36  ;;  %4287 = vmatmul.bf16.vlgmr.msra.gmra.mxu1 %v9385_v22 }
 0x352   : > { %4335 = vmatpush.bf16.msrb.mxu1 %v6207_v34  ;;  %4315 = vmatmul.bf16.vlgmr.msra.gmra.mxu0 %v9393_v27  ;;  %v7123_v34 = vld [vmem:[%s10444_s8 + $0x5d8] sm:$0xf0] }
 0x353   : > { %4363 = vmatpush.bf16.msrb.mxu0 %v6655_v35  ;;  %v5870_v35 = vld [vmem:[%s10444_s8 + $0xb8] sm:$0xf]  ;;  %v6515_v36 = vor.u32 %v7123_v34, %v6514_v32  ;;  %v7141_v32 = vld [vmem:[%s10444_s8 + $0x66c] sm:$0xf]  ;;  %v6600_v34 = vld [vmem:[%s10444_s8 + $0x684] sm:$0xf0] }
 0x354   : > { %4272 = vmatpush.bf16.msra.mxu3 %v5783_v50  ;;  %v5871_v40 = vor.u32 %v6962_v33, %v5870_v35  ;;  %v7067_v50 = vld [vmem:[%s10444_s8 + $0x418] sm:$0xf0]  ;;  %v6980_v35 = vld [vmem:[%s10444_s8 + $0x164] sm:$0xf]  ;;  %v5956_v33 = vld [vmem:[%s10444_s8 + $0x17c] sm:$0xf0] }
 0x355   : > { %4300 = vmatpush.bf16.msra.mxu2 %v6231_v55  ;;  %v6997_v55 = vld [vmem:[%s10444_s8 + $0x1e8] sm:$0xf0] }
 0x356   : > { %4336 = vmatpush.bf16.msrb.mxu1 %v6179_v46  ;;  %v5842_v46 = vld [vmem:[%s10444_s8 + $0x80] sm:$0xf]  ;;  %v6011_v4 = vor.u32 %v6997_v55, %v6010_v52  ;;  %v6575_v52 = vor.u32 %v7134_v41, %v6572_v43  ;;  %v6096_v55 = vld [vmem:[%s10444_s8 + $0x294] sm:$0xf0] }
 0x357   : > { %4364 = vmatpush.bf16.msrb.mxu0 %v6627_v51  ;;  %4273 = vmatmul.bf16.vlgmr.msra.gmra.mxu3 %v9427_v44  ;;  %v6290_v51 = vld [vmem:[%s10444_s8 + $0x400] sm:$0xf]  ;;  %v5843_v58 = vor.u32 %v6955_v47, %v5842_v46  ;;  %v6973_v46 = vld [vmem:[%s10444_s8 + $0x12c] sm:$0xf]  ;;  %v5928_v47 = vld [vmem:[%s10444_s8 + $0x144] sm:$0xf0] }
 0x358   : > { %4321 = vmatpush.bf16.msrb.mxu3 %v5983_v56  ;;  %4301 = vmatmul.bf16.vlgmr.msra.gmra.mxu2 %v9435_v48  ;;  %v6458_v56 = vld [vmem:[%s10444_s8 + $0x550] sm:$0xf] }
 0x359   : > { %4349 = vmatpush.bf16.msrb.mxu2 %v6431_v59  ;;  %v7043_v59 = vld [vmem:[%s10444_s8 + $0x35c] sm:$0xf]  ;;  %v6459_v7 = vor.u32 %v7109_v57, %v6458_v56  ;;  %v5931_v56 = vor.u32 %v6973_v46, %v5928_v47 }
 0x35a   : > { %4337 = vmatpush.bf16.msrb.mxu1 %v6151_v0  ;;  %v6291_v0 = vor.u32 %v7067_v50, %v6290_v51  ;;  %v6211_v9 = vor.u32 %v7043_v59, %v6208_v60  ;;  %v7085_v51 = vld [vmem:[%s10444_s8 + $0x4ac] sm:$0xf]  ;;  %v6376_v50 = vld [vmem:[%s10444_s8 + $0x4c4] sm:$0xf0]  ;;  %v7127_v57 = vld [vmem:[%s10444_s8 + $0x5fc] sm:$0xf] }
 0x35b   : > { %4365 = vmatpush.bf16.msrb.mxu0 %v6599_v3  ;;  %v6948_v3 = vld [vmem:[%s10444_s8 + $0x60] sm:$0xf0]  ;;  %v6379_v59 = vor.u32 %v7085_v51, %v6376_v50  ;;  %v6966_v60 = vld [vmem:[%s10444_s8 + $0xf4] sm:$0xf]  ;;  %v6634_v51 = vld [vmem:[%s10444_s8 + $0x6a8] sm:$0xf] }
 0x35c   : > { %4322 = vmatpush.bf16.msrb.mxu3 %v5955_v6  ;;  %v7060_v6 = vld [vmem:[%s10444_s8 + $0x3e0] sm:$0xf0]  ;;  %v5815_v12 = vor.u32 %v6948_v3, %v5814_v2  ;;  %v6348_v2 = vld [vmem:[%s10444_s8 + $0x48c] sm:$0xf0] }
 0x35d   : > { %4350 = vmatpush.bf16.msrb.mxu2 %v6403_v10  ;;  %v7036_v10 = vld [vmem:[%s10444_s8 + $0x324] sm:$0xf] }
 0x35e   : > { %4338 = vmatpush.bf16.msrb.mxu1 %v6123_v13  ;;  %v6180_v13 = vld [vmem:[%s10444_s8 + $0x33c] sm:$0xf0]  ;;  %v7152_v50 = vld [vmem:[%s10444_s8 + $0x6c0] sm:$0xf0] }
 0x35f   : > { %4366 = vmatpush.bf16.msrb.mxu0 %v6571_v61  ;;  %v6263_v61 = vor.u32 %v7060_v6, %v6262_v5  ;;  %v6183_v24 = vor.u32 %v7036_v10, %v6180_v13  ;;  %v6068_v5 = vld [vmem:[%s10444_s8 + $0x25c] sm:$0xf0]  ;;  %v5903_v6 = vor.u32 %v6966_v60, %v5900_v63  ;;  %v6351_v10 = vor.u32 %v7078_v1, %v6348_v2 }
 0x360   : > { %4323 = vmatpush.bf16.msrb.mxu3 %v5927_v19  ;;  %v6234_v19 = vld [vmem:[%s10444_s8 + $0x390] sm:$0xf]  ;;  %v6438_v63 = vld [vmem:[%s10444_s8 + $0x520] sm:$0xf]  ;;  %v6635_v1 = vor.u32 %v7152_v50, %v6634_v51  ;;  %v6963_v51 = vld [vmem:[%s10444_s8 + $0xd8] sm:$0xf0] }
 0x361   : > { %4351 = vmatpush.bf16.msrb.mxu2 %v6375_v8  ;;  %v5984_v8 = vld [vmem:[%s10444_s8 + $0x1b4] sm:$0xf0]  ;;  %v6235_v30 = vor.u32 %v7053_v20, %v6234_v19  ;;  %v7113_v20 = vld [vmem:[%s10444_s8 + $0x58c] sm:$0xf] }
 0x362   : > { %4339 = vmatpush.bf16.msrb.mxu1 %v6095_v25  ;;  %v6432_v25 = vld [vmem:[%s10444_s8 + $0x534] sm:$0xf0] }
 0x363   : > { %4367 = vmatpush.bf16.msrb.mxu0 %v6543_v54  ;;  %v7029_v54 = vld [vmem:[%s10444_s8 + $0x2ec] sm:$0xf] }
 0x364   : > { %4324 = vmatpush.bf16.msrb.mxu3 %v5899_v31  ;;  %v5987_v31 = vor.u32 %v6987_v23, %v5984_v8  ;;  %v6488_v23 = vld [vmem:[%s10444_s8 + $0x5a4] sm:$0xf0]  ;;  %v6323_v8 = vor.u32 %v7071_v14, %v6320_v15  ;;  %v7096_v15 = vld [vmem:[%s10444_s8 + $0x500] sm:$0xf0] }
 0x365   : > { %4352 = vmatpush.bf16.msrb.mxu2 %v6347_v62  ;;  %v6435_v62 = vor.u32 %v7099_v21, %v6432_v25  ;;  %v5844_v21 = vld [vmem:[%s10444_s8 + $0x9c] sm:$0xf0]  ;;  %v6043_v25 = vor.u32 %v7001_v17, %v6040_v18  ;;  %v6410_v14 = vld [vmem:[%s10444_s8 + $0x4e8] sm:$0xf]  ;;  %v6130_v17 = vld [vmem:[%s10444_s8 + $0x2b8] sm:$0xf] }
 0x366   : > { %4340 = vmatpush.bf16.msrb.mxu1 %v6067_v37  ;;  %v6155_v37 = vor.u32 %v7029_v54, %v6152_v29  ;;  %v6994_v54 = vld [vmem:[%s10444_s8 + $0x1d4] sm:$0xf]  ;;  %v6491_v29 = vor.u32 %v7113_v20, %v6488_v23  ;;  %v6578_v20 = vld [vmem:[%s10444_s8 + $0x638] sm:$0xf] }
 0x367   : > { %4368 = vmatpush.bf16.msrb.mxu0 %v6515_v36  ;;  %v6603_v36 = vor.u32 %v7141_v32, %v6600_v34  ;;  %v6460_v32 = vld [vmem:[%s10444_s8 + $0x56c] sm:$0xf0]  ;;  %v7026_v18 = vld [vmem:[%s10444_s8 + $0x2d0] sm:$0xf0] }
 0x368   : > { %4325 = vmatpush.bf16.msrb.mxu3 %v5871_v40  ;;  %v5959_v40 = vor.u32 %v6980_v35, %v5956_v33  ;;  %v7047_v35 = vld [vmem:[%s10444_s8 + $0x378] sm:$0xf0]  ;;  %v6662_v33 = vld [vmem:[%s10444_s8 + $0x6e0] sm:$0xf]  ;;  %v7138_v23 = vld [vmem:[%s10444_s8 + $0x650] sm:$0xf0] }
 0x369   : > { %4353 = vmatpush.bf16.msrb.mxu2 %v6319_v45  ;;  %v6407_v45 = vor.u32 %v7092_v16, %v6404_v42  ;;  %v7159_v16 = vld [vmem:[%s10444_s8 + $0x6f8] sm:$0xf0]  ;;  %v6945_v42 = vld [vmem:[%s10444_s8 + $0x4c] sm:$0xf] }
 0x36a   : > { %4341 = vmatpush.bf16.msrb.mxu1 %v6039_v49  ;;  %v6127_v49 = vor.u32 %v7022_v38, %v6124_v39  ;;  %v7057_v39 = vld [vmem:[%s10444_s8 + $0x3cc] sm:$0xf]  ;;  %v6663_v46 = vor.u32 %v7159_v16, %v6662_v33  ;;  %v6970_v33 = vld [vmem:[%s10444_s8 + $0x110] sm:$0xf0] }
 0x36b   : > { %4369 = vmatpush.bf16.msrb.mxu0 %v6487_v53  ;;  %v7015_v53 = vld [vmem:[%s10444_s8 + $0x27c] sm:$0xf] }
 0x36c   : > { %4326 = vmatpush.bf16.msrb.mxu3 %v5843_v58  ;;  %v6544_v58 = vld [vmem:[%s10444_s8 + $0x614] sm:$0xf0] }
 0x36d   : > { %4354 = vmatpush.bf16.msrb.mxu2 %v6291_v0  ;;  %v6099_v0 = vor.u32 %v7015_v53, %v6096_v55  ;;  %v6547_v3 = vor.u32 %v7127_v57, %v6544_v58  ;;  %v6938_v53 = vld [vmem:[%s10444_s8 + $0x14] sm:$0xf]  ;;  %v5788_v55 = vld [vmem:[%s10444_s8 + $0x2c] sm:$0xf0]  ;;  %v5990_v58 = vld [vmem:[%s10444_s8 + $0x1a0] sm:$0xf] }
 0x36e   : > { %4342 = vmatpush.bf16.msrb.mxu1 %v6011_v4  ;;  %v7008_v4 = vld [vmem:[%s10444_s8 + $0x244] sm:$0xf]  ;;  %v6236_v57 = vld [vmem:[%s10444_s8 + $0x3ac] sm:$0xf0]  ;;  %v5791_v2 = vor.u32 %v6938_v53, %v5788_v55  ;;  %v6326_v53 = vld [vmem:[%s10444_s8 + $0x440] sm:$0xf] }
 0x36f   : > { %4370 = vmatpush.bf16.msrb.mxu0 %v6459_v7  ;;  %v7120_v7 = vld [vmem:[%s10444_s8 + $0x5c4] sm:$0xf]  ;;  %v6071_v13 = vor.u32 %v7008_v4, %v6068_v5  ;;  %v7033_v4 = vld [vmem:[%s10444_s8 + $0x308] sm:$0xf0]  ;;  %v7075_v55 = vld [vmem:[%s10444_s8 + $0x458] sm:$0xf0] }
 0x370   : > { %4327 = vmatpush.bf16.msrb.mxu3 %v5815_v12  ;;  %v5872_v12 = vld [vmem:[%s10444_s8 + $0xd4] sm:$0xf0] }
 0x371   : > { %4355 = vmatpush.bf16.msrb.mxu2 %v6263_v61  ;;  %4343 = vmatmul.bf16.vlgmr.msrb.gmra.mxu1 %v9385_v22 }
 0x372   : > { %4391 = vmatpush.bf16.msra.mxu1 %v6211_v9  ;;  %4371 = vmatmul.bf16.vlgmr.msrb.gmra.mxu0 %v9393_v27  ;;  %v6516_v9 = vld [vmem:[%s10444_s8 + $0x5dc] sm:$0xf0] }
 0x373   : > { %4419 = vmatpush.bf16.msra.mxu0 %v6659_v11  ;;  %v6959_v11 = vld [vmem:[%s10444_s8 + $0xbc] sm:$0xf]  ;;  %v6519_v61 = vor.u32 %v7120_v7, %v6516_v9  ;;  %v6606_v7 = vld [vmem:[%s10444_s8 + $0x670] sm:$0xf]  ;;  %v7145_v9 = vld [vmem:[%s10444_s8 + $0x688] sm:$0xf0] }
 0x374   : > { %4328 = vmatpush.bf16.msrb.mxu3 %v5787_v28  ;;  %v5875_v19 = vor.u32 %v6959_v11, %v5872_v12  ;;  %v6292_v28 = vld [vmem:[%s10444_s8 + $0x41c] sm:$0xf0]  ;;  %v5962_v11 = vld [vmem:[%s10444_s8 + $0x168] sm:$0xf]  ;;  %v6984_v12 = vld [vmem:[%s10444_s8 + $0x180] sm:$0xf0] }
 0x375   : > { %4356 = vmatpush.bf16.msrb.mxu2 %v6235_v30  ;;  %v6012_v30 = vld [vmem:[%s10444_s8 + $0x1ec] sm:$0xf0] }
 0x376   : > { %4392 = vmatpush.bf16.msra.mxu1 %v6183_v24  ;;  %v6952_v24 = vld [vmem:[%s10444_s8 + $0x84] sm:$0xf]  ;;  %v6015_v38 = vor.u32 %v6994_v54, %v6012_v30  ;;  %v6579_v54 = vor.u32 %v7138_v23, %v6578_v20  ;;  %v7019_v30 = vld [vmem:[%s10444_s8 + $0x298] sm:$0xf0]  ;;  %v5822_v20 = vld [vmem:[%s10444_s8 + $0x50] sm:$0xf] }
 0x377   : > { %4420 = vmatpush.bf16.msra.mxu0 %v6631_v26  ;;  %4329 = vmatmul.bf16.vlgmr.msrb.gmra.mxu3 %v9427_v44  ;;  %v7064_v26 = vld [vmem:[%s10444_s8 + $0x404] sm:$0xf]  ;;  %v5847_v34 = vor.u32 %v6952_v24, %v5844_v21  ;;  %v5934_v24 = vld [vmem:[%s10444_s8 + $0x130] sm:$0xf]  ;;  %v6977_v21 = vld [vmem:[%s10444_s8 + $0x148] sm:$0xf0] }
 0x378   : > { %4377 = vmatpush.bf16.msra.mxu3 %v5987_v31  ;;  %4357 = vmatmul.bf16.vlgmr.msrb.gmra.mxu2 %v9435_v48  ;;  %v7106_v31 = vld [vmem:[%s10444_s8 + $0x554] sm:$0xf]  ;;  %v6949_v23 = vld [vmem:[%s10444_s8 + $0x68] sm:$0xf0] }
 0x379   : > { %4405 = vmatpush.bf16.msra.mxu2 %v6435_v62  ;;  %v6214_v62 = vld [vmem:[%s10444_s8 + $0x360] sm:$0xf]  ;;  %v6463_v41 = vor.u32 %v7106_v31, %v6460_v32  ;;  %v5935_v31 = vor.u32 %v6977_v21, %v5934_v24  ;;  %v6270_v24 = vld [vmem:[%s10444_s8 + $0x3d0] sm:$0xf]  ;;  %v7061_v21 = vld [vmem:[%s10444_s8 + $0x3e8] sm:$0xf0] }
 0x37a   : > { %4393 = vmatpush.bf16.msra.mxu1 %v6155_v37  ;;  %v6295_v37 = vor.u32 %v7064_v26, %v6292_v28  ;;  %v6215_v43 = vor.u32 %v7047_v35, %v6214_v62  ;;  %v6382_v26 = vld [vmem:[%s10444_s8 + $0x4b0] sm:$0xf]  ;;  %v7089_v28 = vld [vmem:[%s10444_s8 + $0x4c8] sm:$0xf0]  ;;  %v6550_v32 = vld [vmem:[%s10444_s8 + $0x600] sm:$0xf] }
 0x37b   : > { %4421 = vmatpush.bf16.msra.mxu0 %v6603_v36  ;;  %v5816_v36 = vld [vmem:[%s10444_s8 + $0x64] sm:$0xf0]  ;;  %v6383_v62 = vor.u32 %v7089_v28, %v6382_v26  ;;  %v5906_v35 = vld [vmem:[%s10444_s8 + $0xf8] sm:$0xf] }
 0x37c   : > { %4378 = vmatpush.bf16.msra.mxu3 %v5959_v40  ;;  %v6264_v40 = vld [vmem:[%s10444_s8 + $0x3e4] sm:$0xf0]  ;;  %v5819_v47 = vor.u32 %v6945_v42, %v5816_v36  ;;  %v6354_v42 = vld [vmem:[%s10444_s8 + $0x478] sm:$0xf]  ;;  %v7082_v36 = vld [vmem:[%s10444_s8 + $0x490] sm:$0xf0] }
 0x37d   : > { %4406 = vmatpush.bf16.msra.mxu2 %v6407_v45  ;;  %v6186_v45 = vld [vmem:[%s10444_s8 + $0x328] sm:$0xf] }
 0x37e   : > { %4394 = vmatpush.bf16.msra.mxu1 %v6127_v49  ;;  %v7040_v49 = vld [vmem:[%s10444_s8 + $0x340] sm:$0xf0] }
 0x37f   : > { %4422 = vmatpush.bf16.msra.mxu0 %v6575_v52  ;;  %v6267_v52 = vor.u32 %v7057_v39, %v6264_v40  ;;  %v6187_v60 = vor.u32 %v7040_v49, %v6186_v45  ;;  %v6074_v39 = vld [vmem:[%s10444_s8 + $0x248] sm:$0xf]  ;;  %v7012_v40 = vld [vmem:[%s10444_s8 + $0x260] sm:$0xf0]  ;;  %v5878_v49 = vld [vmem:[%s10444_s8 + $0xc0] sm:$0xf] }
 0x380   : > { %4379 = vmatpush.bf16.msra.mxu3 %v5931_v56  ;;  %v7050_v56 = vld [vmem:[%s10444_s8 + $0x394] sm:$0xf]  ;;  %v7124_v45 = vld [vmem:[%s10444_s8 + $0x5e0] sm:$0xf0] }
 0x381   : > { %4407 = vmatpush.bf16.msra.mxu2 %v6379_v59  ;;  %v6991_v59 = vld [vmem:[%s10444_s8 + $0x1b8] sm:$0xf0]  ;;  %v6239_v5 = vor.u32 %v7050_v56, %v6236_v57 }
 0x382   : > { %4395 = vmatpush.bf16.msra.mxu1 %v6099_v0  ;;  %v7103_v0 = vld [vmem:[%s10444_s8 + $0x538] sm:$0xf0] }
 0x383   : > { %4423 = vmatpush.bf16.msra.mxu0 %v6547_v3  ;;  %v6158_v3 = vld [vmem:[%s10444_s8 + $0x2f0] sm:$0xf] }
 0x384   : > { %4380 = vmatpush.bf16.msra.mxu3 %v5903_v6  ;;  %v5991_v6 = vor.u32 %v6991_v59, %v5990_v58  ;;  %v6046_v58 = vld [vmem:[%s10444_s8 + $0x210] sm:$0xf]  ;;  %v7005_v59 = vld [vmem:[%s10444_s8 + $0x228] sm:$0xf0] }
 0x385   : > { %4408 = vmatpush.bf16.msra.mxu2 %v6351_v10  ;;  %v6439_v10 = vor.u32 %v7103_v0, %v6438_v63  ;;  %v6494_v63 = vld [vmem:[%s10444_s8 + $0x590] sm:$0xf]  ;;  %v7117_v0 = vld [vmem:[%s10444_s8 + $0x5a8] sm:$0xf0] }
 0x386   : > { %4396 = vmatpush.bf16.msra.mxu1 %v6071_v13  ;;  %v6159_v13 = vor.u32 %v7033_v4, %v6158_v3  ;;  %v6956_v3 = vld [vmem:[%s10444_s8 + $0xa0] sm:$0xf0] }
 0x387   : > { %4424 = vmatpush.bf16.msra.mxu0 %v6519_v61  ;;  %v6607_v61 = vor.u32 %v7145_v9, %v6606_v7  ;;  %v7068_v7 = vld [vmem:[%s10444_s8 + $0x420] sm:$0xf0] }
 0x388   : > { %4381 = vmatpush.bf16.msra.mxu3 %v5875_v19  ;;  %v5963_v19 = vor.u32 %v6984_v12, %v5962_v11  ;;  %v6495_v11 = vor.u32 %v7117_v0, %v6494_v63  ;;  %v6018_v12 = vld [vmem:[%s10444_s8 + $0x1d8] sm:$0xf] }
 0x389   : > { %4409 = vmatpush.bf16.msra.mxu2 %v6323_v8  ;;  %v6411_v8 = vor.u32 %v7096_v15, %v6410_v14 }
 0x38a   : > { %4397 = vmatpush.bf16.msra.mxu1 %v6043_v25  ;;  %v6131_v25 = vor.u32 %v7026_v18, %v6130_v17  ;;  %v7110_v17 = vld [vmem:[%s10444_s8 + $0x570] sm:$0xf0] }
 0x38b   : > { %4425 = vmatpush.bf16.msra.mxu0 %v6491_v29  ;;  %v6102_v29 = vld [vmem:[%s10444_s8 + $0x280] sm:$0xf] }
 0x38c   : > { %4382 = vmatpush.bf16.msra.mxu3 %v5847_v34  ;;  %v7131_v34 = vld [vmem:[%s10444_s8 + $0x618] sm:$0xf0]  ;;  %v6103_v16 = vor.u32 %v7019_v30, %v6102_v29  ;;  %v6271_v30 = vor.u32 %v7061_v21, %v6270_v24 }
 0x38d   : > { %4410 = vmatpush.bf16.msra.mxu2 %v6295_v37 }
 0x38e   : > { %4398 = vmatpush.bf16.msra.mxu1 %v6015_v38  ;;  %v4120_v37 = vpop.f32.mrf.mxu1  ;;  %v6551_v38 = vor.u32 %v7131_v34, %v6550_v32  ;;  %v6942_v32 = vld [vmem:[%s10444_s8 + $0x30] sm:$0xf0] }
 0x38f   : > { %4426 = vmatpush.bf16.msra.mxu0 %v6463_v41  ;;  %v5907_v41 = vor.u32 %v6970_v33, %v5906_v35  ;;  %v4148_v50 = vpop.f32.mrf.mxu0  ;;  %v7054_v35 = vld [vmem:[%s10444_s8 + $0x3b0] sm:$0xf0] }
 0x390   : > { %4383 = vmatpush.bf16.msra.mxu3 %v5819_v47  ;;  %v6355_v47 = vor.u32 %v7082_v36, %v6354_v42 }
 0x391   : > { %4411 = vmatpush.bf16.msra.mxu2 %v6267_v52  ;;  %4399 = vmatmul.bf16.vlgmr.msra.gmra.mxu1 %v9385_v22  ;;  %v6075_v52 = vor.u32 %v7012_v40, %v6074_v39 }
 0x392   : > { %4447 = vmatpush.bf16.msrb.mxu1 %v6215_v43  ;;  %4427 = vmatmul.bf16.vlgmr.msra.gmra.mxu0 %v9393_v27  ;;  %v6522_v43 = vld [vmem:[%s10444_s8 + $0x5c8] sm:$0xf] }
 0x393   : > { %4475 = vmatpush.bf16.msrb.mxu0 %v6663_v46  ;;  %v10296_v46 = vld [vmem:[%s10445_s9] sm:$0x7f]  ;;  %v6523_v56 = vor.u32 %v7124_v45, %v6522_v43 }
 0x394   : > { %4384 = vmatpush.bf16.msra.mxu3 %v5791_v2  ;;  %v2931_v57 = vperm.slane %v10296_v46, 0  ;;  %v5850_v2 = vld [vmem:[%s10444_s8 + $0x88] sm:$0xf] }
 0x395   : > { %4412 = vmatpush.bf16.msra.mxu2 %v6239_v5  ;;  %v6047_v5 = vor.u32 %v7005_v59, %v6046_v58  ;;  %v5851_v15 = vor.u32 %v6956_v3, %v5850_v2 }
 0x396   : > { %4448 = vmatpush.bf16.msrb.mxu1 %v6187_v60  ;;  %v5879_v60 = vor.u32 %v6963_v51, %v5878_v49  ;;  %v4122_v14 = vpop.f32.mrf.mxu1 }
 0x397   : > { %4476 = vmatpush.bf16.msrb.mxu0 %v6635_v1  ;;  %4385 = vmatmul.bf16.vlgmr.msra.gmra.mxu3 %v9427_v44  ;;  %v6327_v1 = vor.u32 %v7075_v55, %v6326_v53  ;;  %v4150_v28 = vpop.f32.mrf.mxu0 }
 0x398   : > { %4433 = vmatpush.bf16.msrb.mxu3 %v5991_v6  ;;  %4413 = vmatmul.bf16.vlgmr.msra.gmra.mxu2 %v9435_v48  ;;  %v6298_v6 = vld [vmem:[%s10444_s8 + $0x408] sm:$0xf] }
 0x399   : > { %4461 = vmatpush.bf16.msrb.mxu2 %v6439_v10 }
 0x39a   : > { %4449 = vmatpush.bf16.msrb.mxu1 %v6159_v13  ;;  %v4106_v4 = vpop.f32.mrf.mxu3  ;;  %v6998_v13 = vld [vmem:[%s10444_s8 + $0x1f0] sm:$0xf0] }
 0x39b   : > { %4477 = vmatpush.bf16.msrb.mxu0 %v6607_v61  ;;  %v4107_v9 = vadd.f32 %v4106_v4, %v2931_v57  ;;  %v4134_v10 = vpop.f32.mrf.mxu2  ;;  %v6466_v61 = vld [vmem:[%s10444_s8 + $0x558] sm:$0xf]  ;;  %v2933_v4 = vperm.slane %v10296_v46, 2 }
 0x39c   : > { %4434 = vmatpush.bf16.msrb.mxu3 %v5963_v19  ;;  %v6299_v19 = vor.u32 %v7068_v7, %v6298_v6  ;;  %v6467_v26 = vor.u32 %v7110_v17, %v6466_v61 }
 0x39d   : > { %4462 = vmatpush.bf16.msrb.mxu2 %v6411_v8  ;;  %v4121_v18 = vadd.f32 %v4120_v37, %v4107_v9  ;;  %v6019_v8 = vor.u32 %v6998_v13, %v6018_v12 }
 0x39e   : > { %4450 = vmatpush.bf16.msrb.mxu1 %v6131_v25  ;;  %v4176_v39 = vpop.f32.mrf.mxu1 }
 0x39f   : > { %4478 = vmatpush.bf16.msrb.mxu0 %v6579_v54  ;;  %v4135_v25 = vadd.f32 %v4134_v10, %v4121_v18  ;;  %v5823_v54 = vor.u32 %v6949_v23, %v5822_v20  ;;  %v4204_v45 = vpop.f32.mrf.mxu0 }
 0x3a0   : > { %4435 = vmatpush.bf16.msrb.mxu3 %v5935_v31  ;;  %v5794_v31 = vld [vmem:[%s10444_s8 + $0x18] sm:$0xf] }
 0x3a1   : > { %4463 = vmatpush.bf16.msrb.mxu2 %v6383_v62  ;;  %v4149_v29 = vadd.f32 %v4148_v50, %v4135_v25  ;;  %v6242_v62 = vld [vmem:[%s10444_s8 + $0x398] sm:$0xf]  ;;  %v5795_v42 = vor.u32 %v6942_v32, %v5794_v31 }
 0x3a2   : > { %4451 = vmatpush.bf16.msrb.mxu1 %v6103_v16  ;;  %v4108_v34 = vpop.f32.mrf.mxu3 }
 0x3a3   : > { %4479 = vmatpush.bf16.msrb.mxu0 %v6551_v38  ;;  %v4489_v33 = vmul.f32 0.5, %v4149_v29  ;;  %v4109_v37 = vadd.f32 %v4108_v34, %v2931_v57  ;;  %v4136_v16 = vpop.f32.mrf.mxu2  ;;  %v6243_v38 = vor.u32 %v7054_v35, %v6242_v62 }
 0x3a4   : > { %4436 = vmatpush.bf16.msrb.mxu3 %v5907_v41  ;;  %v2932_v41 = vperm.slane %v10296_v46, 1 }
 0x3a5   : > { %4464 = vmatpush.bf16.msrb.mxu2 %v6355_v47  ;;  %7210 = vtanh.f32 %v4489_v33  ;;  %v4123_v36 = vadd.f32 %v4122_v14, %v4109_v37  ;;  %v2934_v37 = vperm.slane %v10296_v46, 3 }
 0x3a6   : > { %4452 = vmatpush.bf16.msrb.mxu1 %v6075_v52 }
 0x3a7   : > { %4480 = vmatpush.bf16.msrb.mxu0 %v6523_v56  ;;  %v4137_v40 = vadd.f32 %v4136_v16, %v4123_v36  ;;  %v4178_v56 = vpop.f32.mrf.mxu1 }
 0x3a8   : > { %4437 = vmatpush.bf16.msrb.mxu3 %v5879_v60 }
 0x3a9   : > { %4465 = vmatpush.bf16.msrb.mxu2 %v6327_v1  ;;  %v4151_v43 = vadd.f32 %v4150_v28, %v4137_v40  ;;  %v4206_v1 = vpop.f32.mrf.mxu0 }
 0x3aa   : > { %4453 = vmatpush.bf16.msrb.mxu1 %v6047_v5  ;;  %v4162_v47 = vpop.f32.mrf.mxu3 }
 0x3ab   : > { %4481 = vmatpush.bf16.msrb.mxu0 %v6495_v11  ;;  %v7211_v49 = vpop.eup %7210  ;;  %v4496_v51 = vmul.f32 0.5, %v4151_v43  ;;  %v4163_v50 = vadd.f32 %v4162_v47, %v2932_v41  ;;  %v4190_v52 = vpop.f32.mrf.mxu2 }
 0x3ac   : > { %4438 = vmatpush.bf16.msrb.mxu3 %v5851_v15 }
 0x3ad   : > { %4466 = vmatpush.bf16.msrb.mxu2 %v6299_v19  ;;  %7212 = vtanh.f32 %v4496_v51 }
 0x3ae   : > { %4454 = vmatpush.bf16.msrb.mxu1 %v6019_v8 }
 0x3af   : > { %4482 = vmatpush.bf16.msrb.mxu0 %v6467_v26  ;;  %v4232_v6 = vpop.f32.mrf.mxu1 }
 0x3b0   : > { %4439 = vmatpush.bf16.msrb.mxu3 %v5823_v54 }
 0x3b1   : > { %4467 = vmatpush.bf16.msrb.mxu2 %v6271_v30  ;;  %4455 = vmatmul.bf16.vlgmr.msrb.gmra.mxu1 %v9385_v22  ;;  %v4517_v22 = vmul.f32 0.5, %v7211_v49  ;;  %v4260_v61 = vpop.f32.mrf.mxu0 }
 0x3b2   : > { %4483 = vmatmul.bf16.vlgmr.msrb.gmra.mxu0 %v9393_v27  ;;  %v4177_v27 = vadd.f32 %v4176_v39, %v4163_v50  ;;  %v4164_v58 = vpop.f32.mrf.mxu3 }
 0x3b3   : > { %v4531_v53 = vadd.f32 0.5, %v4517_v22  ;;  %v7213_v59 = vpop.eup %7212  ;;  %v4165_v63 = vadd.f32 %v4164_v58, %v2932_v41  ;;  %v4192_v0 = vpop.f32.mrf.mxu2 }
 0x3b4   : > { %4440 = vmatpush.bf16.msrb.mxu3 %v5795_v42  ;;  %v4191_v55 = vadd.f32 %v4190_v52, %v4177_v27 }
 0x3b5   : > { %4468 = vmatpush.bf16.msrb.mxu2 %v6243_v38  ;;  %4545 = vst [vmem:[%s10379_s15] sm:$0xff] %v4531_v53 }
 0x3b6   : > { %v4205_v57 = vadd.f32 %v4204_v45, %v4191_v55 }
 0x3b7   : > { %4441 = vmatmul.bf16.vlgmr.msrb.gmra.mxu3 %v9427_v44  ;;  %v4524_v44 = vmul.f32 0.5, %v7213_v59  ;;  %v4234_v21 = vpop.f32.mrf.mxu1 }
 0x3b8   : > { %4469 = vmatmul.bf16.vlgmr.msrb.gmra.mxu2 %v9435_v48  ;;  %v4490_v60 = vmul.f32 0.5, %v4205_v57  ;;  %v4179_v48 = vadd.f32 %v4178_v56, %v4165_v63 }
 0x3b9   : > { %v4538_v2 = vadd.f32 0.5, %v4524_v44  ;;  %v4262_v29 = vpop.f32.mrf.mxu0 }
 0x3ba   : > { %7214 = vtanh.f32 %v4490_v60  ;;  %v4193_v3 = vadd.f32 %v4192_v0, %v4179_v48  ;;  %v4218_v7 = vpop.f32.mrf.mxu3  ;;  %v2935_v0 = vperm.slane %v10296_v46, 4 }
 0x3bb   : > { %4552 = vst [vmem:[%s10379_s15 + $0x38] sm:$0xff] %v4538_v2  ;;  %v4219_v11 = vadd.f32 %v4218_v7, %v2933_v4  ;;  %v4246_v13 = vpop.f32.mrf.mxu2 }
 0x3bc   : > { %v4207_v5 = vadd.f32 %v4206_v1, %v4193_v3 }
 0x3bd   : > { %v4233_v14 = vadd.f32 %v4232_v6, %v4219_v11 }
 0x3be   : > { %v4497_v10 = vmul.f32 0.5, %v4207_v5 }
 0x3bf   : > { %v4247_v17 = vadd.f32 %v4246_v13, %v4233_v14 }
 0x3c0   : > { %v7215_v9 = vpop.eup %7214  ;;  %7216 = vtanh.f32 %v4497_v10 }
 0x3c1   : > { %v4518_v12 = vmul.f32 0.5, %v7215_v9  ;;  %v4261_v18 = vadd.f32 %v4260_v61, %v4247_v17 }
 0x3c2   : > { %v4220_v19 = vpop.f32.mrf.mxu3 }
 0x3c3   : > { %v4532_v15 = vadd.f32 0.5, %v4518_v12  ;;  %v4491_v23 = vmul.f32 0.5, %v4261_v18  ;;  %v4221_v8 = vadd.f32 %v4220_v19, %v2933_v4  ;;  %v4248_v28 = vpop.f32.mrf.mxu2 }
 0x3c5   : > { %4546 = vst [vmem:[%s10379_s15 + $0x8] sm:$0xff] %v4532_v15  ;;  %7218 = vtanh.f32 %v4491_v23  ;;  %v4235_v25 = vadd.f32 %v4234_v21, %v4221_v8  ;;  %v2936_v21 = vperm.slane %v10296_v46, 5 }
 0x3c6   : > { %v7217_v20 = vpop.eup %7216 }
 0x3c7   : > { %v4525_v24 = vmul.f32 0.5, %v7217_v20  ;;  %v4249_v54 = vadd.f32 %v4248_v28, %v4235_v25 }
 0x3c9   : > { %v4539_v26 = vadd.f32 0.5, %v4525_v24  ;;  %v4263_v30 = vadd.f32 %v4262_v29, %v4249_v54 }
 0x3cb   : > { %4553 = vst [vmem:[%s10379_s15 + $0x40] sm:$0xff] %v4539_v26  ;;  %v7219_v31 = vpop.eup %7218  ;;  %v4498_v32 = vmul.f32 0.5, %v4263_v30 }
 0x3cc   : > { %v4519_v34 = vmul.f32 0.5, %v7219_v31 }
 0x3cd   : > { %7220 = vtanh.f32 %v4498_v32 }
 0x3ce   : > { %v4533_v62 = vadd.f32 0.5, %v4519_v34  ;;  %v4288_v42 = vpop.f32.mrf.mxu1 }
 0x3cf   : > { %v4316_v41 = vpop.f32.mrf.mxu0 }
 0x3d0   : > { %4547 = vst [vmem:[%s10379_s15 + $0x10] sm:$0xff] %v4533_v62 }
 0x3d3   : > { %v7221_v35 = vpop.eup %7220 }
 0x3d4   : > { %v4526_v33 = vmul.f32 0.5, %v7221_v35 }
 0x3d6   : > { %v4540_v16 = vadd.f32 0.5, %v4526_v33  ;;  %v4290_v50 = vpop.f32.mrf.mxu1 }
 0x3d7   : > { %v4318_v53 = vpop.f32.mrf.mxu0 }
 0x3d8   : > { %4554 = vst [vmem:[%s10379_s15 + $0x48] sm:$0xff] %v4540_v16 }
 0x3da   : > { %v4274_v36 = vpop.f32.mrf.mxu3 }
 0x3db   : > { %v4275_v38 = vadd.f32 %v4274_v36, %v2934_v37  ;;  %v4302_v39 = vpop.f32.mrf.mxu2 }
 0x3dd   : > { %v4289_v40 = vadd.f32 %v4288_v42, %v4275_v38 }
 0x3df   : > { %v4303_v43 = vadd.f32 %v4302_v39, %v4289_v40 }
 0x3e1   : > { %v4317_v45 = vadd.f32 %v4316_v41, %v4303_v43 }
 0x3e2   : > { %v4276_v47 = vpop.f32.mrf.mxu3 }
 0x3e3   : > { %v4492_v49 = vmul.f32 0.5, %v4317_v45  ;;  %v4277_v51 = vadd.f32 %v4276_v47, %v2934_v37  ;;  %v4304_v22 = vpop.f32.mrf.mxu2 }
 0x3e5   : > { %7222 = vtanh.f32 %v4492_v49  ;;  %v4291_v52 = vadd.f32 %v4290_v50, %v4277_v51  ;;  %v2937_v51 = vperm.slane %v10296_v46, 6 }
 0x3e7   : > { %v4305_v27 = vadd.f32 %v4304_v22, %v4291_v52 }
 0x3e9   : > { %v4319_v55 = vadd.f32 %v4318_v53, %v4305_v27 }
 0x3eb   : > { %v7223_v56 = vpop.eup %7222  ;;  %v4499_v57 = vmul.f32 0.5, %v4319_v55 }
 0x3ec   : > { %v4520_v58 = vmul.f32 0.5, %v7223_v56 }
 0x3ed   : > { %7224 = vtanh.f32 %v4499_v57 }
 0x3ee   : > { %v4534_v59 = vadd.f32 0.5, %v4520_v58  ;;  %v4344_v1 = vpop.f32.mrf.mxu1 }
 0x3ef   : > { %v4372_v5 = vpop.f32.mrf.mxu0 }
 0x3f0   : > { %4548 = vst [vmem:[%s10379_s15 + $0x18] sm:$0xff] %v4534_v59 }
 0x3f3   : > { %v7225_v60 = vpop.eup %7224 }
 0x3f4   : > { %v4527_v63 = vmul.f32 0.5, %v7225_v60 }
 0x3f6   : > { %v4541_v44 = vadd.f32 0.5, %v4527_v63  ;;  %v4346_v12 = vpop.f32.mrf.mxu1 }
 0x3f7   : > { %v4374_v61 = vpop.f32.mrf.mxu0 }
 0x3f8   : > { %4555 = vst [vmem:[%s10379_s15 + $0x50] sm:$0xff] %v4541_v44 }
 0x3fa   : > { %v4330_v48 = vpop.f32.mrf.mxu3 }
 0x3fb   : > { %v4331_v2 = vadd.f32 %v4330_v48, %v2935_v0  ;;  %v4358_v3 = vpop.f32.mrf.mxu2 }
 0x3fd   : > { %v4345_v4 = vadd.f32 %v4344_v1, %v4331_v2 }
 0x3ff   : > { %v4359_v6 = vadd.f32 %v4358_v3, %v4345_v4 }
 0x401   : > { %v4373_v7 = vadd.f32 %v4372_v5, %v4359_v6 }
 0x402   : > { %v4332_v9 = vpop.f32.mrf.mxu3 }
 0x403   : > { %v4493_v10 = vmul.f32 0.5, %v4373_v7  ;;  %v4333_v11 = vadd.f32 %v4332_v9, %v2935_v0  ;;  %v4360_v14 = vpop.f32.mrf.mxu2 }
 0x405   : > { %7226 = vtanh.f32 %v4493_v10  ;;  %v4347_v13 = vadd.f32 %v4346_v12, %v4333_v11 }
 0x407   : > { %v4361_v15 = vadd.f32 %v4360_v14, %v4347_v13 }
 0x409   : > { %v4375_v17 = vadd.f32 %v4374_v61, %v4361_v15 }
 0x40b   : > { %v7227_v18 = vpop.eup %7226  ;;  %v4500_v19 = vmul.f32 0.5, %v4375_v17 }
 0x40c   : > { %v4521_v20 = vmul.f32 0.5, %v7227_v18 }
 0x40d   : > { %7228 = vtanh.f32 %v4500_v19 }
 0x40e   : > { %v4535_v23 = vadd.f32 0.5, %v4521_v20  ;;  %v4400_v26 = vpop.f32.mrf.mxu1 }
 0x40f   : > { %v4428_v31 = vpop.f32.mrf.mxu0 }
 0x410   : > { %4549 = vst [vmem:[%s10379_s15 + $0x20] sm:$0xff] %v4535_v23 }
 0x413   : > { %v7229_v8 = vpop.eup %7228 }
 0x414   : > { %v4528_v24 = vmul.f32 0.5, %v7229_v8 }
 0x416   : > { %v4542_v25 = vadd.f32 0.5, %v4528_v24  ;;  %v4402_v37 = vpop.f32.mrf.mxu1 }
 0x417   : > { %v4430_v38 = vpop.f32.mrf.mxu0 }
 0x418   : > { %4556 = vst [vmem:[%s10379_s15 + $0x58] sm:$0xff] %v4542_v25 }
 0x41a   : > { %v4386_v28 = vpop.f32.mrf.mxu3 }
 0x41b   : > { %v4387_v54 = vadd.f32 %v4386_v28, %v2936_v21  ;;  %v4414_v29 = vpop.f32.mrf.mxu2 }
 0x41d   : > { %v4401_v30 = vadd.f32 %v4400_v26, %v4387_v54 }
 0x41f   : > { %v4415_v32 = vadd.f32 %v4414_v29, %v4401_v30 }
 0x421   : > { %v4429_v34 = vadd.f32 %v4428_v31, %v4415_v32 }
 0x422   : > { %v4388_v62 = vpop.f32.mrf.mxu3 }
 0x423   : > { %v4494_v35 = vmul.f32 0.5, %v4429_v34  ;;  %v4389_v33 = vadd.f32 %v4388_v62, %v2936_v21  ;;  %v4416_v42 = vpop.f32.mrf.mxu2 }
 0x425   : > { %7230 = vtanh.f32 %v4494_v35  ;;  %v4403_v16 = vadd.f32 %v4402_v37, %v4389_v33 }
 0x427   : > { %v4417_v36 = vadd.f32 %v4416_v42, %v4403_v16 }
 0x429   : > { %v4431_v39 = vadd.f32 %v4430_v38, %v4417_v36 }
 0x42b   : > { %v7231_v40 = vpop.eup %7230  ;;  %v4501_v41 = vmul.f32 0.5, %v4431_v39 }
 0x42c   : > { %v4522_v43 = vmul.f32 0.5, %v7231_v40 }
 0x42d   : > { %7232 = vtanh.f32 %v4501_v41 }
 0x42e   : > { %v4536_v45 = vadd.f32 0.5, %v4522_v43  ;;  %v4456_v52 = vpop.f32.mrf.mxu1 }
 0x42f   : > { %v4484_v56 = vpop.f32.mrf.mxu0 }
 0x430   : > { %4550 = vst [vmem:[%s10379_s15 + $0x28] sm:$0xff] %v4536_v45 }
 0x433   : > { %v7233_v47 = vpop.eup %7232 }
 0x434   : > { %v4529_v49 = vmul.f32 0.5, %v7233_v47 }
 0x436   : > { %v4543_v50 = vadd.f32 0.5, %v4529_v49  ;;  %v4458_v0 = vpop.f32.mrf.mxu1 }
 0x437   : > { %v4486_v48 = vpop.f32.mrf.mxu0 }
 0x438   : > { %4557 = vst [vmem:[%s10379_s15 + $0x60] sm:$0xff] %v4543_v50 }
 0x43a   : > { %v4442_v22 = vpop.f32.mrf.mxu3 }
 0x43b   : > { %v4443_v27 = vadd.f32 %v4442_v22, %v2937_v51  ;;  %v4470_v53 = vpop.f32.mrf.mxu2 }
 0x43d   : > { %v4457_v55 = vadd.f32 %v4456_v52, %v4443_v27 }
 0x43f   : > { %v4471_v57 = vadd.f32 %v4470_v53, %v4457_v55 }
 0x441   : > { %v4485_v58 = vadd.f32 %v4484_v56, %v4471_v57 }
 0x442   : > { %v4444_v59 = vpop.f32.mrf.mxu3 }
 0x443   : > { %v4495_v60 = vmul.f32 0.5, %v4485_v58  ;;  %v4445_v63 = vadd.f32 %v4444_v59, %v2937_v51  ;;  %v4472_v46 = vpop.f32.mrf.mxu2 }
 0x445   : > { %7234 = vtanh.f32 %v4495_v60  ;;  %v4459_v44 = vadd.f32 %v4458_v0, %v4445_v63 }
 0x447   : > { %v4473_v1 = vadd.f32 %v4472_v46, %v4459_v44 }
 0x449   : > { %v4487_v2 = vadd.f32 %v4486_v48, %v4473_v1 }
 0x44b   : > { %v7235_v3 = vpop.eup %7234  ;;  %v4502_v4 = vmul.f32 0.5, %v4487_v2 }
 0x44c   : > { %v4523_v5 = vmul.f32 0.5, %v7235_v3 }
 0x44d   : > { %7236 = vtanh.f32 %v4502_v4 }
 0x44e   : > { %v4537_v6 = vadd.f32 0.5, %v4523_v5 }
 0x450   : > { %4551 = vst.msk [vmem:[%s10379_s15 + $0x30] sm:$0xff] %vm1657_vm0, %v4537_v6 }
 0x453   : > { %v7237_v7 = vpop.eup %7236 }
 0x454   : > { %v4530_v9 = vmul.f32 0.5, %v7237_v7 }
 0x456   : > { %v4544_v10 = vadd.f32 0.5, %v4530_v9 }
 0x458   : > { %4558 = vst.msk [vmem:[%s10379_s15 + $0x68] sm:$0xff] %vm1657_vm0, %v4544_v10 }
 0x459   : > { %7265 = shalt.err (!%p7262_p3)
}
 0x45a   : > { %s7303_s16 = smov 896   ;;  %s7304_s15 = smov 56  }
 0x45b   : > { %7163 = dma.vmem_to_hbm [thread:$0]  (%p7403_p5), %s4581_s26, 1792, %s4583_s13, %s4562_s21, %s7303_s16, %s7303_s16, %s7304_s15  }
 0x45c PF: > { %p7169_p4 = scmp.ge.s32.totalorder %s7300_s20, 2  ;;  %s4601_s24 = sand.u32 1, %s7288_s17  }
 0x45d   : > { %s4602_s23 = scalar_lea.sflag [#allocation3], %s4601_s24 }
 0x45e   : > { %p7166_p7 = pnand %p7169_p4, %p7407_p6 }
 0x460   : > { %p7167_p8 = pneg %p7166_p7 }
 0x462   : > { %7283 = dma.done.wait (%p7167_p8), %s4602_s23, 1792  }
 0x463   : > { %7285 = vsyncadd (%p7167_p8), %s4602_s23, 4294965504  ;;  %s10458_s20 = sld [smem:[#allocation6_spill]]  ;;  %s10461_s17 = smov %s7292_s18 }
 0x464   : > { %s10459_s29 = sld [smem:[#allocation5_spill]] }
 0x465   : > { %s10460_s19 = sld [smem:[#allocation7_spill]] }
 0x469   : > { %p22_p9 = scmp.ge.s32.totalorder %s10458_s20, 4  }
 0x46a   : > { %s10462_s18 = smov %s10459_s29 }
 0x46b   :  { %24 = sbr.rel (!%p22_p9) target bundleno = 5 (0x5), region = 110 }
 0x470   :  { %4616 = vsyncpa [#allocation3], 1 }
 0x471   :  { %4618 = vsyncpa [#allocation3 + $0x1], 1 }

</bundles_post_ra>
